<compile_context>
chip_gen: v6e
topology: v6e:2x2x1
jax: 0.10.0
libtpu: 0.0.40
codegen_flags: <defaults>
</compile_context>

<pallas_src>
import functools

import jax
import jax.numpy as jnp
from jax.experimental import pallas as pl
from jax.experimental.pallas import tpu as pltpu


# ---------------------------------------------------------------------------
# Fused kernel
# ---------------------------------------------------------------------------
def _make_df_block_kernel(H, W, in_ch, mix_ch, out_ch, res_num, cpad):
    """Build the fused _DFBlock kernel for one image (grid step = one batch)."""
    Hp, Wp = H + 2, W + 2
    P = Hp * Wp                # flattened padded spatial extent (lane axis)
    M = W + 3                  # margin so every 3x3 tap shift stays in-bounds
    n_conv = 2 * res_num + 2   # convs in forward order

    def kernel(*refs):
        x_ref, mask_ref = refs[0], refs[1]
        p_refs = refs[2:2 + 4 * n_conv]           # (w_a, b_a, w_b, b_b) per conv
        o_ref = refs[2 + 4 * n_conv]
        pad_ref = refs[3 + 4 * n_conv]            # (cpad, 2*M + P) activation slab
        patch_ref = refs[4 + 4 * n_conv]          # (9*cpad, P) im2col slab

        mask = mask_ref[...]                      # (1, P): 1 inside, 0 on border

        # ---- in-kernel zero padding: scatter input rows into the slab ------
        pad_ref[...] = jnp.zeros_like(pad_ref)
        for h in range(H):
            dst = M + (h + 1) * Wp + 1
            pad_ref[0:in_ch, dst:dst + W] = x_ref[0, :, h * W:(h + 1) * W]

        def conv_mfm(li, cout, k3):
            """conv(3x3 pad1 / 1x1 pad0, stride1) + bias + MFM2/1, flat layout."""
            wa_ref, ba_ref, wb_ref, bb_ref = p_refs[4 * li:4 * li + 4]
            if k3:
                # im2col: gather the 9 shifted taps into one (9*cpad, P) slab.
                for kh in range(3):
                    for kw in range(3):
                        t = kh * 3 + kw
                        d = (kh - 1) * Wp + (kw - 1)
                        patch_ref[t * cpad:(t + 1) * cpad, :] = (
                            pad_ref[:, M + d:M + d + P])
                rhs = patch_ref[...]               # (9*cpad, P), native dtype
            else:
                rhs = pad_ref[:, M:M + P]          # (cpad, P)
            # One MXU push per MFM half, f32 accumulation, lane-dense output.
            acc_a = jax.lax.dot_general(
                wa_ref[...], rhs, (((1,), (0,)), ((), ())),
                preferred_element_type=jnp.float32)
            acc_b = jax.lax.dot_general(
                wb_ref[...], rhs, (((1,), (0,)), ((), ())),
                preferred_element_type=jnp.float32)
            out = jnp.maximum(acc_a + ba_ref[...], acc_b + bb_ref[...])  # MFM 2/1
            return out * mask                      # keep padded border at zero

        def write_act(a, c):
            pad_ref[0:c, M:M + P] = a.astype(pad_ref.dtype)

        li = 0
        # x in flat padded layout (borders are zero)
        act = pad_ref[0:in_ch, M:M + P].astype(jnp.float32)

        # res_num x ResidualBlock: x = x + ConvMFM(ConvMFM(x))
        for _ in range(res_num):
            h1 = conv_mfm(li, in_ch, True); li += 1
            write_act(h1, in_ch)
            h2 = conv_mfm(li, in_ch, True); li += 1
            act = act + h2
            write_act(act, in_ch)

        # _Conv2dMFM2_1(in_channels, mix_channels, kernel=1, pad=0)
        act = conv_mfm(li, mix_ch, False); li += 1
        write_act(act, mix_ch)

        # _Conv2dMFM2_1(mix_channels, out_channels, kernel=3, pad=1)
        act = conv_mfm(li, out_ch, True); li += 1
        o_ref[0, :, :] = act.astype(o_ref.dtype)

    return kernel


# ---------------------------------------------------------------------------
# Wrapper
# ---------------------------------------------------------------------------
def _prep_conv_params(w_oihw, b, cpad):
    """Split OIHW conv weights/bias into the two MFM halves as K-major slabs.

    K is ordered (kh, kw, cin_padded) to match the in-kernel patch layout;
    input channels are zero-padded to `cpad`.
    """
    o2, cin, kh, kw = w_oihw.shape
    cout = o2 // 2
    wp = jnp.pad(w_oihw, ((0, 0), (0, cpad - cin), (0, 0), (0, 0)))
    slab = jnp.transpose(wp, (0, 2, 3, 1)).reshape(o2, kh * kw * cpad)
    b2 = b.reshape(o2, 1)
    return slab[:cout], b2[:cout], slab[cout:], b2[cout:]


def df_block_forward(x, params):
    """_DFBlock forward.  x: (N, C, H, W) NCHW -> (N, out_ch, H, W) NCHW."""
    N, C, H, W = x.shape
    in_ch = C
    mix_ch = params["mix"][0].shape[0] // 2
    out_ch = params["out"][0].shape[0] // 2
    res_num = len(params["res"])

    Hp, Wp = H + 2, W + 2
    P = Hp * Wp
    M = W + 3
    SLAB = P + 2 * M
    cpad = ((max(in_ch, mix_ch) + 7) // 8) * 8   # pad K channel blocks to 8 sublanes

    # Border mask in flat padded coordinates (1 inside, 0 on the 1-px border).
    mask = jnp.zeros((Hp, Wp), x.dtype).at[1:H + 1, 1:W + 1].set(1).reshape(1, P)

    # Flatten conv params in forward order, pre-split per MFM half.
    conv_params = []
    for (w1, b1), (w2, b2) in params["res"]:
        conv_params.append(_prep_conv_params(w1, b1, cpad))
        conv_params.append(_prep_conv_params(w2, b2, cpad))
    conv_params.append(_prep_conv_params(*params["mix"], cpad))
    conv_params.append(_prep_conv_params(*params["out"], cpad))
    flat_params = [a for group in conv_params for a in group]

    x_flat = x.reshape(N, C, H * W)   # free metadata reshape; padding is in-kernel

    kernel = _make_df_block_kernel(H, W, in_ch, mix_ch, out_ch, res_num, cpad)

    in_specs = [pl.BlockSpec((1, C, H * W), lambda n: (n, 0, 0)),
                pl.BlockSpec((1, P), lambda n: (0, 0))]
    in_specs += [pl.BlockSpec(a.shape, lambda n: (0, 0)) for a in flat_params]

    y_flat = pl.pallas_call(
        kernel,
        out_shape=jax.ShapeDtypeStruct((N, out_ch, P), x.dtype),
        grid_spec=pltpu.PrefetchScalarGridSpec(
            num_scalar_prefetch=0,
            grid=(N,),
            in_specs=in_specs,
            out_specs=pl.BlockSpec((1, out_ch, P), lambda n: (n, 0, 0)),
            scratch_shapes=[pltpu.VMEM((cpad, SLAB), x.dtype),
                            pltpu.VMEM((9 * cpad, P), x.dtype)]),
        compiler_params=pltpu.CompilerParams(
            dimension_semantics=("parallel",)),
    )(x_flat, mask, *flat_params)

    # Drop the 1-px padded border (pure layout plumbing, done in XLA).
    return y_flat.reshape(N, out_ch, Hp, Wp)[:, :, 1:H + 1, 1:W + 1]


# ---------------------------------------------------------------------------
# Pure-JAX reference (for a correctness self-check)
# ---------------------------------------------------------------------------
def _conv_mfm_reference(x, w, b, padding):
    y = jax.lax.conv_general_dilated(
        x, w, window_strides=(1, 1),
        padding=((padding, padding), (padding, padding)),
        dimension_numbers=("NCHW", "OIHW", "NCHW"),
        precision=jax.lax.Precision.HIGHEST)
    y = y + b[None, :, None, None]
    cout = w.shape[0] // 2
    return jnp.maximum(y[:, :cout], y[:, cout:])


def df_block_reference(x, params):
    for (w1, b1), (w2, b2) in params["res"]:
        h = _conv_mfm_reference(x, w1, b1, 1)
        x = x + _conv_mfm_reference(h, w2, b2, 1)
    x = _conv_mfm_reference(x, *params["mix"], 0)
    x = _conv_mfm_reference(x, *params["out"], 1)
    return x


# ---------------------------------------------------------------------------
# Parameter init (deterministic; layout mirrors torch Conv2d: OIHW + bias)
# ---------------------------------------------------------------------------
def _init_conv_params(key, cin, cout, k):
    kw_key, kb_key = jax.random.split(key)
    fan_in = cin * k * k
    scale = 1.0 / jnp.sqrt(jnp.float32(fan_in))
    w = jax.random.normal(kw_key, (2 * cout, cin, k, k), jnp.float32) * scale
    b = jax.random.normal(kb_key, (2 * cout,), jnp.float32) * scale
    return w, b


def init_df_block_params(key, in_channels, mix_channels, out_channels, res_num):
    params = {"res": [], "mix": None, "out": None}
    keys = jax.random.split(key, 2 * res_num + 2)
    idx = 0
    for _ in range(res_num):
        p1 = _init_conv_params(keys[idx], in_channels, in_channels, 3); idx += 1
        p2 = _init_conv_params(keys[idx], in_channels, in_channels, 3); idx += 1
        params["res"].append((p1, p2))
    params["mix"] = _init_conv_params(keys[idx], in_channels, mix_channels, 1); idx += 1
    params["out"] = _init_conv_params(keys[idx], mix_channels, out_channels, 3); idx += 1
    return params


if __name__ == "__main__":
    # Small, module-consistent shapes.
    N, C_in, H, W = 2, 4, 16, 16
    mix_channels, out_channels, res_num = 8, 4, 2

    key = jax.random.PRNGKey(0)
    k_x, k_p = jax.random.split(key)
    x = jax.random.normal(k_x, (N, C_in, H, W), jnp.float32)   # NCHW input
    params = init_df_block_params(k_p, C_in, mix_channels, out_channels, res_num)

    fwd = jax.jit(functools.partial(df_block_forward, params=params))
    y = fwd(x)
    jax.block_until_ready(y)

    assert y.shape == (N, out_channels, H, W), y.shape
    assert bool(jnp.isfinite(y).all())

    # Correctness check against a pure-JAX reference of the PyTorch module.
    y_ref = jax.jit(functools.partial(df_block_reference, params=params))(x)
    max_err = float(jnp.max(jnp.abs(y - y_ref)))
    assert max_err < 1e-3, f"mismatch vs reference: max_err={max_err}"

    print("KERNEL_OK")
</pallas_src>

<mosaic_0001>
module attributes {stable_mosaic.version = 11 : i64} {
  func.func @kernel(%arg0: i32, %arg1: memref<1x4x256xf32, #tpu.memory_space<vmem>>, %arg2: memref<1x324xf32, #tpu.memory_space<vmem>>, %arg3: memref<4x72xf32, #tpu.memory_space<vmem>>, %arg4: memref<4x1xf32, #tpu.memory_space<vmem>>, %arg5: memref<4x72xf32, #tpu.memory_space<vmem>>, %arg6: memref<4x1xf32, #tpu.memory_space<vmem>>, %arg7: memref<4x72xf32, #tpu.memory_space<vmem>>, %arg8: memref<4x1xf32, #tpu.memory_space<vmem>>, %arg9: memref<4x72xf32, #tpu.memory_space<vmem>>, %arg10: memref<4x1xf32, #tpu.memory_space<vmem>>, %arg11: memref<4x72xf32, #tpu.memory_space<vmem>>, %arg12: memref<4x1xf32, #tpu.memory_space<vmem>>, %arg13: memref<4x72xf32, #tpu.memory_space<vmem>>, %arg14: memref<4x1xf32, #tpu.memory_space<vmem>>, %arg15: memref<4x72xf32, #tpu.memory_space<vmem>>, %arg16: memref<4x1xf32, #tpu.memory_space<vmem>>, %arg17: memref<4x72xf32, #tpu.memory_space<vmem>>, %arg18: memref<4x1xf32, #tpu.memory_space<vmem>>, %arg19: memref<8x8xf32, #tpu.memory_space<vmem>>, %arg20: memref<8x1xf32, #tpu.memory_space<vmem>>, %arg21: memref<8x8xf32, #tpu.memory_space<vmem>>, %arg22: memref<8x1xf32, #tpu.memory_space<vmem>>, %arg23: memref<4x72xf32, #tpu.memory_space<vmem>>, %arg24: memref<4x1xf32, #tpu.memory_space<vmem>>, %arg25: memref<4x72xf32, #tpu.memory_space<vmem>>, %arg26: memref<4x1xf32, #tpu.memory_space<vmem>>, %arg27: memref<1x4x324xf32, #tpu.memory_space<vmem>>, %arg28: memref<8x362xf32, #tpu.memory_space<vmem>>, %arg29: memref<72x324xf32, #tpu.memory_space<vmem>>) attributes {dimension_semantics = [#tpu.dimension_semantics<parallel>], iteration_bounds = array<i64: 2>, scalar_prefetch = 0 : i64, scratch_operands = 2 : i64, tpu.core_type = #tpu.core_type<tc>, window_params = [{transform_indices = @transform_0, window_bounds = array<i64: 1, 4, 256>}, {pipeline_mode = #tpu.pipeline_mode<synchronous>, transform_indices = @transform_1, window_bounds = array<i64: 1, 324>}, {pipeline_mode = #tpu.pipeline_mode<synchronous>, transform_indices = @transform_2, window_bounds = array<i64: 4, 72>}, {pipeline_mode = #tpu.pipeline_mode<synchronous>, transform_indices = @transform_3, window_bounds = array<i64: 4, 1>}, {pipeline_mode = #tpu.pipeline_mode<synchronous>, transform_indices = @transform_4, window_bounds = array<i64: 4, 72>}, {pipeline_mode = #tpu.pipeline_mode<synchronous>, transform_indices = @transform_5, window_bounds = array<i64: 4, 1>}, {pipeline_mode = #tpu.pipeline_mode<synchronous>, transform_indices = @transform_6, window_bounds = array<i64: 4, 72>}, {pipeline_mode = #tpu.pipeline_mode<synchronous>, transform_indices = @transform_7, window_bounds = array<i64: 4, 1>}, {pipeline_mode = #tpu.pipeline_mode<synchronous>, transform_indices = @transform_8, window_bounds = array<i64: 4, 72>}, {pipeline_mode = #tpu.pipeline_mode<synchronous>, transform_indices = @transform_9, window_bounds = array<i64: 4, 1>}, {pipeline_mode = #tpu.pipeline_mode<synchronous>, transform_indices = @transform_10, window_bounds = array<i64: 4, 72>}, {pipeline_mode = #tpu.pipeline_mode<synchronous>, transform_indices = @transform_11, window_bounds = array<i64: 4, 1>}, {pipeline_mode = #tpu.pipeline_mode<synchronous>, transform_indices = @transform_12, window_bounds = array<i64: 4, 72>}, {pipeline_mode = #tpu.pipeline_mode<synchronous>, transform_indices = @transform_13, window_bounds = array<i64: 4, 1>}, {pipeline_mode = #tpu.pipeline_mode<synchronous>, transform_indices = @transform_14, window_bounds = array<i64: 4, 72>}, {pipeline_mode = #tpu.pipeline_mode<synchronous>, transform_indices = @transform_15, window_bounds = array<i64: 4, 1>}, {pipeline_mode = #tpu.pipeline_mode<synchronous>, transform_indices = @transform_16, window_bounds = array<i64: 4, 72>}, {pipeline_mode = #tpu.pipeline_mode<synchronous>, transform_indices = @transform_17, window_bounds = array<i64: 4, 1>}, {pipeline_mode = #tpu.pipeline_mode<synchronous>, transform_indices = @transform_18, window_bounds = array<i64: 8, 8>}, {pipeline_mode = #tpu.pipeline_mode<synchronous>, transform_indices = @transform_19, window_bounds = array<i64: 8, 1>}, {pipeline_mode = #tpu.pipeline_mode<synchronous>, transform_indices = @transform_20, window_bounds = array<i64: 8, 8>}, {pipeline_mode = #tpu.pipeline_mode<synchronous>, transform_indices = @transform_21, window_bounds = array<i64: 8, 1>}, {pipeline_mode = #tpu.pipeline_mode<synchronous>, transform_indices = @transform_22, window_bounds = array<i64: 4, 72>}, {pipeline_mode = #tpu.pipeline_mode<synchronous>, transform_indices = @transform_23, window_bounds = array<i64: 4, 1>}, {pipeline_mode = #tpu.pipeline_mode<synchronous>, transform_indices = @transform_24, window_bounds = array<i64: 4, 72>}, {pipeline_mode = #tpu.pipeline_mode<synchronous>, transform_indices = @transform_25, window_bounds = array<i64: 4, 1>}, {transform_indices = @transform_26, window_bounds = array<i64: 1, 4, 324>}]} {
    %c0 = arith.constant 0 : index
    %c0_0 = arith.constant 0 : index
    %0 = vector.load %arg2[%c0, %c0_0] : memref<1x324xf32, #tpu.memory_space<vmem>>, vector<1x324xf32>
    %cst = arith.constant 0.000000e+00 : f32
    %1 = vector.broadcast %cst : f32 to vector<8x362xf32>
    %c0_1 = arith.constant 0 : index
    %c0_2 = arith.constant 0 : index
    %2 = vector.load %arg28[%c0_1, %c0_2] : memref<8x362xf32, #tpu.memory_space<vmem>>, vector<8x362xf32>
    tpu.vector_store %arg28[%c0_1, %c0_2], %1 {strides = array<i32>} : memref<8x362xf32, #tpu.memory_space<vmem>>, vector<8x362xf32>,
    %c0_3 = arith.constant 0 : index
    %c0_4 = arith.constant 0 : index
    %c0_5 = arith.constant 0 : index
    %3 = vector.load %arg1[%c0_3, %c0_4, %c0_5] : memref<1x4x256xf32, #tpu.memory_space<vmem>>, vector<1x4x16xf32>
    %4 = vector.shape_cast %3 : vector<1x4x16xf32> to vector<4x16xf32>
    %c0_6 = arith.constant 0 : index
    %c38 = arith.constant 38 : index
    %5 = vector.load %arg28[%c0_6, %c38] : memref<8x362xf32, #tpu.memory_space<vmem>>, vector<4x16xf32>
    tpu.vector_store %arg28[%c0_6, %c38], %4 {strides = array<i32>} : memref<8x362xf32, #tpu.memory_space<vmem>>, vector<4x16xf32>,
    %c0_7 = arith.constant 0 : index
    %c0_8 = arith.constant 0 : index
    %c16 = arith.constant 16 : index
    %6 = vector.load %arg1[%c0_7, %c0_8, %c16] : memref<1x4x256xf32, #tpu.memory_space<vmem>>, vector<1x4x16xf32>
    %7 = vector.shape_cast %6 : vector<1x4x16xf32> to vector<4x16xf32>
    %c0_9 = arith.constant 0 : index
    %c56 = arith.constant 56 : index
    %8 = vector.load %arg28[%c0_9, %c56] : memref<8x362xf32, #tpu.memory_space<vmem>>, vector<4x16xf32>
    tpu.vector_store %arg28[%c0_9, %c56], %7 {strides = array<i32>} : memref<8x362xf32, #tpu.memory_space<vmem>>, vector<4x16xf32>,
    %c0_10 = arith.constant 0 : index
    %c0_11 = arith.constant 0 : index
    %c32 = arith.constant 32 : index
    %9 = vector.load %arg1[%c0_10, %c0_11, %c32] : memref<1x4x256xf32, #tpu.memory_space<vmem>>, vector<1x4x16xf32>
    %10 = vector.shape_cast %9 : vector<1x4x16xf32> to vector<4x16xf32>
    %c0_12 = arith.constant 0 : index
    %c74 = arith.constant 74 : index
    %11 = vector.load %arg28[%c0_12, %c74] : memref<8x362xf32, #tpu.memory_space<vmem>>, vector<4x16xf32>
    tpu.vector_store %arg28[%c0_12, %c74], %10 {strides = array<i32>} : memref<8x362xf32, #tpu.memory_space<vmem>>, vector<4x16xf32>,
    %c0_13 = arith.constant 0 : index
    %c0_14 = arith.constant 0 : index
    %c48 = arith.constant 48 : index
    %12 = vector.load %arg1[%c0_13, %c0_14, %c48] : memref<1x4x256xf32, #tpu.memory_space<vmem>>, vector<1x4x16xf32>
    %13 = vector.shape_cast %12 : vector<1x4x16xf32> to vector<4x16xf32>
    %c0_15 = arith.constant 0 : index
    %c92 = arith.constant 92 : index
    %14 = vector.load %arg28[%c0_15, %c92] : memref<8x362xf32, #tpu.memory_space<vmem>>, vector<4x16xf32>
    tpu.vector_store %arg28[%c0_15, %c92], %13 {strides = array<i32>} : memref<8x362xf32, #tpu.memory_space<vmem>>, vector<4x16xf32>,
    %c0_16 = arith.constant 0 : index
    %c0_17 = arith.constant 0 : index
    %c64 = arith.constant 64 : index
    %15 = vector.load %arg1[%c0_16, %c0_17, %c64] : memref<1x4x256xf32, #tpu.memory_space<vmem>>, vector<1x4x16xf32>
    %16 = vector.shape_cast %15 : vector<1x4x16xf32> to vector<4x16xf32>
    %c0_18 = arith.constant 0 : index
    %c110 = arith.constant 110 : index
    %17 = vector.load %arg28[%c0_18, %c110] : memref<8x362xf32, #tpu.memory_space<vmem>>, vector<4x16xf32>
    tpu.vector_store %arg28[%c0_18, %c110], %16 {strides = array<i32>} : memref<8x362xf32, #tpu.memory_space<vmem>>, vector<4x16xf32>,
    %c0_19 = arith.constant 0 : index
    %c0_20 = arith.constant 0 : index
    %c80 = arith.constant 80 : index
    %18 = vector.load %arg1[%c0_19, %c0_20, %c80] : memref<1x4x256xf32, #tpu.memory_space<vmem>>, vector<1x4x16xf32>
    %19 = vector.shape_cast %18 : vector<1x4x16xf32> to vector<4x16xf32>
    %c0_21 = arith.constant 0 : index
    %c128 = arith.constant 128 : index
    %20 = vector.load %arg28[%c0_21, %c128] : memref<8x362xf32, #tpu.memory_space<vmem>>, vector<4x16xf32>
    tpu.vector_store %arg28[%c0_21, %c128], %19 {strides = array<i32>} : memref<8x362xf32, #tpu.memory_space<vmem>>, vector<4x16xf32>,
    %c0_22 = arith.constant 0 : index
    %c0_23 = arith.constant 0 : index
    %c96 = arith.constant 96 : index
    %21 = vector.load %arg1[%c0_22, %c0_23, %c96] : memref<1x4x256xf32, #tpu.memory_space<vmem>>, vector<1x4x16xf32>
    %22 = vector.shape_cast %21 : vector<1x4x16xf32> to vector<4x16xf32>
    %c0_24 = arith.constant 0 : index
    %c146 = arith.constant 146 : index
    %23 = vector.load %arg28[%c0_24, %c146] : memref<8x362xf32, #tpu.memory_space<vmem>>, vector<4x16xf32>
    tpu.vector_store %arg28[%c0_24, %c146], %22 {strides = array<i32>} : memref<8x362xf32, #tpu.memory_space<vmem>>, vector<4x16xf32>,
    %c0_25 = arith.constant 0 : index
    %c0_26 = arith.constant 0 : index
    %c112 = arith.constant 112 : index
    %24 = vector.load %arg1[%c0_25, %c0_26, %c112] : memref<1x4x256xf32, #tpu.memory_space<vmem>>, vector<1x4x16xf32>
    %25 = vector.shape_cast %24 : vector<1x4x16xf32> to vector<4x16xf32>
    %c0_27 = arith.constant 0 : index
    %c164 = arith.constant 164 : index
    %26 = vector.load %arg28[%c0_27, %c164] : memref<8x362xf32, #tpu.memory_space<vmem>>, vector<4x16xf32>
    tpu.vector_store %arg28[%c0_27, %c164], %25 {strides = array<i32>} : memref<8x362xf32, #tpu.memory_space<vmem>>, vector<4x16xf32>,
    %c0_28 = arith.constant 0 : index
    %c0_29 = arith.constant 0 : index
    %c128_30 = arith.constant 128 : index
    %27 = vector.load %arg1[%c0_28, %c0_29, %c128_30] : memref<1x4x256xf32, #tpu.memory_space<vmem>>, vector<1x4x16xf32>
    %28 = vector.shape_cast %27 : vector<1x4x16xf32> to vector<4x16xf32>
    %c0_31 = arith.constant 0 : index
    %c182 = arith.constant 182 : index
    %29 = vector.load %arg28[%c0_31, %c182] : memref<8x362xf32, #tpu.memory_space<vmem>>, vector<4x16xf32>
    tpu.vector_store %arg28[%c0_31, %c182], %28 {strides = array<i32>} : memref<8x362xf32, #tpu.memory_space<vmem>>, vector<4x16xf32>,
    %c0_32 = arith.constant 0 : index
    %c0_33 = arith.constant 0 : index
    %c144 = arith.constant 144 : index
    %30 = vector.load %arg1[%c0_32, %c0_33, %c144] : memref<1x4x256xf32, #tpu.memory_space<vmem>>, vector<1x4x16xf32>
    %31 = vector.shape_cast %30 : vector<1x4x16xf32> to vector<4x16xf32>
    %c0_34 = arith.constant 0 : index
    %c200 = arith.constant 200 : index
    %32 = vector.load %arg28[%c0_34, %c200] : memref<8x362xf32, #tpu.memory_space<vmem>>, vector<4x16xf32>
    tpu.vector_store %arg28[%c0_34, %c200], %31 {strides = array<i32>} : memref<8x362xf32, #tpu.memory_space<vmem>>, vector<4x16xf32>,
    %c0_35 = arith.constant 0 : index
    %c0_36 = arith.constant 0 : index
    %c160 = arith.constant 160 : index
    %33 = vector.load %arg1[%c0_35, %c0_36, %c160] : memref<1x4x256xf32, #tpu.memory_space<vmem>>, vector<1x4x16xf32>
    %34 = vector.shape_cast %33 : vector<1x4x16xf32> to vector<4x16xf32>
    %c0_37 = arith.constant 0 : index
    %c218 = arith.constant 218 : index
    %35 = vector.load %arg28[%c0_37, %c218] : memref<8x362xf32, #tpu.memory_space<vmem>>, vector<4x16xf32>
    tpu.vector_store %arg28[%c0_37, %c218], %34 {strides = array<i32>} : memref<8x362xf32, #tpu.memory_space<vmem>>, vector<4x16xf32>,
    %c0_38 = arith.constant 0 : index
    %c0_39 = arith.constant 0 : index
    %c176 = arith.constant 176 : index
    %36 = vector.load %arg1[%c0_38, %c0_39, %c176] : memref<1x4x256xf32, #tpu.memory_space<vmem>>, vector<1x4x16xf32>
    %37 = vector.shape_cast %36 : vector<1x4x16xf32> to vector<4x16xf32>
    %c0_40 = arith.constant 0 : index
    %c236 = arith.constant 236 : index
    %38 = vector.load %arg28[%c0_40, %c236] : memref<8x362xf32, #tpu.memory_space<vmem>>, vector<4x16xf32>
    tpu.vector_store %arg28[%c0_40, %c236], %37 {strides = array<i32>} : memref<8x362xf32, #tpu.memory_space<vmem>>, vector<4x16xf32>,
    %c0_41 = arith.constant 0 : index
    %c0_42 = arith.constant 0 : index
    %c192 = arith.constant 192 : index
    %39 = vector.load %arg1[%c0_41, %c0_42, %c192] : memref<1x4x256xf32, #tpu.memory_space<vmem>>, vector<1x4x16xf32>
    %40 = vector.shape_cast %39 : vector<1x4x16xf32> to vector<4x16xf32>
    %c0_43 = arith.constant 0 : index
    %c254 = arith.constant 254 : index
    %41 = vector.load %arg28[%c0_43, %c254] : memref<8x362xf32, #tpu.memory_space<vmem>>, vector<4x16xf32>
    tpu.vector_store %arg28[%c0_43, %c254], %40 {strides = array<i32>} : memref<8x362xf32, #tpu.memory_space<vmem>>, vector<4x16xf32>,
    %c0_44 = arith.constant 0 : index
    %c0_45 = arith.constant 0 : index
    %c208 = arith.constant 208 : index
    %42 = vector.load %arg1[%c0_44, %c0_45, %c208] : memref<1x4x256xf32, #tpu.memory_space<vmem>>, vector<1x4x16xf32>
    %43 = vector.shape_cast %42 : vector<1x4x16xf32> to vector<4x16xf32>
    %c0_46 = arith.constant 0 : index
    %c272 = arith.constant 272 : index
    %44 = vector.load %arg28[%c0_46, %c272] : memref<8x362xf32, #tpu.memory_space<vmem>>, vector<4x16xf32>
    tpu.vector_store %arg28[%c0_46, %c272], %43 {strides = array<i32>} : memref<8x362xf32, #tpu.memory_space<vmem>>, vector<4x16xf32>,
    %c0_47 = arith.constant 0 : index
    %c0_48 = arith.constant 0 : index
    %c224 = arith.constant 224 : index
    %45 = vector.load %arg1[%c0_47, %c0_48, %c224] : memref<1x4x256xf32, #tpu.memory_space<vmem>>, vector<1x4x16xf32>
    %46 = vector.shape_cast %45 : vector<1x4x16xf32> to vector<4x16xf32>
    %c0_49 = arith.constant 0 : index
    %c290 = arith.constant 290 : index
    %47 = vector.load %arg28[%c0_49, %c290] : memref<8x362xf32, #tpu.memory_space<vmem>>, vector<4x16xf32>
    tpu.vector_store %arg28[%c0_49, %c290], %46 {strides = array<i32>} : memref<8x362xf32, #tpu.memory_space<vmem>>, vector<4x16xf32>,
    %c0_50 = arith.constant 0 : index
    %c0_51 = arith.constant 0 : index
    %c240 = arith.constant 240 : index
    %48 = vector.load %arg1[%c0_50, %c0_51, %c240] : memref<1x4x256xf32, #tpu.memory_space<vmem>>, vector<1x4x16xf32>
    %49 = vector.shape_cast %48 : vector<1x4x16xf32> to vector<4x16xf32>
    %c0_52 = arith.constant 0 : index
    %c308 = arith.constant 308 : index
    %50 = vector.load %arg28[%c0_52, %c308] : memref<8x362xf32, #tpu.memory_space<vmem>>, vector<4x16xf32>
    tpu.vector_store %arg28[%c0_52, %c308], %49 {strides = array<i32>} : memref<8x362xf32, #tpu.memory_space<vmem>>, vector<4x16xf32>,
    %c0_53 = arith.constant 0 : index
    %c19 = arith.constant 19 : index
    %51 = vector.load %arg28[%c0_53, %c19] : memref<8x362xf32, #tpu.memory_space<vmem>>, vector<4x324xf32>
    %c0_54 = arith.constant 0 : index
    %c0_55 = arith.constant 0 : index
    %52 = vector.load %arg28[%c0_54, %c0_55] : memref<8x362xf32, #tpu.memory_space<vmem>>, vector<8x324xf32>
    %c0_56 = arith.constant 0 : index
    %c0_57 = arith.constant 0 : index
    %53 = vector.load %arg29[%c0_56, %c0_57] : memref<72x324xf32, #tpu.memory_space<vmem>>, vector<8x324xf32>
    tpu.vector_store %arg29[%c0_56, %c0_57], %52 {strides = array<i32>} : memref<72x324xf32, #tpu.memory_space<vmem>>, vector<8x324xf32>,
    %c0_58 = arith.constant 0 : index
    %c1 = arith.constant 1 : index
    %54 = vector.load %arg28[%c0_58, %c1] : memref<8x362xf32, #tpu.memory_space<vmem>>, vector<8x324xf32>
    %c8 = arith.constant 8 : index
    %c0_59 = arith.constant 0 : index
    %55 = vector.load %arg29[%c8, %c0_59] : memref<72x324xf32, #tpu.memory_space<vmem>>, vector<8x324xf32>
    tpu.vector_store %arg29[%c8, %c0_59], %54 {strides = array<i32>} : memref<72x324xf32, #tpu.memory_space<vmem>>, vector<8x324xf32>,
    %c0_60 = arith.constant 0 : index
    %c2 = arith.constant 2 : index
    %56 = vector.load %arg28[%c0_60, %c2] : memref<8x362xf32, #tpu.memory_space<vmem>>, vector<8x324xf32>
    %c16_61 = arith.constant 16 : index
    %c0_62 = arith.constant 0 : index
    %57 = vector.load %arg29[%c16_61, %c0_62] : memref<72x324xf32, #tpu.memory_space<vmem>>, vector<8x324xf32>
    tpu.vector_store %arg29[%c16_61, %c0_62], %56 {strides = array<i32>} : memref<72x324xf32, #tpu.memory_space<vmem>>, vector<8x324xf32>,
    %c0_63 = arith.constant 0 : index
    %c18 = arith.constant 18 : index
    %58 = vector.load %arg28[%c0_63, %c18] : memref<8x362xf32, #tpu.memory_space<vmem>>, vector<8x324xf32>
    %c24 = arith.constant 24 : index
    %c0_64 = arith.constant 0 : index
    %59 = vector.load %arg29[%c24, %c0_64] : memref<72x324xf32, #tpu.memory_space<vmem>>, vector<8x324xf32>
    tpu.vector_store %arg29[%c24, %c0_64], %58 {strides = array<i32>} : memref<72x324xf32, #tpu.memory_space<vmem>>, vector<8x324xf32>,
    %c0_65 = arith.constant 0 : index
    %c19_66 = arith.constant 19 : index
    %60 = vector.load %arg28[%c0_65, %c19_66] : memref<8x362xf32, #tpu.memory_space<vmem>>, vector<8x324xf32>
    %c32_67 = arith.constant 32 : index
    %c0_68 = arith.constant 0 : index
    %61 = vector.load %arg29[%c32_67, %c0_68] : memref<72x324xf32, #tpu.memory_space<vmem>>, vector<8x324xf32>
    tpu.vector_store %arg29[%c32_67, %c0_68], %60 {strides = array<i32>} : memref<72x324xf32, #tpu.memory_space<vmem>>, vector<8x324xf32>,
    %c0_69 = arith.constant 0 : index
    %c20 = arith.constant 20 : index
    %62 = vector.load %arg28[%c0_69, %c20] : memref<8x362xf32, #tpu.memory_space<vmem>>, vector<8x324xf32>
    %c40 = arith.constant 40 : index
    %c0_70 = arith.constant 0 : index
    %63 = vector.load %arg29[%c40, %c0_70] : memref<72x324xf32, #tpu.memory_space<vmem>>, vector<8x324xf32>
    tpu.vector_store %arg29[%c40, %c0_70], %62 {strides = array<i32>} : memref<72x324xf32, #tpu.memory_space<vmem>>, vector<8x324xf32>,
    %c0_71 = arith.constant 0 : index
    %c36 = arith.constant 36 : index
    %64 = vector.load %arg28[%c0_71, %c36] : memref<8x362xf32, #tpu.memory_space<vmem>>, vector<8x324xf32>
    %c48_72 = arith.constant 48 : index
    %c0_73 = arith.constant 0 : index
    %65 = vector.load %arg29[%c48_72, %c0_73] : memref<72x324xf32, #tpu.memory_space<vmem>>, vector<8x324xf32>
    tpu.vector_store %arg29[%c48_72, %c0_73], %64 {strides = array<i32>} : memref<72x324xf32, #tpu.memory_space<vmem>>, vector<8x324xf32>,
    %c0_74 = arith.constant 0 : index
    %c37 = arith.constant 37 : index
    %66 = vector.load %arg28[%c0_74, %c37] : memref<8x362xf32, #tpu.memory_space<vmem>>, vector<8x324xf32>
    %c56_75 = arith.constant 56 : index
    %c0_76 = arith.constant 0 : index
    %67 = vector.load %arg29[%c56_75, %c0_76] : memref<72x324xf32, #tpu.memory_space<vmem>>, vector<8x324xf32>
    tpu.vector_store %arg29[%c56_75, %c0_76], %66 {strides = array<i32>} : memref<72x324xf32, #tpu.memory_space<vmem>>, vector<8x324xf32>,
    %c0_77 = arith.constant 0 : index
    %c38_78 = arith.constant 38 : index
    %68 = vector.load %arg28[%c0_77, %c38_78] : memref<8x362xf32, #tpu.memory_space<vmem>>, vector<8x324xf32>
    %c64_79 = arith.constant 64 : index
    %c0_80 = arith.constant 0 : index
    %69 = vector.load %arg29[%c64_79, %c0_80] : memref<72x324xf32, #tpu.memory_space<vmem>>, vector<8x324xf32>
    tpu.vector_store %arg29[%c64_79, %c0_80], %68 {strides = array<i32>} : memref<72x324xf32, #tpu.memory_space<vmem>>, vector<8x324xf32>,
    %c0_81 = arith.constant 0 : index
    %c0_82 = arith.constant 0 : index
    %70 = vector.load %arg29[%c0_81, %c0_82] : memref<72x324xf32, #tpu.memory_space<vmem>>, vector<72x324xf32>
    %c0_83 = arith.constant 0 : index
    %c0_84 = arith.constant 0 : index
    %71 = vector.load %arg3[%c0_83, %c0_84] : memref<4x72xf32, #tpu.memory_space<vmem>>, vector<4x72xf32>
    %cst_85 = arith.constant dense<0.000000e+00> : vector<4x324xf32>
    %72 = tpu.matmul %71, %70, %cst_85 {dimension_numbers = #tpu.dot_dimension_numbers<[1], [0], [0], [1], [0, 0, 1, 1], [], []>} : vector<4x72xf32>, vector<72x324xf32>, vector<4x324xf32> -> vector<4x324xf32>
    %c0_86 = arith.constant 0 : index
    %c0_87 = arith.constant 0 : index
    %73 = vector.load %arg5[%c0_86, %c0_87] : memref<4x72xf32, #tpu.memory_space<vmem>>, vector<4x72xf32>
    %cst_88 = arith.constant dense<0.000000e+00> : vector<4x324xf32>
    %74 = tpu.matmul %73, %70, %cst_88 {dimension_numbers = #tpu.dot_dimension_numbers<[1], [0], [0], [1], [0, 0, 1, 1], [], []>} : vector<4x72xf32>, vector<72x324xf32>, vector<4x324xf32> -> vector<4x324xf32>
    %c0_89 = arith.constant 0 : index
    %c0_90 = arith.constant 0 : index
    %75 = vector.load %arg4[%c0_89, %c0_90] : memref<4x1xf32, #tpu.memory_space<vmem>>, vector<4x1xf32>
    %76 = vector.broadcast %75 : vector<4x1xf32> to vector<4x324xf32>
    %77 = arith.addf %72, %76 : vector<4x324xf32>
    %c0_91 = arith.constant 0 : index
    %c0_92 = arith.constant 0 : index
    %78 = vector.load %arg6[%c0_91, %c0_92] : memref<4x1xf32, #tpu.memory_space<vmem>>, vector<4x1xf32>
    %79 = vector.broadcast %78 : vector<4x1xf32> to vector<4x324xf32>
    %80 = arith.addf %74, %79 : vector<4x324xf32>
    %81 = arith.maximumf %77, %80 : vector<4x324xf32>
    %82 = vector.broadcast %0 : vector<1x324xf32> to vector<4x324xf32>
    %83 = arith.mulf %81, %82 : vector<4x324xf32>
    %c0_93 = arith.constant 0 : index
    %c19_94 = arith.constant 19 : index
    %84 = vector.load %arg28[%c0_93, %c19_94] : memref<8x362xf32, #tpu.memory_space<vmem>>, vector<4x324xf32>
    tpu.vector_store %arg28[%c0_93, %c19_94], %83 {strides = array<i32>} : memref<8x362xf32, #tpu.memory_space<vmem>>, vector<4x324xf32>,
    %c0_95 = arith.constant 0 : index
    %c0_96 = arith.constant 0 : index
    %85 = vector.load %arg28[%c0_95, %c0_96] : memref<8x362xf32, #tpu.memory_space<vmem>>, vector<8x324xf32>
    %c0_97 = arith.constant 0 : index
    %c0_98 = arith.constant 0 : index
    %86 = vector.load %arg29[%c0_97, %c0_98] : memref<72x324xf32, #tpu.memory_space<vmem>>, vector<8x324xf32>
    tpu.vector_store %arg29[%c0_97, %c0_98], %85 {strides = array<i32>} : memref<72x324xf32, #tpu.memory_space<vmem>>, vector<8x324xf32>,
    %c0_99 = arith.constant 0 : index
    %c1_100 = arith.constant 1 : index
    %87 = vector.load %arg28[%c0_99, %c1_100] : memref<8x362xf32, #tpu.memory_space<vmem>>, vector<8x324xf32>
    %c8_101 = arith.constant 8 : index
    %c0_102 = arith.constant 0 : index
    %88 = vector.load %arg29[%c8_101, %c0_102] : memref<72x324xf32, #tpu.memory_space<vmem>>, vector<8x324xf32>
    tpu.vector_store %arg29[%c8_101, %c0_102], %87 {strides = array<i32>} : memref<72x324xf32, #tpu.memory_space<vmem>>, vector<8x324xf32>,
    %c0_103 = arith.constant 0 : index
    %c2_104 = arith.constant 2 : index
    %89 = vector.load %arg28[%c0_103, %c2_104] : memref<8x362xf32, #tpu.memory_space<vmem>>, vector<8x324xf32>
    %c16_105 = arith.constant 16 : index
    %c0_106 = arith.constant 0 : index
    %90 = vector.load %arg29[%c16_105, %c0_106] : memref<72x324xf32, #tpu.memory_space<vmem>>, vector<8x324xf32>
    tpu.vector_store %arg29[%c16_105, %c0_106], %89 {strides = array<i32>} : memref<72x324xf32, #tpu.memory_space<vmem>>, vector<8x324xf32>,
    %c0_107 = arith.constant 0 : index
    %c18_108 = arith.constant 18 : index
    %91 = vector.load %arg28[%c0_107, %c18_108] : memref<8x362xf32, #tpu.memory_space<vmem>>, vector<8x324xf32>
    %c24_109 = arith.constant 24 : index
    %c0_110 = arith.constant 0 : index
    %92 = vector.load %arg29[%c24_109, %c0_110] : memref<72x324xf32, #tpu.memory_space<vmem>>, vector<8x324xf32>
    tpu.vector_store %arg29[%c24_109, %c0_110], %91 {strides = array<i32>} : memref<72x324xf32, #tpu.memory_space<vmem>>, vector<8x324xf32>,
    %c0_111 = arith.constant 0 : index
    %c19_112 = arith.constant 19 : index
    %93 = vector.load %arg28[%c0_111, %c19_112] : memref<8x362xf32, #tpu.memory_space<vmem>>, vector<8x324xf32>
    %c32_113 = arith.constant 32 : index
    %c0_114 = arith.constant 0 : index
    %94 = vector.load %arg29[%c32_113, %c0_114] : memref<72x324xf32, #tpu.memory_space<vmem>>, vector<8x324xf32>
    tpu.vector_store %arg29[%c32_113, %c0_114], %93 {strides = array<i32>} : memref<72x324xf32, #tpu.memory_space<vmem>>, vector<8x324xf32>,
    %c0_115 = arith.constant 0 : index
    %c20_116 = arith.constant 20 : index
    %95 = vector.load %arg28[%c0_115, %c20_116] : memref<8x362xf32, #tpu.memory_space<vmem>>, vector<8x324xf32>
    %c40_117 = arith.constant 40 : index
    %c0_118 = arith.constant 0 : index
    %96 = vector.load %arg29[%c40_117, %c0_118] : memref<72x324xf32, #tpu.memory_space<vmem>>, vector<8x324xf32>
    tpu.vector_store %arg29[%c40_117, %c0_118], %95 {strides = array<i32>} : memref<72x324xf32, #tpu.memory_space<vmem>>, vector<8x324xf32>,
    %c0_119 = arith.constant 0 : index
    %c36_120 = arith.constant 36 : index
    %97 = vector.load %arg28[%c0_119, %c36_120] : memref<8x362xf32, #tpu.memory_space<vmem>>, vector<8x324xf32>
    %c48_121 = arith.constant 48 : index
    %c0_122 = arith.constant 0 : index
    %98 = vector.load %arg29[%c48_121, %c0_122] : memref<72x324xf32, #tpu.memory_space<vmem>>, vector<8x324xf32>
    tpu.vector_store %arg29[%c48_121, %c0_122], %97 {strides = array<i32>} : memref<72x324xf32, #tpu.memory_space<vmem>>, vector<8x324xf32>,
    %c0_123 = arith.constant 0 : index
    %c37_124 = arith.constant 37 : index
    %99 = vector.load %arg28[%c0_123, %c37_124] : memref<8x362xf32, #tpu.memory_space<vmem>>, vector<8x324xf32>
    %c56_125 = arith.constant 56 : index
    %c0_126 = arith.constant 0 : index
    %100 = vector.load %arg29[%c56_125, %c0_126] : memref<72x324xf32, #tpu.memory_space<vmem>>, vector<8x324xf32>
    tpu.vector_store %arg29[%c56_125, %c0_126], %99 {strides = array<i32>} : memref<72x324xf32, #tpu.memory_space<vmem>>, vector<8x324xf32>,
    %c0_127 = arith.constant 0 : index
    %c38_128 = arith.constant 38 : index
    %101 = vector.load %arg28[%c0_127, %c38_128] : memref<8x362xf32, #tpu.memory_space<vmem>>, vector<8x324xf32>
    %c64_129 = arith.constant 64 : index
    %c0_130 = arith.constant 0 : index
    %102 = vector.load %arg29[%c64_129, %c0_130] : memref<72x324xf32, #tpu.memory_space<vmem>>, vector<8x324xf32>
    tpu.vector_store %arg29[%c64_129, %c0_130], %101 {strides = array<i32>} : memref<72x324xf32, #tpu.memory_space<vmem>>, vector<8x324xf32>,
    %c0_131 = arith.constant 0 : index
    %c0_132 = arith.constant 0 : index
    %103 = vector.load %arg29[%c0_131, %c0_132] : memref<72x324xf32, #tpu.memory_space<vmem>>, vector<72x324xf32>
    %c0_133 = arith.constant 0 : index
    %c0_134 = arith.constant 0 : index
    %104 = vector.load %arg7[%c0_133, %c0_134] : memref<4x72xf32, #tpu.memory_space<vmem>>, vector<4x72xf32>
    %cst_135 = arith.constant dense<0.000000e+00> : vector<4x324xf32>
    %105 = tpu.matmul %104, %103, %cst_135 {dimension_numbers = #tpu.dot_dimension_numbers<[1], [0], [0], [1], [0, 0, 1, 1], [], []>} : vector<4x72xf32>, vector<72x324xf32>, vector<4x324xf32> -> vector<4x324xf32>
    %c0_136 = arith.constant 0 : index
    %c0_137 = arith.constant 0 : index
    %106 = vector.load %arg9[%c0_136, %c0_137] : memref<4x72xf32, #tpu.memory_space<vmem>>, vector<4x72xf32>
    %cst_138 = arith.constant dense<0.000000e+00> : vector<4x324xf32>
    %107 = tpu.matmul %106, %103, %cst_138 {dimension_numbers = #tpu.dot_dimension_numbers<[1], [0], [0], [1], [0, 0, 1, 1], [], []>} : vector<4x72xf32>, vector<72x324xf32>, vector<4x324xf32> -> vector<4x324xf32>
    %c0_139 = arith.constant 0 : index
    %c0_140 = arith.constant 0 : index
    %108 = vector.load %arg8[%c0_139, %c0_140] : memref<4x1xf32, #tpu.memory_space<vmem>>, vector<4x1xf32>
    %109 = vector.broadcast %108 : vector<4x1xf32> to vector<4x324xf32>
    %110 = arith.addf %105, %109 : vector<4x324xf32>
    %c0_141 = arith.constant 0 : index
    %c0_142 = arith.constant 0 : index
    %111 = vector.load %arg10[%c0_141, %c0_142] : memref<4x1xf32, #tpu.memory_space<vmem>>, vector<4x1xf32>
    %112 = vector.broadcast %111 : vector<4x1xf32> to vector<4x324xf32>
    %113 = arith.addf %107, %112 : vector<4x324xf32>
    %114 = arith.maximumf %110, %113 : vector<4x324xf32>
    %115 = vector.broadcast %0 : vector<1x324xf32> to vector<4x324xf32>
    %116 = arith.mulf %114, %115 : vector<4x324xf32>
    %117 = arith.addf %51, %116 : vector<4x324xf32>
    %c0_143 = arith.constant 0 : index
    %c19_144 = arith.constant 19 : index
    %118 = vector.load %arg28[%c0_143, %c19_144] : memref<8x362xf32, #tpu.memory_space<vmem>>, vector<4x324xf32>
    tpu.vector_store %arg28[%c0_143, %c19_144], %117 {strides = array<i32>} : memref<8x362xf32, #tpu.memory_space<vmem>>, vector<4x324xf32>,
    %c0_145 = arith.constant 0 : index
    %c0_146 = arith.constant 0 : index
    %119 = vector.load %arg28[%c0_145, %c0_146] : memref<8x362xf32, #tpu.memory_space<vmem>>, vector<8x324xf32>
    %c0_147 = arith.constant 0 : index
    %c0_148 = arith.constant 0 : index
    %120 = vector.load %arg29[%c0_147, %c0_148] : memref<72x324xf32, #tpu.memory_space<vmem>>, vector<8x324xf32>
    tpu.vector_store %arg29[%c0_147, %c0_148], %119 {strides = array<i32>} : memref<72x324xf32, #tpu.memory_space<vmem>>, vector<8x324xf32>,
    %c0_149 = arith.constant 0 : index
    %c1_150 = arith.constant 1 : index
    %121 = vector.load %arg28[%c0_149, %c1_150] : memref<8x362xf32, #tpu.memory_space<vmem>>, vector<8x324xf32>
    %c8_151 = arith.constant 8 : index
    %c0_152 = arith.constant 0 : index
    %122 = vector.load %arg29[%c8_151, %c0_152] : memref<72x324xf32, #tpu.memory_space<vmem>>, vector<8x324xf32>
    tpu.vector_store %arg29[%c8_151, %c0_152], %121 {strides = array<i32>} : memref<72x324xf32, #tpu.memory_space<vmem>>, vector<8x324xf32>,
    %c0_153 = arith.constant 0 : index
    %c2_154 = arith.constant 2 : index
    %123 = vector.load %arg28[%c0_153, %c2_154] : memref<8x362xf32, #tpu.memory_space<vmem>>, vector<8x324xf32>
    %c16_155 = arith.constant 16 : index
    %c0_156 = arith.constant 0 : index
    %124 = vector.load %arg29[%c16_155, %c0_156] : memref<72x324xf32, #tpu.memory_space<vmem>>, vector<8x324xf32>
    tpu.vector_store %arg29[%c16_155, %c0_156], %123 {strides = array<i32>} : memref<72x324xf32, #tpu.memory_space<vmem>>, vector<8x324xf32>,
    %c0_157 = arith.constant 0 : index
    %c18_158 = arith.constant 18 : index
    %125 = vector.load %arg28[%c0_157, %c18_158] : memref<8x362xf32, #tpu.memory_space<vmem>>, vector<8x324xf32>
    %c24_159 = arith.constant 24 : index
    %c0_160 = arith.constant 0 : index
    %126 = vector.load %arg29[%c24_159, %c0_160] : memref<72x324xf32, #tpu.memory_space<vmem>>, vector<8x324xf32>
    tpu.vector_store %arg29[%c24_159, %c0_160], %125 {strides = array<i32>} : memref<72x324xf32, #tpu.memory_space<vmem>>, vector<8x324xf32>,
    %c0_161 = arith.constant 0 : index
    %c19_162 = arith.constant 19 : index
    %127 = vector.load %arg28[%c0_161, %c19_162] : memref<8x362xf32, #tpu.memory_space<vmem>>, vector<8x324xf32>
    %c32_163 = arith.constant 32 : index
    %c0_164 = arith.constant 0 : index
    %128 = vector.load %arg29[%c32_163, %c0_164] : memref<72x324xf32, #tpu.memory_space<vmem>>, vector<8x324xf32>
    tpu.vector_store %arg29[%c32_163, %c0_164], %127 {strides = array<i32>} : memref<72x324xf32, #tpu.memory_space<vmem>>, vector<8x324xf32>,
    %c0_165 = arith.constant 0 : index
    %c20_166 = arith.constant 20 : index
    %129 = vector.load %arg28[%c0_165, %c20_166] : memref<8x362xf32, #tpu.memory_space<vmem>>, vector<8x324xf32>
    %c40_167 = arith.constant 40 : index
    %c0_168 = arith.constant 0 : index
    %130 = vector.load %arg29[%c40_167, %c0_168] : memref<72x324xf32, #tpu.memory_space<vmem>>, vector<8x324xf32>
    tpu.vector_store %arg29[%c40_167, %c0_168], %129 {strides = array<i32>} : memref<72x324xf32, #tpu.memory_space<vmem>>, vector<8x324xf32>,
    %c0_169 = arith.constant 0 : index
    %c36_170 = arith.constant 36 : index
    %131 = vector.load %arg28[%c0_169, %c36_170] : memref<8x362xf32, #tpu.memory_space<vmem>>, vector<8x324xf32>
    %c48_171 = arith.constant 48 : index
    %c0_172 = arith.constant 0 : index
    %132 = vector.load %arg29[%c48_171, %c0_172] : memref<72x324xf32, #tpu.memory_space<vmem>>, vector<8x324xf32>
    tpu.vector_store %arg29[%c48_171, %c0_172], %131 {strides = array<i32>} : memref<72x324xf32, #tpu.memory_space<vmem>>, vector<8x324xf32>,
    %c0_173 = arith.constant 0 : index
    %c37_174 = arith.constant 37 : index
    %133 = vector.load %arg28[%c0_173, %c37_174] : memref<8x362xf32, #tpu.memory_space<vmem>>, vector<8x324xf32>
    %c56_175 = arith.constant 56 : index
    %c0_176 = arith.constant 0 : index
    %134 = vector.load %arg29[%c56_175, %c0_176] : memref<72x324xf32, #tpu.memory_space<vmem>>, vector<8x324xf32>
    tpu.vector_store %arg29[%c56_175, %c0_176], %133 {strides = array<i32>} : memref<72x324xf32, #tpu.memory_space<vmem>>, vector<8x324xf32>,
    %c0_177 = arith.constant 0 : index
    %c38_178 = arith.constant 38 : index
    %135 = vector.load %arg28[%c0_177, %c38_178] : memref<8x362xf32, #tpu.memory_space<vmem>>, vector<8x324xf32>
    %c64_179 = arith.constant 64 : index
    %c0_180 = arith.constant 0 : index
    %136 = vector.load %arg29[%c64_179, %c0_180] : memref<72x324xf32, #tpu.memory_space<vmem>>, vector<8x324xf32>
    tpu.vector_store %arg29[%c64_179, %c0_180], %135 {strides = array<i32>} : memref<72x324xf32, #tpu.memory_space<vmem>>, vector<8x324xf32>,
    %c0_181 = arith.constant 0 : index
    %c0_182 = arith.constant 0 : index
    %137 = vector.load %arg29[%c0_181, %c0_182] : memref<72x324xf32, #tpu.memory_space<vmem>>, vector<72x324xf32>
    %c0_183 = arith.constant 0 : index
    %c0_184 = arith.constant 0 : index
    %138 = vector.load %arg11[%c0_183, %c0_184] : memref<4x72xf32, #tpu.memory_space<vmem>>, vector<4x72xf32>
    %cst_185 = arith.constant dense<0.000000e+00> : vector<4x324xf32>
    %139 = tpu.matmul %138, %137, %cst_185 {dimension_numbers = #tpu.dot_dimension_numbers<[1], [0], [0], [1], [0, 0, 1, 1], [], []>} : vector<4x72xf32>, vector<72x324xf32>, vector<4x324xf32> -> vector<4x324xf32>
    %c0_186 = arith.constant 0 : index
    %c0_187 = arith.constant 0 : index
    %140 = vector.load %arg13[%c0_186, %c0_187] : memref<4x72xf32, #tpu.memory_space<vmem>>, vector<4x72xf32>
    %cst_188 = arith.constant dense<0.000000e+00> : vector<4x324xf32>
    %141 = tpu.matmul %140, %137, %cst_188 {dimension_numbers = #tpu.dot_dimension_numbers<[1], [0], [0], [1], [0, 0, 1, 1], [], []>} : vector<4x72xf32>, vector<72x324xf32>, vector<4x324xf32> -> vector<4x324xf32>
    %c0_189 = arith.constant 0 : index
    %c0_190 = arith.constant 0 : index
    %142 = vector.load %arg12[%c0_189, %c0_190] : memref<4x1xf32, #tpu.memory_space<vmem>>, vector<4x1xf32>
    %143 = vector.broadcast %142 : vector<4x1xf32> to vector<4x324xf32>
    %144 = arith.addf %139, %143 : vector<4x324xf32>
    %c0_191 = arith.constant 0 : index
    %c0_192 = arith.constant 0 : index
    %145 = vector.load %arg14[%c0_191, %c0_192] : memref<4x1xf32, #tpu.memory_space<vmem>>, vector<4x1xf32>
    %146 = vector.broadcast %145 : vector<4x1xf32> to vector<4x324xf32>
    %147 = arith.addf %141, %146 : vector<4x324xf32>
    %148 = arith.maximumf %144, %147 : vector<4x324xf32>
    %149 = vector.broadcast %0 : vector<1x324xf32> to vector<4x324xf32>
    %150 = arith.mulf %148, %149 : vector<4x324xf32>
    %c0_193 = arith.constant 0 : index
    %c19_194 = arith.constant 19 : index
    %151 = vector.load %arg28[%c0_193, %c19_194] : memref<8x362xf32, #tpu.memory_space<vmem>>, vector<4x324xf32>
    tpu.vector_store %arg28[%c0_193, %c19_194], %150 {strides = array<i32>} : memref<8x362xf32, #tpu.memory_space<vmem>>, vector<4x324xf32>,
    %c0_195 = arith.constant 0 : index
    %c0_196 = arith.constant 0 : index
    %152 = vector.load %arg28[%c0_195, %c0_196] : memref<8x362xf32, #tpu.memory_space<vmem>>, vector<8x324xf32>
    %c0_197 = arith.constant 0 : index
    %c0_198 = arith.constant 0 : index
    %153 = vector.load %arg29[%c0_197, %c0_198] : memref<72x324xf32, #tpu.memory_space<vmem>>, vector<8x324xf32>
    tpu.vector_store %arg29[%c0_197, %c0_198], %152 {strides = array<i32>} : memref<72x324xf32, #tpu.memory_space<vmem>>, vector<8x324xf32>,
    %c0_199 = arith.constant 0 : index
    %c1_200 = arith.constant 1 : index
    %154 = vector.load %arg28[%c0_199, %c1_200] : memref<8x362xf32, #tpu.memory_space<vmem>>, vector<8x324xf32>
    %c8_201 = arith.constant 8 : index
    %c0_202 = arith.constant 0 : index
    %155 = vector.load %arg29[%c8_201, %c0_202] : memref<72x324xf32, #tpu.memory_space<vmem>>, vector<8x324xf32>
    tpu.vector_store %arg29[%c8_201, %c0_202], %154 {strides = array<i32>} : memref<72x324xf32, #tpu.memory_space<vmem>>, vector<8x324xf32>,
    %c0_203 = arith.constant 0 : index
    %c2_204 = arith.constant 2 : index
    %156 = vector.load %arg28[%c0_203, %c2_204] : memref<8x362xf32, #tpu.memory_space<vmem>>, vector<8x324xf32>
    %c16_205 = arith.constant 16 : index
    %c0_206 = arith.constant 0 : index
    %157 = vector.load %arg29[%c16_205, %c0_206] : memref<72x324xf32, #tpu.memory_space<vmem>>, vector<8x324xf32>
    tpu.vector_store %arg29[%c16_205, %c0_206], %156 {strides = array<i32>} : memref<72x324xf32, #tpu.memory_space<vmem>>, vector<8x324xf32>,
    %c0_207 = arith.constant 0 : index
    %c18_208 = arith.constant 18 : index
    %158 = vector.load %arg28[%c0_207, %c18_208] : memref<8x362xf32, #tpu.memory_space<vmem>>, vector<8x324xf32>
    %c24_209 = arith.constant 24 : index
    %c0_210 = arith.constant 0 : index
    %159 = vector.load %arg29[%c24_209, %c0_210] : memref<72x324xf32, #tpu.memory_space<vmem>>, vector<8x324xf32>
    tpu.vector_store %arg29[%c24_209, %c0_210], %158 {strides = array<i32>} : memref<72x324xf32, #tpu.memory_space<vmem>>, vector<8x324xf32>,
    %c0_211 = arith.constant 0 : index
    %c19_212 = arith.constant 19 : index
    %160 = vector.load %arg28[%c0_211, %c19_212] : memref<8x362xf32, #tpu.memory_space<vmem>>, vector<8x324xf32>
    %c32_213 = arith.constant 32 : index
    %c0_214 = arith.constant 0 : index
    %161 = vector.load %arg29[%c32_213, %c0_214] : memref<72x324xf32, #tpu.memory_space<vmem>>, vector<8x324xf32>
    tpu.vector_store %arg29[%c32_213, %c0_214], %160 {strides = array<i32>} : memref<72x324xf32, #tpu.memory_space<vmem>>, vector<8x324xf32>,
    %c0_215 = arith.constant 0 : index
    %c20_216 = arith.constant 20 : index
    %162 = vector.load %arg28[%c0_215, %c20_216] : memref<8x362xf32, #tpu.memory_space<vmem>>, vector<8x324xf32>
    %c40_217 = arith.constant 40 : index
    %c0_218 = arith.constant 0 : index
    %163 = vector.load %arg29[%c40_217, %c0_218] : memref<72x324xf32, #tpu.memory_space<vmem>>, vector<8x324xf32>
    tpu.vector_store %arg29[%c40_217, %c0_218], %162 {strides = array<i32>} : memref<72x324xf32, #tpu.memory_space<vmem>>, vector<8x324xf32>,
    %c0_219 = arith.constant 0 : index
    %c36_220 = arith.constant 36 : index
    %164 = vector.load %arg28[%c0_219, %c36_220] : memref<8x362xf32, #tpu.memory_space<vmem>>, vector<8x324xf32>
    %c48_221 = arith.constant 48 : index
    %c0_222 = arith.constant 0 : index
    %165 = vector.load %arg29[%c48_221, %c0_222] : memref<72x324xf32, #tpu.memory_space<vmem>>, vector<8x324xf32>
    tpu.vector_store %arg29[%c48_221, %c0_222], %164 {strides = array<i32>} : memref<72x324xf32, #tpu.memory_space<vmem>>, vector<8x324xf32>,
    %c0_223 = arith.constant 0 : index
    %c37_224 = arith.constant 37 : index
    %166 = vector.load %arg28[%c0_223, %c37_224] : memref<8x362xf32, #tpu.memory_space<vmem>>, vector<8x324xf32>
    %c56_225 = arith.constant 56 : index
    %c0_226 = arith.constant 0 : index
    %167 = vector.load %arg29[%c56_225, %c0_226] : memref<72x324xf32, #tpu.memory_space<vmem>>, vector<8x324xf32>
    tpu.vector_store %arg29[%c56_225, %c0_226], %166 {strides = array<i32>} : memref<72x324xf32, #tpu.memory_space<vmem>>, vector<8x324xf32>,
    %c0_227 = arith.constant 0 : index
    %c38_228 = arith.constant 38 : index
    %168 = vector.load %arg28[%c0_227, %c38_228] : memref<8x362xf32, #tpu.memory_space<vmem>>, vector<8x324xf32>
    %c64_229 = arith.constant 64 : index
    %c0_230 = arith.constant 0 : index
    %169 = vector.load %arg29[%c64_229, %c0_230] : memref<72x324xf32, #tpu.memory_space<vmem>>, vector<8x324xf32>
    tpu.vector_store %arg29[%c64_229, %c0_230], %168 {strides = array<i32>} : memref<72x324xf32, #tpu.memory_space<vmem>>, vector<8x324xf32>,
    %c0_231 = arith.constant 0 : index
    %c0_232 = arith.constant 0 : index
    %170 = vector.load %arg29[%c0_231, %c0_232] : memref<72x324xf32, #tpu.memory_space<vmem>>, vector<72x324xf32>
    %c0_233 = arith.constant 0 : index
    %c0_234 = arith.constant 0 : index
    %171 = vector.load %arg15[%c0_233, %c0_234] : memref<4x72xf32, #tpu.memory_space<vmem>>, vector<4x72xf32>
    %cst_235 = arith.constant dense<0.000000e+00> : vector<4x324xf32>
    %172 = tpu.matmul %171, %170, %cst_235 {dimension_numbers = #tpu.dot_dimension_numbers<[1], [0], [0], [1], [0, 0, 1, 1], [], []>} : vector<4x72xf32>, vector<72x324xf32>, vector<4x324xf32> -> vector<4x324xf32>
    %c0_236 = arith.constant 0 : index
    %c0_237 = arith.constant 0 : index
    %173 = vector.load %arg17[%c0_236, %c0_237] : memref<4x72xf32, #tpu.memory_space<vmem>>, vector<4x72xf32>
    %cst_238 = arith.constant dense<0.000000e+00> : vector<4x324xf32>
    %174 = tpu.matmul %173, %170, %cst_238 {dimension_numbers = #tpu.dot_dimension_numbers<[1], [0], [0], [1], [0, 0, 1, 1], [], []>} : vector<4x72xf32>, vector<72x324xf32>, vector<4x324xf32> -> vector<4x324xf32>
    %c0_239 = arith.constant 0 : index
    %c0_240 = arith.constant 0 : index
    %175 = vector.load %arg16[%c0_239, %c0_240] : memref<4x1xf32, #tpu.memory_space<vmem>>, vector<4x1xf32>
    %176 = vector.broadcast %175 : vector<4x1xf32> to vector<4x324xf32>
    %177 = arith.addf %172, %176 : vector<4x324xf32>
    %c0_241 = arith.constant 0 : index
    %c0_242 = arith.constant 0 : index
    %178 = vector.load %arg18[%c0_241, %c0_242] : memref<4x1xf32, #tpu.memory_space<vmem>>, vector<4x1xf32>
    %179 = vector.broadcast %178 : vector<4x1xf32> to vector<4x324xf32>
    %180 = arith.addf %174, %179 : vector<4x324xf32>
    %181 = arith.maximumf %177, %180 : vector<4x324xf32>
    %182 = vector.broadcast %0 : vector<1x324xf32> to vector<4x324xf32>
    %183 = arith.mulf %181, %182 : vector<4x324xf32>
    %184 = arith.addf %117, %183 : vector<4x324xf32>
    %c0_243 = arith.constant 0 : index
    %c19_244 = arith.constant 19 : index
    %185 = vector.load %arg28[%c0_243, %c19_244] : memref<8x362xf32, #tpu.memory_space<vmem>>, vector<4x324xf32>
    tpu.vector_store %arg28[%c0_243, %c19_244], %184 {strides = array<i32>} : memref<8x362xf32, #tpu.memory_space<vmem>>, vector<4x324xf32>,
    %c0_245 = arith.constant 0 : index
    %c19_246 = arith.constant 19 : index
    %186 = vector.load %arg28[%c0_245, %c19_246] : memref<8x362xf32, #tpu.memory_space<vmem>>, vector<8x324xf32>
    %c0_247 = arith.constant 0 : index
    %c0_248 = arith.constant 0 : index
    %187 = vector.load %arg19[%c0_247, %c0_248] : memref<8x8xf32, #tpu.memory_space<vmem>>, vector<8x8xf32>
    %cst_249 = arith.constant dense<0.000000e+00> : vector<8x324xf32>
    %188 = tpu.matmul %187, %186, %cst_249 {dimension_numbers = #tpu.dot_dimension_numbers<[1], [0], [0], [1], [0, 0, 1, 1], [], []>} : vector<8x8xf32>, vector<8x324xf32>, vector<8x324xf32> -> vector<8x324xf32>
    %c0_250 = arith.constant 0 : index
    %c0_251 = arith.constant 0 : index
    %189 = vector.load %arg21[%c0_250, %c0_251] : memref<8x8xf32, #tpu.memory_space<vmem>>, vector<8x8xf32>
    %cst_252 = arith.constant dense<0.000000e+00> : vector<8x324xf32>
    %190 = tpu.matmul %189, %186, %cst_252 {dimension_numbers = #tpu.dot_dimension_numbers<[1], [0], [0], [1], [0, 0, 1, 1], [], []>} : vector<8x8xf32>, vector<8x324xf32>, vector<8x324xf32> -> vector<8x324xf32>
    %c0_253 = arith.constant 0 : index
    %c0_254 = arith.constant 0 : index
    %191 = vector.load %arg20[%c0_253, %c0_254] : memref<8x1xf32, #tpu.memory_space<vmem>>, vector<8x1xf32>
    %192 = vector.broadcast %191 : vector<8x1xf32> to vector<8x324xf32>
    %193 = arith.addf %188, %192 : vector<8x324xf32>
    %c0_255 = arith.constant 0 : index
    %c0_256 = arith.constant 0 : index
    %194 = vector.load %arg22[%c0_255, %c0_256] : memref<8x1xf32, #tpu.memory_space<vmem>>, vector<8x1xf32>
    %195 = vector.broadcast %194 : vector<8x1xf32> to vector<8x324xf32>
    %196 = arith.addf %190, %195 : vector<8x324xf32>
    %197 = arith.maximumf %193, %196 : vector<8x324xf32>
    %198 = vector.broadcast %0 : vector<1x324xf32> to vector<8x324xf32>
    %199 = arith.mulf %197, %198 : vector<8x324xf32>
    %c0_257 = arith.constant 0 : index
    %c19_258 = arith.constant 19 : index
    %200 = vector.load %arg28[%c0_257, %c19_258] : memref<8x362xf32, #tpu.memory_space<vmem>>, vector<8x324xf32>
    tpu.vector_store %arg28[%c0_257, %c19_258], %199 {strides = array<i32>} : memref<8x362xf32, #tpu.memory_space<vmem>>, vector<8x324xf32>,
    %c0_259 = arith.constant 0 : index
    %c0_260 = arith.constant 0 : index
    %201 = vector.load %arg28[%c0_259, %c0_260] : memref<8x362xf32, #tpu.memory_space<vmem>>, vector<8x324xf32>
    %c0_261 = arith.constant 0 : index
    %c0_262 = arith.constant 0 : index
    %202 = vector.load %arg29[%c0_261, %c0_262] : memref<72x324xf32, #tpu.memory_space<vmem>>, vector<8x324xf32>
    tpu.vector_store %arg29[%c0_261, %c0_262], %201 {strides = array<i32>} : memref<72x324xf32, #tpu.memory_space<vmem>>, vector<8x324xf32>,
    %c0_263 = arith.constant 0 : index
    %c1_264 = arith.constant 1 : index
    %203 = vector.load %arg28[%c0_263, %c1_264] : memref<8x362xf32, #tpu.memory_space<vmem>>, vector<8x324xf32>
    %c8_265 = arith.constant 8 : index
    %c0_266 = arith.constant 0 : index
    %204 = vector.load %arg29[%c8_265, %c0_266] : memref<72x324xf32, #tpu.memory_space<vmem>>, vector<8x324xf32>
    tpu.vector_store %arg29[%c8_265, %c0_266], %203 {strides = array<i32>} : memref<72x324xf32, #tpu.memory_space<vmem>>, vector<8x324xf32>,
    %c0_267 = arith.constant 0 : index
    %c2_268 = arith.constant 2 : index
    %205 = vector.load %arg28[%c0_267, %c2_268] : memref<8x362xf32, #tpu.memory_space<vmem>>, vector<8x324xf32>
    %c16_269 = arith.constant 16 : index
    %c0_270 = arith.constant 0 : index
    %206 = vector.load %arg29[%c16_269, %c0_270] : memref<72x324xf32, #tpu.memory_space<vmem>>, vector<8x324xf32>
    tpu.vector_store %arg29[%c16_269, %c0_270], %205 {strides = array<i32>} : memref<72x324xf32, #tpu.memory_space<vmem>>, vector<8x324xf32>,
    %c0_271 = arith.constant 0 : index
    %c18_272 = arith.constant 18 : index
    %207 = vector.load %arg28[%c0_271, %c18_272] : memref<8x362xf32, #tpu.memory_space<vmem>>, vector<8x324xf32>
    %c24_273 = arith.constant 24 : index
    %c0_274 = arith.constant 0 : index
    %208 = vector.load %arg29[%c24_273, %c0_274] : memref<72x324xf32, #tpu.memory_space<vmem>>, vector<8x324xf32>
    tpu.vector_store %arg29[%c24_273, %c0_274], %207 {strides = array<i32>} : memref<72x324xf32, #tpu.memory_space<vmem>>, vector<8x324xf32>,
    %c0_275 = arith.constant 0 : index
    %c19_276 = arith.constant 19 : index
    %209 = vector.load %arg28[%c0_275, %c19_276] : memref<8x362xf32, #tpu.memory_space<vmem>>, vector<8x324xf32>
    %c32_277 = arith.constant 32 : index
    %c0_278 = arith.constant 0 : index
    %210 = vector.load %arg29[%c32_277, %c0_278] : memref<72x324xf32, #tpu.memory_space<vmem>>, vector<8x324xf32>
    tpu.vector_store %arg29[%c32_277, %c0_278], %209 {strides = array<i32>} : memref<72x324xf32, #tpu.memory_space<vmem>>, vector<8x324xf32>,
    %c0_279 = arith.constant 0 : index
    %c20_280 = arith.constant 20 : index
    %211 = vector.load %arg28[%c0_279, %c20_280] : memref<8x362xf32, #tpu.memory_space<vmem>>, vector<8x324xf32>
    %c40_281 = arith.constant 40 : index
    %c0_282 = arith.constant 0 : index
    %212 = vector.load %arg29[%c40_281, %c0_282] : memref<72x324xf32, #tpu.memory_space<vmem>>, vector<8x324xf32>
    tpu.vector_store %arg29[%c40_281, %c0_282], %211 {strides = array<i32>} : memref<72x324xf32, #tpu.memory_space<vmem>>, vector<8x324xf32>,
    %c0_283 = arith.constant 0 : index
    %c36_284 = arith.constant 36 : index
    %213 = vector.load %arg28[%c0_283, %c36_284] : memref<8x362xf32, #tpu.memory_space<vmem>>, vector<8x324xf32>
    %c48_285 = arith.constant 48 : index
    %c0_286 = arith.constant 0 : index
    %214 = vector.load %arg29[%c48_285, %c0_286] : memref<72x324xf32, #tpu.memory_space<vmem>>, vector<8x324xf32>
    tpu.vector_store %arg29[%c48_285, %c0_286], %213 {strides = array<i32>} : memref<72x324xf32, #tpu.memory_space<vmem>>, vector<8x324xf32>,
    %c0_287 = arith.constant 0 : index
    %c37_288 = arith.constant 37 : index
    %215 = vector.load %arg28[%c0_287, %c37_288] : memref<8x362xf32, #tpu.memory_space<vmem>>, vector<8x324xf32>
    %c56_289 = arith.constant 56 : index
    %c0_290 = arith.constant 0 : index
    %216 = vector.load %arg29[%c56_289, %c0_290] : memref<72x324xf32, #tpu.memory_space<vmem>>, vector<8x324xf32>
    tpu.vector_store %arg29[%c56_289, %c0_290], %215 {strides = array<i32>} : memref<72x324xf32, #tpu.memory_space<vmem>>, vector<8x324xf32>,
    %c0_291 = arith.constant 0 : index
    %c38_292 = arith.constant 38 : index
    %217 = vector.load %arg28[%c0_291, %c38_292] : memref<8x362xf32, #tpu.memory_space<vmem>>, vector<8x324xf32>
    %c64_293 = arith.constant 64 : index
    %c0_294 = arith.constant 0 : index
    %218 = vector.load %arg29[%c64_293, %c0_294] : memref<72x324xf32, #tpu.memory_space<vmem>>, vector<8x324xf32>
    tpu.vector_store %arg29[%c64_293, %c0_294], %217 {strides = array<i32>} : memref<72x324xf32, #tpu.memory_space<vmem>>, vector<8x324xf32>,
    %c0_295 = arith.constant 0 : index
    %c0_296 = arith.constant 0 : index
    %219 = vector.load %arg29[%c0_295, %c0_296] : memref<72x324xf32, #tpu.memory_space<vmem>>, vector<72x324xf32>
    %c0_297 = arith.constant 0 : index
    %c0_298 = arith.constant 0 : index
    %220 = vector.load %arg23[%c0_297, %c0_298] : memref<4x72xf32, #tpu.memory_space<vmem>>, vector<4x72xf32>
    %cst_299 = arith.constant dense<0.000000e+00> : vector<4x324xf32>
    %221 = tpu.matmul %220, %219, %cst_299 {dimension_numbers = #tpu.dot_dimension_numbers<[1], [0], [0], [1], [0, 0, 1, 1], [], []>} : vector<4x72xf32>, vector<72x324xf32>, vector<4x324xf32> -> vector<4x324xf32>
    %c0_300 = arith.constant 0 : index
    %c0_301 = arith.constant 0 : index
    %222 = vector.load %arg25[%c0_300, %c0_301] : memref<4x72xf32, #tpu.memory_space<vmem>>, vector<4x72xf32>
    %cst_302 = arith.constant dense<0.000000e+00> : vector<4x324xf32>
    %223 = tpu.matmul %222, %219, %cst_302 {dimension_numbers = #tpu.dot_dimension_numbers<[1], [0], [0], [1], [0, 0, 1, 1], [], []>} : vector<4x72xf32>, vector<72x324xf32>, vector<4x324xf32> -> vector<4x324xf32>
    %c0_303 = arith.constant 0 : index
    %c0_304 = arith.constant 0 : index
    %224 = vector.load %arg24[%c0_303, %c0_304] : memref<4x1xf32, #tpu.memory_space<vmem>>, vector<4x1xf32>
    %225 = vector.broadcast %224 : vector<4x1xf32> to vector<4x324xf32>
    %226 = arith.addf %221, %225 : vector<4x324xf32>
    %c0_305 = arith.constant 0 : index
    %c0_306 = arith.constant 0 : index
    %227 = vector.load %arg26[%c0_305, %c0_306] : memref<4x1xf32, #tpu.memory_space<vmem>>, vector<4x1xf32>
    %228 = vector.broadcast %227 : vector<4x1xf32> to vector<4x324xf32>
    %229 = arith.addf %223, %228 : vector<4x324xf32>
    %230 = arith.maximumf %226, %229 : vector<4x324xf32>
    %231 = vector.broadcast %0 : vector<1x324xf32> to vector<4x324xf32>
    %232 = arith.mulf %230, %231 : vector<4x324xf32>
    %c0_307 = arith.constant 0 : index
    %c0_308 = arith.constant 0 : index
    %c0_309 = arith.constant 0 : index
    %233 = vector.load %arg27[%c0_307, %c0_308, %c0_309] : memref<1x4x324xf32, #tpu.memory_space<vmem>>, vector<1x4x324xf32>
    %234 = vector.shape_cast %233 : vector<1x4x324xf32> to vector<4x324xf32>
    %235 = vector.shape_cast %232 : vector<4x324xf32> to vector<1x4x324xf32>
    tpu.vector_store %arg27[%c0_307, %c0_308, %c0_309], %235 {strides = array<i32>} : memref<1x4x324xf32, #tpu.memory_space<vmem>>, vector<1x4x324xf32>,
    return
  }
  func.func @transform_0(%arg0: i32) -> (i32, i32, i32) {
    %c0_i32 = arith.constant 0 : i32
    %c0_i32_0 = arith.constant 0 : i32
    %c0_i32_1 = arith.constant 0 : i32
    return %arg0, %c0_i32, %c0_i32_0 : i32, i32, i32
  }
  func.func @transform_1(%arg0: i32) -> (i32, i32) {
    %c0_i32 = arith.constant 0 : i32
    %c0_i32_0 = arith.constant 0 : i32
    %c0_i32_1 = arith.constant 0 : i32
    return %c0_i32, %c0_i32_0 : i32, i32
  }
  func.func @transform_2(%arg0: i32) -> (i32, i32) {
    %c0_i32 = arith.constant 0 : i32
    %c0_i32_0 = arith.constant 0 : i32
    %c0_i32_1 = arith.constant 0 : i32
    return %c0_i32, %c0_i32_0 : i32, i32
  }
  func.func @transform_3(%arg0: i32) -> (i32, i32) {
    %c0_i32 = arith.constant 0 : i32
    %c0_i32_0 = arith.constant 0 : i32
    %c0_i32_1 = arith.constant 0 : i32
    return %c0_i32, %c0_i32_0 : i32, i32
  }
  func.func @transform_4(%arg0: i32) -> (i32, i32) {
    %c0_i32 = arith.constant 0 : i32
    %c0_i32_0 = arith.constant 0 : i32
    %c0_i32_1 = arith.constant 0 : i32
    return %c0_i32, %c0_i32_0 : i32, i32
  }
  func.func @transform_5(%arg0: i32) -> (i32, i32) {
    %c0_i32 = arith.constant 0 : i32
    %c0_i32_0 = arith.constant 0 : i32
    %c0_i32_1 = arith.constant 0 : i32
    return %c0_i32, %c0_i32_0 : i32, i32
  }
  func.func @transform_6(%arg0: i32) -> (i32, i32) {
    %c0_i32 = arith.constant 0 : i32
    %c0_i32_0 = arith.constant 0 : i32
    %c0_i32_1 = arith.constant 0 : i32
    return %c0_i32, %c0_i32_0 : i32, i32
  }
  func.func @transform_7(%arg0: i32) -> (i32, i32) {
    %c0_i32 = arith.constant 0 : i32
    %c0_i32_0 = arith.constant 0 : i32
    %c0_i32_1 = arith.constant 0 : i32
    return %c0_i32, %c0_i32_0 : i32, i32
  }
  func.func @transform_8(%arg0: i32) -> (i32, i32) {
    %c0_i32 = arith.constant 0 : i32
    %c0_i32_0 = arith.constant 0 : i32
    %c0_i32_1 = arith.constant 0 : i32
    return %c0_i32, %c0_i32_0 : i32, i32
  }
  func.func @transform_9(%arg0: i32) -> (i32, i32) {
    %c0_i32 = arith.constant 0 : i32
    %c0_i32_0 = arith.constant 0 : i32
    %c0_i32_1 = arith.constant 0 : i32
    return %c0_i32, %c0_i32_0 : i32, i32
  }
  func.func @transform_10(%arg0: i32) -> (i32, i32) {
    %c0_i32 = arith.constant 0 : i32
    %c0_i32_0 = arith.constant 0 : i32
    %c0_i32_1 = arith.constant 0 : i32
    return %c0_i32, %c0_i32_0 : i32, i32
  }
  func.func @transform_11(%arg0: i32) -> (i32, i32) {
    %c0_i32 = arith.constant 0 : i32
    %c0_i32_0 = arith.constant 0 : i32
    %c0_i32_1 = arith.constant 0 : i32
    return %c0_i32, %c0_i32_0 : i32, i32
  }
  func.func @transform_12(%arg0: i32) -> (i32, i32) {
    %c0_i32 = arith.constant 0 : i32
    %c0_i32_0 = arith.constant 0 : i32
    %c0_i32_1 = arith.constant 0 : i32
    return %c0_i32, %c0_i32_0 : i32, i32
  }
  func.func @transform_13(%arg0: i32) -> (i32, i32) {
    %c0_i32 = arith.constant 0 : i32
    %c0_i32_0 = arith.constant 0 : i32
    %c0_i32_1 = arith.constant 0 : i32
    return %c0_i32, %c0_i32_0 : i32, i32
  }
  func.func @transform_14(%arg0: i32) -> (i32, i32) {
    %c0_i32 = arith.constant 0 : i32
    %c0_i32_0 = arith.constant 0 : i32
    %c0_i32_1 = arith.constant 0 : i32
    return %c0_i32, %c0_i32_0 : i32, i32
  }
  func.func @transform_15(%arg0: i32) -> (i32, i32) {
    %c0_i32 = arith.constant 0 : i32
    %c0_i32_0 = arith.constant 0 : i32
    %c0_i32_1 = arith.constant 0 : i32
    return %c0_i32, %c0_i32_0 : i32, i32
  }
  func.func @transform_16(%arg0: i32) -> (i32, i32) {
    %c0_i32 = arith.constant 0 : i32
    %c0_i32_0 = arith.constant 0 : i32
    %c0_i32_1 = arith.constant 0 : i32
    return %c0_i32, %c0_i32_0 : i32, i32
  }
  func.func @transform_17(%arg0: i32) -> (i32, i32) {
    %c0_i32 = arith.constant 0 : i32
    %c0_i32_0 = arith.constant 0 : i32
    %c0_i32_1 = arith.constant 0 : i32
    return %c0_i32, %c0_i32_0 : i32, i32
  }
  func.func @transform_18(%arg0: i32) -> (i32, i32) {
    %c0_i32 = arith.constant 0 : i32
    %c0_i32_0 = arith.constant 0 : i32
    %c0_i32_1 = arith.constant 0 : i32
    return %c0_i32, %c0_i32_0 : i32, i32
  }
  func.func @transform_19(%arg0: i32) -> (i32, i32) {
    %c0_i32 = arith.constant 0 : i32
    %c0_i32_0 = arith.constant 0 : i32
    %c0_i32_1 = arith.constant 0 : i32
    return %c0_i32, %c0_i32_0 : i32, i32
  }
  func.func @transform_20(%arg0: i32) -> (i32, i32) {
    %c0_i32 = arith.constant 0 : i32
    %c0_i32_0 = arith.constant 0 : i32
    %c0_i32_1 = arith.constant 0 : i32
    return %c0_i32, %c0_i32_0 : i32, i32
  }
  func.func @transform_21(%arg0: i32) -> (i32, i32) {
    %c0_i32 = arith.constant 0 : i32
    %c0_i32_0 = arith.constant 0 : i32
    %c0_i32_1 = arith.constant 0 : i32
    return %c0_i32, %c0_i32_0 : i32, i32
  }
  func.func @transform_22(%arg0: i32) -> (i32, i32) {
    %c0_i32 = arith.constant 0 : i32
    %c0_i32_0 = arith.constant 0 : i32
    %c0_i32_1 = arith.constant 0 : i32
    return %c0_i32, %c0_i32_0 : i32, i32
  }
  func.func @transform_23(%arg0: i32) -> (i32, i32) {
    %c0_i32 = arith.constant 0 : i32
    %c0_i32_0 = arith.constant 0 : i32
    %c0_i32_1 = arith.constant 0 : i32
    return %c0_i32, %c0_i32_0 : i32, i32
  }
  func.func @transform_24(%arg0: i32) -> (i32, i32) {
    %c0_i32 = arith.constant 0 : i32
    %c0_i32_0 = arith.constant 0 : i32
    %c0_i32_1 = arith.constant 0 : i32
    return %c0_i32, %c0_i32_0 : i32, i32
  }
  func.func @transform_25(%arg0: i32) -> (i32, i32) {
    %c0_i32 = arith.constant 0 : i32
    %c0_i32_0 = arith.constant 0 : i32
    %c0_i32_1 = arith.constant 0 : i32
    return %c0_i32, %c0_i32_0 : i32, i32
  }
  func.func @transform_26(%arg0: i32) -> (i32, i32, i32) {
    %c0_i32 = arith.constant 0 : i32
    %c0_i32_0 = arith.constant 0 : i32
    %c0_i32_1 = arith.constant 0 : i32
    return %arg0, %c0_i32, %c0_i32_0 : i32, i32, i32
  }
}

</mosaic_0001>

<bundles_post_ra>
// kernel: df_block_forward.1
= control target key start
LH: loop header
LB: loop body
LE: loop exit
PB: predicated region body
PF: predicated region fallthrough
CT: control target
= control target key end

     0   :  { %s4498_s27 = smov 0   ;;  %s5448_s0 = inlined_call_operand.vmem [shape: f32[2,4,256], index: 0, kind: input, shape index: {}]   ;;  %s5449_s1 = inlined_call_operand.vmem [shape: f32[1,324], index: 1, kind: input, shape index: {}]   ;;  %s5450_s2 = inlined_call_operand.vmem [shape: f32[4,72], index: 2, kind: input, shape index: {}]   ;;  %s5451_s3 = inlined_call_operand.vmem [shape: f32[4,1], index: 3, kind: input, shape index: {}]   ;;  %s5452_s4 = inlined_call_operand.vmem [shape: f32[4,72], index: 4, kind: input, shape index: {}]   ;;  %s5453_s5 = inlined_call_operand.vmem [shape: f32[4,1], index: 5, kind: input, shape index: {}]   ;;  %s5454_s6 = inlined_call_operand.vmem [shape: f32[4,72], index: 6, kind: input, shape index: {}]   ;;  %s5455_s7 = inlined_call_operand.vmem [shape: f32[4,1], index: 7, kind: input, shape index: {}]   ;;  %s5456_s8 = inlined_call_operand.vmem [shape: f32[4,72], index: 8, kind: input, shape index: {}]   ;;  %s5457_s9 = inlined_call_operand.vmem [shape: f32[4,1], index: 9, kind: input, shape index: {}]   ;;  %s5458_s10 = inlined_call_operand.vmem [shape: f32[4,72], index: 10, kind: input, shape index: {}]   ;;  %s5459_s11 = inlined_call_operand.vmem [shape: f32[4,1], index: 11, kind: input, shape index: {}]   ;;  %s5460_s12 = inlined_call_operand.vmem [shape: f32[4,72], index: 12, kind: input, shape index: {}]   ;;  %s5461_s13 = inlined_call_operand.vmem [shape: f32[4,1], index: 13, kind: input, shape index: {}]   ;;  %s5462_s14 = inlined_call_operand.vmem [shape: f32[4,72], index: 14, kind: input, shape index: {}]   ;;  %s5463_s15 = inlined_call_operand.vmem [shape: f32[4,1], index: 15, kind: input, shape index: {}]   ;;  %s5464_s16 = inlined_call_operand.vmem [shape: f32[4,72], index: 16, kind: input, shape index: {}]   ;;  %s5465_s17 = inlined_call_operand.vmem [shape: f32[4,1], index: 17, kind: input, shape index: {}]   ;;  %s5466_s18 = inlined_call_operand.vmem [shape: f32[8,8], index: 18, kind: input, shape index: {}]   ;;  %s5467_s19 = inlined_call_operand.vmem [shape: f32[8,1], index: 19, kind: input, shape index: {}]   ;;  %s5468_s20 = inlined_call_operand.vmem [shape: f32[8,8], index: 20, kind: input, shape index: {}]   ;;  %s5469_s21 = inlined_call_operand.vmem [shape: f32[8,1], index: 21, kind: input, shape index: {}]   ;;  %s5470_s22 = inlined_call_operand.vmem [shape: f32[4,72], index: 22, kind: input, shape index: {}]   ;;  %s5471_s23 = inlined_call_operand.vmem [shape: f32[4,1], index: 23, kind: input, shape index: {}]   ;;  %s5472_s24 = inlined_call_operand.vmem [shape: f32[4,72], index: 24, kind: input, shape index: {}]   ;;  %s5473_s25 = inlined_call_operand.vmem [shape: f32[4,1], index: 25, kind: input, shape index: {}]   ;;  %s5474_s26 = inlined_call_operand.vmem [shape: f32[2,4,324], index: 26, kind: output, shape index: {}]  }
   0x1   :  { %5485 = sst [smem:[#allocation4_spill]] %s5448_s0 }
   0x2   :  { %5486 = sst [smem:[#allocation5_spill]] %s5449_s1 }
   0x3   :  { %5487 = sst [smem:[#allocation6_spill]] %s5450_s2 }
   0x4   :  { %5488 = sst [smem:[#allocation7_spill]] %s5451_s3 }
   0x5   :  { %5489 = sst [smem:[#allocation8_spill]] %s5452_s4 }
   0x6   :  { %5490 = sst [smem:[#allocation9_spill]] %s5453_s5 }
   0x7   :  { %5491 = sst [smem:[#allocation10_spill]] %s5454_s6 }
   0x8   :  { %5492 = sst [smem:[#allocation11_spill]] %s5455_s7 }
   0x9   :  { %5493 = sst [smem:[#allocation12_spill]] %s5456_s8 }
   0xa   :  { %5494 = sst [smem:[#allocation13_spill]] %s5457_s9 }
   0xb   :  { %5495 = sst [smem:[#allocation14_spill]] %s5458_s10 }
   0xc LB: > { %s3929_s3 = sadd.s32 4294967295, %s4333_s27   ;;  %p3933_p0 = scmp.ge.s32.totalorder %s4333_s27, 1  ;;  %s4333_s27 = sphi %s4498_s27, %s36_s27  }
   0xd   : > { %p712_p1 = scmp.lt.s32.totalorder %s4333_s27, 3 }
   0xf   : > { %p713_p2 = pnand %p3933_p0, %p712_p1 }
  0x10   : > { %p782_p3 = scmp.lt.s32.totalorder (!%p713_p2), %s3929_s3, 1  ;;  %s5496_s4 = sld [smem:[#allocation4_spill]] (!%p713_p2) }
  0x11   : > { %716 = sbr.rel (%p713_p2) target bundleno = 3044 (0xbe4), region = 124  ;;  %s4336_s0 = smov (!%p713_p2), 52  }
  0x12   : > { %s4337_s9 = smov (!%p713_p2), 48   ;;  %s4338_s30 = smov (!%p713_p2), 54  }
  0x13   : > { %s4339_s2 = smov (!%p713_p2), 50   ;;  %s4340_s5 = smov (!%p713_p2), 56  }
  0x14   : > { %s4341_s10 = smov (!%p713_p2), 38   ;;  %s4342_s6 = smov (!%p713_p2), 40  }
  0x15   : > { %s4343_s1 = smov (!%p713_p2), 62   ;;  %s4345_s28 = smov (!%p713_p2), 58  }
  0x16   : > { %v4335_v0 = vmov 0.0   ;;  %s5513_s3 = smov (!%p782_p3, %s3929_s3), 1  ;;  %vm795_vm0 = vcmask 867328   ;;  %s4346_s8 = smov 60   ;;  %vm837_vm1 = vcmask 125952   ;;  %vm844_vm2 = vcmask 273552  }
  0x17   : > { %794 = vst [vmem:[#allocation2 + $0x8] sm:$0xff] %v4335_v0  ;;  %793 = vst [vmem:[#allocation2] sm:$0xff] %v4335_v0  ;;  %4068 = vmatprep.subr.mxu1 %v4335_v0  ;;  %1192 = vmatprep.mubr.f32.mxu0 %v4335_v0  ;;  %s3963_s7 = sshll.u32 %s5513_s3, 3  ;;  %vm851_vm3 = vcmask 421152   ;;  %vm858_vm4 = vcmask 568752   ;;  %vm865_vm5 = vcmask 716352  }
  0x18   : > { %s4516_s29 = scalar_lea.vmem %s5496_s4, %s3963_s7  ;;  %796 = vst.msk [vmem:[#allocation2 + $0x10] sm:$0xff] %vm795_vm0, %v4335_v0  ;;  %s4344_s7 = smov 64   ;;  %vm802_vm6 = vcmask 437552   ;;  %vm809_vm7 = vcmask 585152   ;;  %vm888_vm8 = vcmask 109568   ;;  %vm895_vm9 = vcmask 257152  }
  0x19   : > { %v846_v1 = vld [vmem:[%s4516_s29] sm:$0xf]  ;;  %v853_v3 = vld [vmem:[%s4516_s29 + $0x4] sm:$0xf]  ;;  %s4347_s4 = smov 42   ;;  %vm872_vm10 = vcmask 863952  }
  0x1a   : > { %v832_v2 = vld [vmem:[%s4516_s29] sm:$0xf]  ;;  %848 = vrot.lane.b32.xlu1 %v846_v1, %s4336_s0  ;;  %v860_v5 = vld [vmem:[%s4516_s29 + $0x4] sm:$0xf]  ;;  %s4348_s0 = smov 66   ;;  %vm879_vm11 = vcmask 1011552  }
  0x1b   : > { %834 = vrot.lane.b32.xlu0 %v832_v2, %s4337_s9  ;;  %v839_v4 = vld [vmem:[%s4516_s29] sm:$0xf]  ;;  %v881_v8 = vld [vmem:[%s4516_s29 + $0x4] sm:$0xf]  ;;  %s4349_s9 = smov 44   ;;  %vm816_vm12 = vcmask 732752  }
  0x1c   : > { %v797_v6 = vld [vmem:[%s4516_s29] sm:$0xf]  ;;  %v890_v9 = vld [vmem:[%s4516_s29 + $0x4] sm:$0xf]  ;;  %vm886_vm13 = vcmask 1044464   ;;  %vm902_vm14 = vcmask 404752  }
  0x1d   : > { %v804_v7 = vld [vmem:[%s4516_s29] sm:$0xf]  ;;  %v867_v10 = vld [vmem:[%s4516_s29 + $0x4] sm:$0xf]  ;;  %vm823_vm15 = vcmask 880352   ;;  %vm909_vm0 = vcmask 552352  }
  0x1e   : > { %855 = vrot.lane.b32.xlu1 %v853_v3, %s4338_s30  ;;  %v874_v11 = vld [vmem:[%s4516_s29 + $0x4] sm:$0xf]  ;;  %v811_v12 = vld [vmem:[%s4516_s29] sm:$0xf]  ;;  %s4350_s30 = smov 68   ;;  %v4361_v38 = vmov 0  }
  0x1f   : > { %841 = vrot.lane.b32.xlu0 %v839_v4, %s4339_s2  ;;  %v897_v13 = vld [vmem:[%s4516_s29 + $0x4] sm:$0xf]  ;;  %v818_v14 = vld [vmem:[%s4516_s29] sm:$0xf]  ;;  %s4351_s2 = smov 46   ;;  %4326 = vset.pattern.permute.xlu1 %v4361_v38 }
  0x20   : > { %v904_v15 = vld [vmem:[%s4516_s29 + $0x4] sm:$0xf]  ;;  %v825_v16 = vld [vmem:[%s4516_s29] sm:$0xf]  ;;  %s4352_s29 = smov 90   ;;  %4325 = vset.pattern.permute.xlu0 %v4361_v38 }
  0x22   : > { %862 = vrot.lane.b32.xlu1 %v860_v5, %s4340_s5  ;;  %s4353_s5 = smov 91  }
  0x23   : > { %799 = vrot.lane.b32.xlu0 %v797_v6, %s4341_s10  ;;  %s4354_s10 = smov 92  }
  0x26   : > { %806 = vrot.lane.b32.xlu1 %v804_v7, %s4342_s6  ;;  %s5483_s6 = smov 108  }
  0x27   : > { %883 = vrot.lane.b32.xlu0 %v881_v8, %s4343_s1  ;;  %s5477_s1 = smov 109  }
  0x2a   : > { %892 = vrot.lane.b32.xlu1 %v890_v9, %s4344_s7  ;;  %s5479_s7 = smov 110  }
  0x2b   : > { %869 = vrot.lane.b32.xlu0 %v867_v10, %s4345_s28  ;;  %s5475_s28 = smov 126  }
  0x2e   : > { %876 = vrot.lane.b32.xlu1 %v874_v11, %s4346_s8  ;;  %s5481_s8 = smov 127  }
  0x2f   : > { %813 = vrot.lane.b32.xlu0 %v811_v12, %s4347_s4  ;;  %s5503_s4 = sld [smem:[#allocation13_spill]] }
  0x32   : > { %820 = vrot.lane.b32.xlu1 %v818_v14, %s4349_s9  ;;  %s5497_s9 = sld [smem:[#allocation7_spill]] }
  0x33   : > { %899 = vrot.lane.b32.xlu0 %v897_v13, %s4348_s0  ;;  %s5499_s0 = sld [smem:[#allocation6_spill]] }
  0x36   : > { %827 = vrot.lane.b32.xlu1 %v825_v16, %s4351_s2  ;;  %s5500_s2 = sld [smem:[#allocation8_spill]] }
  0x37   : > { %906 = vrot.lane.b32.xlu0 %v904_v15, %s4350_s30  ;;  %s5502_s30 = smov 126  }
  0x38   : > { %v1118_v36 = vld [vmem:[%s5497_s9] sm:$0xf]  ;;  %s4362_s9 = smov 19  }
  0x8c   : > { %v849_v17 = vpop.permute.xlu1 %848 }
  0x8d   : > { %v835_v18 = vpop.permute.xlu0 %834 }
  0x8e   : > { %838 = vst.msk [vmem:[#allocation2 + $0x8] sm:$0xf] %vm837_vm1, %v835_v18  ;;  %vm830_vm1 = vcmask 1027952  }
  0x90   : > { %v856_v19 = vpop.permute.xlu1 %855 }
  0x91   : > { %v842_v20 = vpop.permute.xlu0 %841 }
  0x92   : > { %845 = vst.msk [vmem:[#allocation2 + $0x8] sm:$0xf] %vm844_vm2, %v842_v20  ;;  %vm919_vm2 = vcmask 556032  }
  0x93   : > { %852 = vst.msk [vmem:[#allocation2 + $0x8] sm:$0xf] %vm851_vm3, %v849_v17  ;;  %vm4360_vm3 = vmmov 0  }
  0x94   : > { %859 = vst.msk [vmem:[#allocation2 + $0x8] sm:$0xf] %vm858_vm4, %v856_v19  ;;  %v863_v21 = vpop.permute.xlu1 %862  ;;  %4086 = vmatprep.mubr.msk.f32.mxu1 %vm4360_vm3, %v4335_v0  ;;  %vm1080_vm4 = vcmask 736256  }
  0x95   : > { %v800_v22 = vpop.permute.xlu0 %799  ;;  %866 = vst.msk [vmem:[#allocation2 + $0x8] sm:$0xf] %vm865_vm5, %v863_v21  ;;  %vm1059_vm5 = vcmask 744448  }
  0x96   : > { %803 = vst.msk [vmem:[#allocation2] sm:$0xf] %vm802_vm6, %v800_v22  ;;  %vm1038_vm6 = vcmask 752640  }
  0x98   : > { %v807_v23 = vpop.permute.xlu1 %806 }
  0x99   : > { %v884_v24 = vpop.permute.xlu0 %883  ;;  %810 = vst.msk [vmem:[#allocation2] sm:$0xf] %vm809_vm7, %v807_v23  ;;  %vm1017_vm7 = vcmask 883712   ;;  %v1116_v23 = vld [vmem:[%s5499_s0] sm:$0xf]  ;;  %s5501_s0 = sld [smem:[#allocation5_spill]] }
  0x9a   : > { %889 = vst.msk [vmem:[#allocation2 + $0x10] sm:$0xf] %vm888_vm8, %v884_v24  ;;  %vm996_vm8 = vcmask 891904  }
  0x9c   : > { %v893_v25 = vpop.permute.xlu1 %892 }
  0x9d   : > { %v870_v26 = vpop.permute.xlu0 %869  ;;  %896 = vst.msk [vmem:[#allocation2 + $0x10] sm:$0xf] %vm895_vm9, %v893_v25  ;;  %vm975_vm9 = vcmask 900096  }
  0x9e   : > { %873 = vst.msk [vmem:[#allocation2 + $0x8] sm:$0xf] %vm872_vm10, %v870_v26  ;;  %vm954_vm10 = vcmask 1031168   ;;  %v1117_v26 = vld [vmem:[%s5500_s2] sm:$0xf]  ;;  %s5505_s2 = sld [smem:[#allocation10_spill]] }
  0xa0   : > { %v877_v27 = vpop.permute.xlu1 %876 }
  0xa1   : > { %v814_v28 = vpop.permute.xlu0 %813  ;;  %880 = vst.msk [vmem:[#allocation2 + $0x8] sm:$0xf] %vm879_vm11, %v877_v27  ;;  %vm933_vm11 = vcmask 1039360  }
  0xa2   : > { %817 = vst.msk [vmem:[#allocation2] sm:$0xf] %vm816_vm12, %v814_v28  ;;  %vm1124_vm12 = vcmask 588800  }
  0xa3   : > { %887 = vst.msk [vmem:[#allocation2 + $0x8] sm:$0xf] %vm886_vm13, %v884_v24  ;;  %vm1456_vm13 = vcmask 1043608  }
  0xa4   : > { %v821_v30 = vpop.permute.xlu1 %820 }
  0xa5   : > { %v900_v29 = vpop.permute.xlu0 %899  ;;  %824 = vst.msk [vmem:[#allocation2] sm:$0xf] %vm823_vm15, %v821_v30  ;;  %vm1459_vm15 = vcmask 707584  }
  0xa6   : > { %903 = vst.msk [vmem:[#allocation2 + $0x10] sm:$0xf] %vm902_vm14, %v900_v29  ;;  %v1423_v29 = vlaneseq  ;;  %vm1450_vm14 = vcmask 154624  }
  0xa8   : > { %v828_v32 = vpop.permute.xlu1 %827  ;;  %v1424_v30 = vshrl.u32 %v1423_v29, 7 }
  0xa9   : > { %v907_v31 = vpop.permute.xlu0 %906  ;;  %831 = vst.msk [vmem:[#allocation2] sm:$0xf] %vm830_vm1, %v828_v32  ;;  %vm3361_vm1 = vcmask 1047704  }
  0xaa   : > { %910 = vst.msk [vmem:[#allocation2 + $0x10] sm:$0xf] %vm909_vm0, %v907_v31  ;;  %v4559_v35 = vld [vmem:[#allocation2 + $0x8] sm:$0xff]  ;;  %vm3046_vm0 = vcmask 64512  }
  0xb0   : > { %v4542_v34 = vld [vmem:[#allocation2] sm:$0xff] }
  0xb1   : > { %v916_v33 = vld [vmem:[#allocation2 + $0x10] sm:$0xff] }
  0xb2   : > { %1078 = vrot.lane.b32.xlu1 %v916_v33, %s4352_s29  ;;  %1057 = vrot.lane.b32.xlu0 %v916_v33, %s4353_s5  ;;  %920 = vst.msk [vmem:[#allocation3 + $0x10] sm:$0xff] %vm919_vm2, %v916_v33 }
  0xb6   : > { %1036 = vrot.lane.b32.xlu1 %v916_v33, %s4354_s10  ;;  %1015 = vrot.lane.b32.xlu0 %v916_v33, %s5483_s6 }
  0xb9   : > { %v1091_v25 = vld [vmem:[#allocation3 + $0x10] sm:$0xff] }
  0xba   : > { %994 = vrot.lane.b32.xlu1 %v916_v33, %s5477_s1  ;;  %973 = vrot.lane.b32.xlu0 %v916_v33, %s5479_s7 }
  0xbe   : > { %1074 = vrot.lane.b32.xlu0 %v4542_v34, %s4352_s29  ;;  %952 = vrot.lane.b32.xlu1 %v916_v33, %s5475_s28 }
  0xc2   : > { %1032 = vrot.lane.b32.xlu0 %v4542_v34, %s4354_s10  ;;  %1053 = vrot.lane.b32.xlu1 %v4542_v34, %s4353_s5 }
  0xc6   : > { %990 = vrot.lane.b32.xlu0 %v4542_v34, %s5477_s1  ;;  %1011 = vrot.lane.b32.xlu1 %v4542_v34, %s5483_s6 }
  0xca   : > { %948 = vrot.lane.b32.xlu0 %v4542_v34, %s5475_s28  ;;  %969 = vrot.lane.b32.xlu1 %v4542_v34, %s5479_s7 }
  0xce   : > { %1076 = vrot.lane.b32.xlu0 %v4559_v35, %s4352_s29  ;;  %1055 = vrot.lane.b32.xlu1 %v4559_v35, %s4353_s5 }
  0xd2   : > { %1034 = vrot.lane.b32.xlu0 %v4559_v35, %s4354_s10  ;;  %1013 = vrot.lane.b32.xlu1 %v4559_v35, %s5483_s6 }
  0xd6   : > { %992 = vrot.lane.b32.xlu0 %v4559_v35, %s5477_s1  ;;  %971 = vrot.lane.b32.xlu1 %v4559_v35, %s5479_s7 }
  0xda   : > { %950 = vrot.lane.b32.xlu0 %v4559_v35, %s5475_s28  ;;  %929 = vrot.lane.b32.xlu1 %v4559_v35, %s5481_s8  ;;  %s5498_s28 = sld [smem:[#allocation9_spill]] }
  0xde   : > { %927 = vrot.lane.b32.xlu1 %v4542_v34, %s5481_s8  ;;  %931 = vrot.lane.b32.xlu0 %v916_v33, %s5481_s8  ;;  %v1425_v33 = vsub.s32 0, %v1424_v30 }
  0xe0   : > { %v1269_v37 = vld [vmem:[%s5498_s28] sm:$0xf] }
  0xe2   : > { %1121 = vperm.xlu0 %4325, %v1118_v36   ;;  %1272 = vperm.xlu1 %4326, %v1269_v37   ;;  %v792_v36 = vld [vmem:[%s5501_s0] sm:$0x7]  ;;  %v1429_v37 = vsub.s32 1, %v1424_v30  ;;  %s5506_s0 = sld [smem:[#allocation12_spill]] }
 0x124   : > { %v1079_v39 = vpop.permute.xlu1 %1078  ;;  %v1058_v40 = vpop.permute.xlu0 %1057 }
 0x125   : > { %1088 = vst.msk [vmem:[#allocation3 + $0xd0] sm:$0xff] %vm919_vm2, %v1079_v39  ;;  %1067 = vst.msk [vmem:[#allocation3 + $0xb8] sm:$0xff] %vm919_vm2, %v1058_v40 }
 0x128   : > { %v1037_v41 = vpop.permute.xlu1 %1036  ;;  %v1016_v42 = vpop.permute.xlu0 %1015 }
 0x129   : > { %1046 = vst.msk [vmem:[#allocation3 + $0xa0] sm:$0xff] %vm919_vm2, %v1037_v41  ;;  %1025 = vst.msk [vmem:[#allocation3 + $0x88] sm:$0xff] %vm919_vm2, %v1016_v42 }
 0x12c   : > { %v4592_v43 = vpop.permute.xlu1 %994  ;;  %v4594_v44 = vpop.permute.xlu0 %973  ;;  %v4596_v45 = vld [vmem:[#allocation3 + $0xd0] sm:$0xff]  ;;  %v4604_v46 = vld [vmem:[#allocation3 + $0xb8] sm:$0xff] }
 0x12d   : > { %1004 = vst.msk [vmem:[#allocation3 + $0x70] sm:$0xff] %vm919_vm2, %v4592_v43  ;;  %983 = vst.msk [vmem:[#allocation3 + $0x58] sm:$0xff] %vm919_vm2, %v4594_v44  ;;  %4069 = vmatpush3.msra.mxu1 %v4596_v45 }
 0x12e   : > { %4070 = vmatprep.subr.mxu1 %v4335_v0 }
 0x12f   : > { %4071 = vmatpush3.msra.mxu1 %v4604_v46 }
 0x130   : > { %4072 = vmatprep.subr.mxu1 %v4335_v0  ;;  %v1075_v47 = vpop.permute.xlu0 %1074  ;;  %v4608_v48 = vpop.permute.xlu1 %952  ;;  %v4610_v49 = vld [vmem:[#allocation3 + $0xa0] sm:$0xff]  ;;  %v4616_v50 = vld [vmem:[#allocation3 + $0x88] sm:$0xff] }
 0x131   : > { %962 = vst.msk [vmem:[#allocation3 + $0x40] sm:$0xff] %vm919_vm2, %v4608_v48  ;;  %4073 = vmatpush3.msra.mxu1 %v4610_v49 }
 0x132   : > { %4074 = vmatprep.subr.mxu1 %v4335_v0 }
 0x133   : > { %4075 = vmatpush3.msra.mxu1 %v4616_v50 }
 0x134   : > { %4076 = vmatprep.subr.mxu1 %v4335_v0  ;;  %v1033_v51 = vpop.permute.xlu0 %1032  ;;  %v1054_v52 = vpop.permute.xlu1 %1053  ;;  %v4620_v53 = vld [vmem:[#allocation3 + $0x70] sm:$0xff]  ;;  %v4624_v54 = vld [vmem:[#allocation3 + $0x58] sm:$0xff] }
 0x135   : > { %4077 = vmatpush3.msra.mxu1 %v4620_v53 }
 0x136   : > { %4078 = vmatprep.subr.mxu1 %v4335_v0 }
 0x137   : > { %4079 = vmatpush3.msra.mxu1 %v4624_v54 }
 0x138   : > { %4080 = vmatprep.subr.mxu1 %v4335_v0  ;;  %v991_v55 = vpop.permute.xlu0 %990  ;;  %v1012_v56 = vpop.permute.xlu1 %1011  ;;  %v4628_v57 = vld [vmem:[#allocation3 + $0x40] sm:$0xff] }
 0x139   : > { %4081 = vmatpush3.msra.mxu1 %v4628_v57 }
 0x13a   : > { %4082 = vmatprep.subr.mxu1 %v4335_v0 }
 0x13c   : > { %v949_v58 = vpop.permute.xlu0 %948  ;;  %v970_v59 = vpop.permute.xlu1 %969 }
 0x140   : > { %v1077_v60 = vpop.permute.xlu0 %1076  ;;  %v1056_v61 = vpop.permute.xlu1 %1055 }
 0x141   : > { %v1081_v62 = vsel %vm1080_vm4, %v1075_v47, %v1077_v60  ;;  %v1082_v63 = vsel %vm1080_vm4, %v1077_v60, %v1079_v39  ;;  %v1061_v1 = vsel %vm1059_vm5, %v1056_v61, %v1058_v40  ;;  %v1060_v2 = vsel %vm1059_vm5, %v1054_v52, %v1056_v61  ;;  %v4708_v61 = vld [vmem:[#allocation2 + $0x8] sm:$0xf] }
 0x142   : > { %1142 = vmatprep.subr.mxu0 %v1082_v63  ;;  %v1433_v39 = vsub.s32 2, %v1424_v30  ;;  %v4695_v47 = vrot.slane %v792_v36, %v1429_v37 }
 0x143   : > { %1143 = vmatpush1.msra.mxu0 %v1081_v62 }
 0x144   : > { %v1035_v3 = vpop.permute.xlu0 %1034  ;;  %v1014_v4 = vpop.permute.xlu1 %1013  ;;  %1144 = vmatprep.subr.mxu0 %v1061_v1 }
 0x145   : > { %v1039_v5 = vsel %vm1038_vm6, %v1033_v51, %v1035_v3  ;;  %v1040_v6 = vsel %vm1038_vm6, %v1035_v3, %v1037_v41  ;;  %1145 = vmatpush1.msra.mxu0 %v1060_v2  ;;  %v1019_v7 = vsel %vm1017_vm7, %v1014_v4, %v1016_v42  ;;  %v1018_v8 = vsel %vm1017_vm7, %v1012_v56, %v1014_v4 }
 0x146   : > { %1146 = vmatprep.subr.mxu0 %v1040_v6  ;;  %v4693_v42 = vrot.slane %v792_v36, %v1425_v33 }
 0x147   : > { %1147 = vmatpush1.msra.mxu0 %v1039_v5 }
 0x148   : > { %v993_v9 = vpop.permute.xlu0 %992  ;;  %v972_v10 = vpop.permute.xlu1 %971  ;;  %1148 = vmatprep.subr.mxu0 %v1019_v7 }
 0x149   : > { %v997_v11 = vsel %vm996_vm8, %v991_v55, %v993_v9  ;;  %v998_v12 = vsel %vm996_vm8, %v993_v9, %v4592_v43  ;;  %1149 = vmatpush1.msra.mxu0 %v1018_v8  ;;  %v977_v13 = vsel %vm975_vm9, %v972_v10, %v4594_v44  ;;  %v976_v14 = vsel %vm975_vm9, %v970_v59, %v972_v10 }
 0x14a   : > { %1150 = vmatprep.subr.mxu0 %v998_v12 }
 0x14b   : > { %1151 = vmatpush1.msra.mxu0 %v997_v11 }
 0x14c   : > { %v951_v15 = vpop.permute.xlu0 %950  ;;  %v930_v16 = vpop.permute.xlu1 %929  ;;  %1152 = vmatprep.subr.mxu0 %v977_v13 }
 0x14d   : > { %v955_v17 = vsel %vm954_vm10, %v949_v58, %v951_v15  ;;  %v956_v18 = vsel %vm954_vm10, %v951_v15, %v4608_v48  ;;  %1153 = vmatpush1.msra.mxu0 %v976_v14  ;;  %v4705_v58 = vld [vmem:[#allocation2] sm:$0xf] }
 0x14e   : > { %1154 = vmatprep.subr.mxu0 %v956_v18 }
 0x14f   : > { %1155 = vmatpush1.msra.mxu0 %v955_v17 }
 0x150   : > { %v928_v19 = vpop.permute.xlu1 %927  ;;  %v932_v20 = vpop.permute.xlu0 %931 }
 0x151   : > { %v934_v21 = vsel %vm933_vm11, %v928_v19, %v930_v16  ;;  %v935_v22 = vsel %vm933_vm11, %v930_v16, %v932_v20  ;;  %941 = vst.msk [vmem:[#allocation3 + $0x28] sm:$0xff] %vm919_vm2, %v932_v20 }
 0x152   : > { %1156 = vmatprep.subr.mxu0 %v935_v22 }
 0x153   : > { %1157 = vmatpush1.msra.mxu0 %v934_v21 }
 0x154   : > { %1158 = vmatprep.subr.mxu0 %v4559_v35 }
 0x155   : > { %1159 = vmatpush1.msra.mxu0 %v4542_v34 }
 0x156   : > { %3937 = vmatmul.mubr.msk.f32.vlgmr.msra.gmra.mxu0 %vm1124_vm12, %v1116_v23  ;;  %1292 = vmatprep.subr.mxu0 %v1082_v63 }
 0x157   : > { %1293 = vmatpush1.msra.mxu0 %v1081_v62  ;;  %1342 = vmatprep.mubr.f32.mxu0 %v4335_v0 }
 0x158   : > { %v1094_v24 = vld [vmem:[#allocation3 + $0x28] sm:$0xff]  ;;  %1294 = vmatprep.subr.mxu0 %v1061_v1  ;;  %v4711_v1 = vld [vmem:[#allocation2 + $0x10] sm:$0xf] }
 0x159   : > { %4083 = vmatpush3.msra.mxu1 %v1094_v24  ;;  %1295 = vmatpush1.msra.mxu0 %v1060_v2 }
 0x15a   : > { %4084 = vmatprep.subr.mxu1 %v4335_v0  ;;  %1296 = vmatprep.subr.mxu0 %v1040_v6  ;;  %v1806_v6 = vld [vmem:[%s5503_s4] sm:$0xf]  ;;  %s5509_s4 = sld [smem:[#allocation14_spill]] }
 0x15b   : > { %4085 = vmatpush3.msra.mxu1 %v1091_v25  ;;  %1297 = vmatpush1.msra.mxu0 %v1039_v5 }
 0x15c   : > { %4089 = vmatprep.subr.mxu1 %v4335_v0  ;;  %4087 = vmatmul.mubr.msk.f32.vlgmr.msra.gmra.mxu1 %vm1124_vm12, %v1116_v23 }
 0x15d   : > { %4090 = vmatpush3.msra.mxu1 %v4596_v45  ;;  %1298 = vmatprep.subr.mxu0 %v1019_v7  ;;  %v1122_v32 = vpop.permute.xlu0 %1121 }
 0x15e   : > { %4091 = vmatprep.subr.mxu1 %v4335_v0  ;;  %1299 = vmatpush1.msra.mxu0 %v1018_v8 }
 0x15f   : > { %4092 = vmatpush3.msra.mxu1 %v4604_v46  ;;  %1300 = vmatprep.subr.mxu0 %v998_v12 }
 0x160   : > { %4093 = vmatprep.subr.mxu1 %v4335_v0  ;;  %1301 = vmatpush1.msra.mxu0 %v997_v11 }
 0x161   : > { %4094 = vmatpush3.msra.mxu1 %v4610_v49  ;;  %1302 = vmatprep.subr.mxu0 %v977_v13  ;;  %v4697_v49 = vrot.slane %v792_v36, %v1433_v39 }
 0x162   : > { %4095 = vmatprep.subr.mxu1 %v4335_v0  ;;  %1303 = vmatpush1.msra.mxu0 %v976_v14 }
 0x163   : > { %4096 = vmatpush3.msra.mxu1 %v4616_v50  ;;  %1304 = vmatprep.subr.mxu0 %v956_v18 }
 0x164   : > { %4097 = vmatprep.subr.mxu1 %v4335_v0  ;;  %1305 = vmatpush1.msra.mxu0 %v955_v17 }
 0x165   : > { %4098 = vmatpush3.msra.mxu1 %v4620_v53  ;;  %1306 = vmatprep.subr.mxu0 %v935_v22 }
 0x166   : > { %4099 = vmatprep.subr.mxu1 %v4335_v0  ;;  %1307 = vmatpush1.msra.mxu0 %v934_v21 }
 0x167   : > { %4100 = vmatpush3.msra.mxu1 %v4624_v54  ;;  %4107 = vmatprep.mubr.msk.f32.mxu1 %vm4360_vm3, %v4335_v0 }
 0x168   : > { %4101 = vmatprep.subr.mxu1 %v4335_v0  ;;  %1308 = vmatprep.subr.mxu0 %v4559_v35  ;;  %v1273_v35 = vpop.permute.xlu1 %1272 }
 0x169   : > { %4102 = vmatpush3.msra.mxu1 %v4628_v57  ;;  %1309 = vmatpush1.msra.mxu0 %v4542_v34 }
 0x16a   : > { %4103 = vmatprep.subr.mxu1 %v4335_v0  ;;  %3939 = vmatmul.mubr.msk.f32.vlgmr.msra.gmra.mxu0 %vm1124_vm12, %v1117_v26 }
 0x16b   : > { %4104 = vmatpush3.msra.mxu1 %v1094_v24  ;;  %1729 = vmatprep.mubr.f32.mxu0 %v4335_v0 }
 0x16c   : > { %4105 = vmatprep.subr.mxu1 %v4335_v0 }
 0x16d   : > { %4106 = vmatpush3.msra.mxu1 %v1091_v25 }
 0x16e   : > { %4108 = vmatmul.mubr.msk.f32.vlgmr.msra.gmra.mxu1 %vm1124_vm12, %v1117_v26  ;;  %4110 = vmatprep.subr.mxu1 %v4335_v0 }
 0x16f   : > { %4128 = vmatprep.mubr.msk.f32.mxu1 %vm4360_vm3, %v4335_v0 }
 0x216   : > { %v1194_v31 = vpop.f32.mrf.mxu0 }
 0x217   : > { %v1195_v40 = vadd.f32 %v1194_v31, %v1122_v32 }
 0x218   : > { %v1196_v34 = vpop.f32.mrf.mxu0 }
 0x219   : > { %v1197_v44 = vadd.f32 %v1196_v34, %v1122_v32 }
 0x21c   : > { %v1265_v27 = vpop.f32.mrf.mxu1 }
 0x21d   : > { %v1266_v50 = vadd.f32 %v1265_v27, %v1122_v32 }
 0x21e   : > { %v4088_v28 = vpop.f32.mrf.mxu1 }
 0x22a   : > { %v1344_v38 = vpop.f32.mrf.mxu0 }
 0x22b   : > { %v1345_v41 = vadd.f32 %v1344_v38, %v1273_v35 }
 0x22c   : > { %v1346_v43 = vpop.f32.mrf.mxu0 }
 0x22d   : > { %v1419_v45 = vmax.f32 %v1195_v40, %v1345_v41  ;;  %v1347_v46 = vadd.f32 %v1346_v43, %v1273_v35 }
 0x22e   : > { %v1415_v48 = vpop.f32.mrf.mxu1 }
 0x22f   : > { %v1416_v51 = vadd.f32 %v1415_v48, %v1273_v35  ;;  %v1420_v52 = vmax.f32 %v1197_v44, %v1347_v46  ;;  %v1438_v53 = vmul.f32 %v4693_v42, %v1419_v45 }
 0x230   : > { %v4109_v54 = vpop.f32.mrf.mxu1 }
 0x231   : > { %v1421_v55 = vmax.f32 %v1266_v50, %v1416_v51  ;;  %1444 = vrot.lane.b32.xlu1 %v1438_v53, %s4362_s9  ;;  %v1439_v56 = vmul.f32 %v4695_v47, %v1420_v52 }
 0x233   : > { %1446 = vrot.lane.b32.xlu0 %v1439_v56, %s4362_s9  ;;  %v1440_v57 = vmul.f32 %v4697_v49, %v1421_v55 }
 0x235   : > { %1448 = vrot.lane.b32.xlu1 %v1440_v57, %s4362_s9 }
 0x2a3   : > { %v1445_v59 = vpop.permute.xlu1 %1444 }
 0x2a4   : > { %1457 = vst.msk [vmem:[#allocation2] sm:$0xf] %vm1456_vm13, %v1445_v59 }
 0x2a5   : > { %v1447_v60 = vpop.permute.xlu0 %1446 }
 0x2a6   : > { %v1451_v62 = vsel %vm1450_vm14, %v1445_v59, %v1447_v60  ;;  %v1654_v59 = vld [vmem:[%s5505_s2] sm:$0xf]  ;;  %s4288_s2 = smul.u32 12, %s5513_s3 }
 0x2a7   : > { %1458 = vst [vmem:[#allocation2 + $0x8] sm:$0xf] %v1451_v62  ;;  %v1449_v63 = vpop.permute.xlu1 %1448 }
 0x2a8   : > { %v1452_v2 = vsel %vm1450_vm14, %v1447_v60, %v1449_v63  ;;  %v1655_v63 = vld [vmem:[%s5506_s0] sm:$0xf] }
 0x2a9   : > { %1460 = vst.msk [vmem:[#allocation2 + $0x10] sm:$0xf] %vm1459_vm15, %v1452_v2 }
 0x2ab   : > { %v4715_v3 = vld [vmem:[#allocation2] sm:$0xff] }
 0x2ac   : > { %1613 = vrot.lane.b32.xlu0 %v4715_v3, %s4352_s29  ;;  %1593 = vrot.lane.b32.xlu1 %v4715_v3, %s4353_s5 }
 0x2ae   : > { %v4733_v5 = vld [vmem:[#allocation2 + $0x8] sm:$0xff] }
 0x2b0   : > { %1573 = vrot.lane.b32.xlu0 %v4715_v3, %s4354_s10  ;;  %1553 = vrot.lane.b32.xlu1 %v4715_v3, %s5483_s6  ;;  %v1609_v4 = vld [vmem:[#allocation2 + $0x10] sm:$0xff] }
 0x2b1   : > { %1466 = vst.msk [vmem:[#allocation3 + $0x10] sm:$0xff] %vm919_vm2, %v1609_v4 }
 0x2b4   : > { %1533 = vrot.lane.b32.xlu0 %v4715_v3, %s5477_s1  ;;  %1513 = vrot.lane.b32.xlu1 %v4715_v3, %s5479_s7 }
 0x2b8   : > { %1493 = vrot.lane.b32.xlu0 %v4715_v3, %s5502_s30  ;;  %1617 = vrot.lane.b32.xlu1 %v1609_v4, %s4352_s29  ;;  %v1629_v62 = vld [vmem:[#allocation3 + $0x10] sm:$0xff] }
 0x2bc   : > { %1615 = vrot.lane.b32.xlu0 %v4733_v5, %s4352_s29  ;;  %1595 = vrot.lane.b32.xlu1 %v4733_v5, %s4353_s5 }
 0x2c0   : > { %1597 = vrot.lane.b32.xlu0 %v1609_v4, %s4353_s5  ;;  %1577 = vrot.lane.b32.xlu1 %v1609_v4, %s4354_s10 }
 0x2c4   : > { %1575 = vrot.lane.b32.xlu0 %v4733_v5, %s4354_s10  ;;  %1555 = vrot.lane.b32.xlu1 %v4733_v5, %s5483_s6 }
 0x2c8   : > { %1557 = vrot.lane.b32.xlu0 %v1609_v4, %s5483_s6  ;;  %1537 = vrot.lane.b32.xlu1 %v1609_v4, %s5477_s1 }
 0x2cc   : > { %1535 = vrot.lane.b32.xlu0 %v4733_v5, %s5477_s1  ;;  %1515 = vrot.lane.b32.xlu1 %v4733_v5, %s5479_s7  ;;  %s5507_s1 = smov 109  }
 0x2d0   : > { %1517 = vrot.lane.b32.xlu0 %v1609_v4, %s5479_s7  ;;  %1497 = vrot.lane.b32.xlu1 %v1609_v4, %s5502_s30  ;;  %s5504_s7 = sld [smem:[#allocation11_spill]] }
 0x2d4   : > { %1495 = vrot.lane.b32.xlu0 %v4733_v5, %s5502_s30  ;;  %1475 = vrot.lane.b32.xlu1 %v4733_v5, %s5481_s8 }
 0x2d6   : > { %v1656_v7 = vld [vmem:[%s5504_s7] sm:$0xf]  ;;  %s5508_s7 = smov 110  }
 0x2d8   : > { %1473 = vrot.lane.b32.xlu1 %v4715_v3, %s5481_s8  ;;  %1477 = vrot.lane.b32.xlu0 %v1609_v4, %s5481_s8 }
 0x2dc   : > { %1809 = vperm.xlu1 %4326, %v1806_v6   ;;  %1659 = vperm.xlu0 %4325, %v1656_v7  }
 0x31e   : > { %v1614_v8 = vpop.permute.xlu0 %1613  ;;  %v1594_v9 = vpop.permute.xlu1 %1593 }
 0x322   : > { %v1574_v10 = vpop.permute.xlu0 %1573  ;;  %v1554_v11 = vpop.permute.xlu1 %1553 }
 0x326   : > { %v1534_v12 = vpop.permute.xlu0 %1533  ;;  %v1514_v13 = vpop.permute.xlu1 %1513 }
 0x32a   : > { %v4766_v14 = vpop.permute.xlu0 %1493  ;;  %v1618_v15 = vpop.permute.xlu1 %1617 }
 0x32b   : > { %1626 = vst.msk [vmem:[#allocation3 + $0xd0] sm:$0xff] %vm919_vm2, %v1618_v15 }
 0x32e   : > { %v1616_v16 = vpop.permute.xlu0 %1615  ;;  %v1596_v17 = vpop.permute.xlu1 %1595 }
 0x32f   : > { %v4770_v18 = vsel %vm1080_vm4, %v1614_v8, %v1616_v16  ;;  %v4773_v19 = vsel %vm1080_vm4, %v1616_v16, %v1618_v15  ;;  %v4786_v24 = vsel %vm1059_vm5, %v1594_v9, %v1596_v17 }
 0x330   : > { %1679 = vmatprep.subr.mxu0 %v4773_v19 }
 0x331   : > { %1680 = vmatpush1.msra.mxu0 %v4770_v18 }
 0x332   : > { %v1598_v20 = vpop.permute.xlu0 %1597  ;;  %v1578_v21 = vpop.permute.xlu1 %1577  ;;  %v4777_v22 = vld [vmem:[#allocation3 + $0xd0] sm:$0xff] }
 0x333   : > { %v4780_v23 = vsel %vm1059_vm5, %v1596_v17, %v1598_v20  ;;  %1606 = vst.msk [vmem:[#allocation3 + $0xb8] sm:$0xff] %vm919_vm2, %v1598_v20  ;;  %1586 = vst.msk [vmem:[#allocation3 + $0xa0] sm:$0xff] %vm919_vm2, %v1578_v21  ;;  %4111 = vmatpush3.msra.mxu1 %v4777_v22 }
 0x334   : > { %4112 = vmatprep.subr.mxu1 %v4335_v0  ;;  %1681 = vmatprep.subr.mxu0 %v4780_v23 }
 0x335   : > { %1682 = vmatpush1.msra.mxu0 %v4786_v24 }
 0x336   : > { %v1576_v25 = vpop.permute.xlu0 %1575  ;;  %v1556_v26 = vpop.permute.xlu1 %1555 }
 0x337   : > { %v4792_v27 = vsel %vm1038_vm6, %v1574_v10, %v1576_v25  ;;  %v4795_v28 = vsel %vm1038_vm6, %v1576_v25, %v1578_v21  ;;  %v4808_v33 = vsel %vm1017_vm7, %v1554_v11, %v1556_v26 }
 0x338   : > { %1683 = vmatprep.subr.mxu0 %v4795_v28 }
 0x339   : > { %1684 = vmatpush1.msra.mxu0 %v4792_v27 }
 0x33a   : > { %v1558_v29 = vpop.permute.xlu0 %1557  ;;  %v1538_v30 = vpop.permute.xlu1 %1537  ;;  %v4799_v31 = vld [vmem:[#allocation3 + $0xb8] sm:$0xff]  ;;  %v4811_v34 = vld [vmem:[#allocation3 + $0xa0] sm:$0xff] }
 0x33b   : > { %v4802_v32 = vsel %vm1017_vm7, %v1556_v26, %v1558_v29  ;;  %1566 = vst.msk [vmem:[#allocation3 + $0x88] sm:$0xff] %vm919_vm2, %v1558_v29  ;;  %1546 = vst.msk [vmem:[#allocation3 + $0x70] sm:$0xff] %vm919_vm2, %v1538_v30  ;;  %4113 = vmatpush3.msra.mxu1 %v4799_v31 }
 0x33c   : > { %4114 = vmatprep.subr.mxu1 %v4335_v0  ;;  %1685 = vmatprep.subr.mxu0 %v4802_v32 }
 0x33d   : > { %4115 = vmatpush3.msra.mxu1 %v4811_v34  ;;  %1686 = vmatpush1.msra.mxu0 %v4808_v33 }
 0x33e   : > { %v1536_v35 = vpop.permute.xlu0 %1535  ;;  %v1516_v36 = vpop.permute.xlu1 %1515  ;;  %4116 = vmatprep.subr.mxu1 %v4335_v0 }
 0x33f   : > { %v1539_v37 = vsel %vm996_vm8, %v1534_v12, %v1536_v35  ;;  %v1540_v38 = vsel %vm996_vm8, %v1536_v35, %v1538_v30  ;;  %v1519_v44 = vsel %vm975_vm9, %v1514_v13, %v1516_v36 }
 0x340   : > { %1687 = vmatprep.subr.mxu0 %v1540_v38 }
 0x341   : > { %1688 = vmatpush1.msra.mxu0 %v1539_v37 }
 0x342   : > { %v1518_v39 = vpop.permute.xlu0 %1517  ;;  %v1498_v40 = vpop.permute.xlu1 %1497  ;;  %v1644_v41 = vld [vmem:[#allocation3 + $0x88] sm:$0xff]  ;;  %v1641_v45 = vld [vmem:[#allocation3 + $0x70] sm:$0xff] }
 0x343   : > { %v1520_v43 = vsel %vm975_vm9, %v1516_v36, %v1518_v39  ;;  %1526 = vst.msk [vmem:[#allocation3 + $0x58] sm:$0xff] %vm919_vm2, %v1518_v39  ;;  %1506 = vst.msk [vmem:[#allocation3 + $0x40] sm:$0xff] %vm919_vm2, %v1498_v40  ;;  %4117 = vmatpush3.msra.mxu1 %v1644_v41 }
 0x344   : > { %4118 = vmatprep.subr.mxu1 %v4335_v0  ;;  %1689 = vmatprep.subr.mxu0 %v1520_v43 }
 0x345   : > { %4119 = vmatpush3.msra.mxu1 %v1641_v45  ;;  %1690 = vmatpush1.msra.mxu0 %v1519_v44 }
 0x346   : > { %v1496_v46 = vpop.permute.xlu0 %1495  ;;  %v1476_v48 = vpop.permute.xlu1 %1475  ;;  %4120 = vmatprep.subr.mxu1 %v4335_v0 }
 0x347   : > { %v1499_v50 = vsel %vm954_vm10, %v4766_v14, %v1496_v46  ;;  %v1500_v51 = vsel %vm954_vm10, %v1496_v46, %v1498_v40 }
 0x348   : > { %1691 = vmatprep.subr.mxu0 %v1500_v51 }
 0x349   : > { %1692 = vmatpush1.msra.mxu0 %v1499_v50 }
 0x34a   : > { %v1474_v52 = vpop.permute.xlu1 %1473  ;;  %v1478_v53 = vpop.permute.xlu0 %1477  ;;  %v1638_v54 = vld [vmem:[#allocation3 + $0x58] sm:$0xff]  ;;  %v1635_v57 = vld [vmem:[#allocation3 + $0x40] sm:$0xff] }
 0x34b   : > { %v1479_v55 = vsel %vm933_vm11, %v1474_v52, %v1476_v48  ;;  %v1480_v56 = vsel %vm933_vm11, %v1476_v48, %v1478_v53  ;;  %1486 = vst.msk [vmem:[#allocation3 + $0x28] sm:$0xff] %vm919_vm2, %v1478_v53  ;;  %4121 = vmatpush3.msra.mxu1 %v1638_v54 }
 0x34c   : > { %4122 = vmatprep.subr.mxu1 %v4335_v0  ;;  %1693 = vmatprep.subr.mxu0 %v1480_v56 }
 0x34d   : > { %4123 = vmatpush3.msra.mxu1 %v1635_v57  ;;  %1694 = vmatpush1.msra.mxu0 %v1479_v55 }
 0x34e   : > { %4124 = vmatprep.subr.mxu1 %v4335_v0  ;;  %1695 = vmatprep.subr.mxu0 %v4733_v5 }
 0x34f   : > { %1696 = vmatpush1.msra.mxu0 %v4715_v3 }
 0x350   : > { %3941 = vmatmul.mubr.msk.f32.vlgmr.msra.gmra.mxu0 %vm1124_vm12, %v1654_v59  ;;  %1829 = vmatprep.subr.mxu0 %v4773_v19 }
 0x351   : > { %1830 = vmatpush1.msra.mxu0 %v4770_v18  ;;  %1879 = vmatprep.mubr.f32.mxu0 %v4335_v0 }
 0x352   : > { %v1632_v60 = vld [vmem:[#allocation3 + $0x28] sm:$0xff]  ;;  %1831 = vmatprep.subr.mxu0 %v4780_v23 }
 0x353   : > { %4125 = vmatpush3.msra.mxu1 %v1632_v60  ;;  %1832 = vmatpush1.msra.mxu0 %v4786_v24 }
 0x354   : > { %4126 = vmatprep.subr.mxu1 %v4335_v0  ;;  %1833 = vmatprep.subr.mxu0 %v4795_v28 }
 0x355   : > { %4127 = vmatpush3.msra.mxu1 %v1629_v62  ;;  %1834 = vmatpush1.msra.mxu0 %v4792_v27 }
 0x356   : > { %4129 = vmatmul.mubr.msk.f32.vlgmr.msra.gmra.mxu1 %vm1124_vm12, %v1654_v59  ;;  %4131 = vmatprep.subr.mxu1 %v4335_v0 }
 0x357   : > { %4132 = vmatpush3.msra.mxu1 %v4777_v22  ;;  %1835 = vmatprep.subr.mxu0 %v4802_v32  ;;  %v1810_v6 = vpop.permute.xlu1 %1809  ;;  %v1660_v7 = vpop.permute.xlu0 %1659  ;;  %v2327_v32 = vld [vmem:[%s5461_s13] sm:$0xf] }
 0x358   : > { %4133 = vmatprep.subr.mxu1 %v4335_v0  ;;  %1836 = vmatpush1.msra.mxu0 %v4808_v33  ;;  %v2177_v33 = vld [vmem:[%s5459_s11] sm:$0xf] }
 0x359   : > { %4134 = vmatpush3.msra.mxu1 %v4799_v31  ;;  %1837 = vmatprep.subr.mxu0 %v1540_v38 }
 0x35a   : > { %4135 = vmatprep.subr.mxu1 %v4335_v0  ;;  %1838 = vmatpush1.msra.mxu0 %v1539_v37 }
 0x35b   : > { %4136 = vmatpush3.msra.mxu1 %v4811_v34  ;;  %1839 = vmatprep.subr.mxu0 %v1520_v43 }
 0x35c   : > { %4137 = vmatprep.subr.mxu1 %v4335_v0  ;;  %1840 = vmatpush1.msra.mxu0 %v1519_v44 }
 0x35d   : > { %4138 = vmatpush3.msra.mxu1 %v1644_v41  ;;  %1841 = vmatprep.subr.mxu0 %v1500_v51 }
 0x35e   : > { %4139 = vmatprep.subr.mxu1 %v4335_v0  ;;  %1842 = vmatpush1.msra.mxu0 %v1499_v50 }
 0x35f   : > { %4140 = vmatpush3.msra.mxu1 %v1641_v45  ;;  %1843 = vmatprep.subr.mxu0 %v1480_v56 }
 0x360   : > { %4141 = vmatprep.subr.mxu1 %v4335_v0  ;;  %1844 = vmatpush1.msra.mxu0 %v1479_v55 }
 0x361   : > { %4142 = vmatpush3.msra.mxu1 %v1638_v54  ;;  %4149 = vmatprep.mubr.msk.f32.mxu1 %vm4360_vm3, %v4335_v0 }
 0x362   : > { %4143 = vmatprep.subr.mxu1 %v4335_v0  ;;  %1845 = vmatprep.subr.mxu0 %v4733_v5 }
 0x363   : > { %4144 = vmatpush3.msra.mxu1 %v1635_v57  ;;  %1846 = vmatpush1.msra.mxu0 %v4715_v3 }
 0x364   : > { %4145 = vmatprep.subr.mxu1 %v4335_v0  ;;  %3943 = vmatmul.mubr.msk.f32.vlgmr.msra.gmra.mxu0 %vm1124_vm12, %v1655_v63 }
 0x365   : > { %4146 = vmatpush3.msra.mxu1 %v1632_v60  ;;  %2250 = vmatprep.mubr.f32.mxu0 %v4335_v0 }
 0x366   : > { %4147 = vmatprep.subr.mxu1 %v4335_v0 }
 0x367   : > { %4148 = vmatpush3.msra.mxu1 %v1629_v62 }
 0x368   : > { %4150 = vmatmul.mubr.msk.f32.vlgmr.msra.gmra.mxu1 %vm1124_vm12, %v1655_v63  ;;  %4152 = vmatprep.subr.mxu1 %v4335_v0 }
 0x369   : > { %4170 = vmatprep.mubr.msk.f32.mxu1 %vm4360_vm3, %v4335_v0 }
 0x410   : > { %v1731_v3 = vpop.f32.mrf.mxu0 }
 0x411   : > { %v1732_v9 = vadd.f32 %v1731_v3, %v1660_v7 }
 0x412   : > { %v1733_v5 = vpop.f32.mrf.mxu0 }
 0x413   : > { %v1734_v12 = vadd.f32 %v1733_v5, %v1660_v7 }
 0x416   : > { %v1802_v2 = vpop.f32.mrf.mxu1 }
 0x417   : > { %v1803_v16 = vadd.f32 %v1802_v2, %v1660_v7 }
 0x418   : > { %v4130_v4 = vpop.f32.mrf.mxu1 }
 0x424   : > { %v1881_v8 = vpop.f32.mrf.mxu0 }
 0x425   : > { %v1882_v10 = vadd.f32 %v1881_v8, %v1810_v6 }
 0x426   : > { %v1883_v11 = vpop.f32.mrf.mxu0 }
 0x427   : > { %v1956_v13 = vmax.f32 %v1732_v9, %v1882_v10  ;;  %v1884_v14 = vadd.f32 %v1883_v11, %v1810_v6 }
 0x428   : > { %v1952_v15 = vpop.f32.mrf.mxu1 }
 0x429   : > { %v1953_v17 = vadd.f32 %v1952_v15, %v1810_v6  ;;  %v1957_v18 = vmax.f32 %v1734_v12, %v1884_v14  ;;  %v1959_v19 = vmul.f32 %v1956_v13, %v4693_v42 }
 0x42a   : > { %v4151_v20 = vpop.f32.mrf.mxu1 }
 0x42b   : > { %v1958_v21 = vmax.f32 %v1803_v16, %v1953_v17  ;;  %1965 = vrot.lane.b32.xlu0 %v1959_v19, %s4362_s9  ;;  %v1960_v22 = vmul.f32 %v1957_v18, %v4695_v47 }
 0x42d   : > { %1967 = vrot.lane.b32.xlu1 %v1960_v22, %s4362_s9  ;;  %v1961_v23 = vmul.f32 %v1958_v21, %v4697_v49 }
 0x42f   : > { %1969 = vrot.lane.b32.xlu0 %v1961_v23, %s4362_s9 }
 0x49d   : > { %v1966_v24 = vpop.permute.xlu0 %1965 }
 0x49e   : > { %v4882_v25 = vadd.f32 %v1966_v24, %v4705_v58 }
 0x49f   : > { %v1968_v26 = vpop.permute.xlu1 %1967 }
 0x4a0   : > { %1979 = vst.msk [vmem:[#allocation2] sm:$0xf] %vm1456_vm13, %v4882_v25  ;;  %v1971_v27 = vsel %vm1450_vm14, %v1966_v24, %v1968_v26  ;;  %v2175_v24 = vld [vmem:[%s5509_s4] sm:$0xf] }
 0x4a1   : > { %v4888_v28 = vadd.f32 %v1971_v27, %v4708_v61  ;;  %v1970_v29 = vpop.permute.xlu0 %1969 }
 0x4a2   : > { %v1972_v30 = vsel %vm1450_vm14, %v1968_v26, %v1970_v29  ;;  %v2176_v29 = vld [vmem:[%s5460_s12] sm:$0xf] }
 0x4a3   : > { %1980 = vst [vmem:[#allocation2 + $0x8] sm:$0xf] %v4888_v28  ;;  %v4893_v31 = vadd.f32 %v1972_v30, %v4711_v1 }
 0x4a5   : > { %1981 = vst.msk [vmem:[#allocation2 + $0x10] sm:$0xf] %vm1459_vm15, %v4893_v31 }
 0x4a7   : > { %v4897_v58 = vld [vmem:[#allocation2] sm:$0xff] }
 0x4a8   : > { %2134 = vrot.lane.b32.xlu1 %v4897_v58, %s4352_s29  ;;  %2114 = vrot.lane.b32.xlu0 %v4897_v58, %s4353_s5 }
 0x4aa   : > { %v4915_v1 = vld [vmem:[#allocation2 + $0x8] sm:$0xff] }
 0x4ac   : > { %2094 = vrot.lane.b32.xlu1 %v4897_v58, %s4354_s10  ;;  %2074 = vrot.lane.b32.xlu0 %v4897_v58, %s5483_s6  ;;  %v2130_v61 = vld [vmem:[#allocation2 + $0x10] sm:$0xff] }
 0x4ad   : > { %1987 = vst.msk [vmem:[#allocation3 + $0x10] sm:$0xff] %vm919_vm2, %v2130_v61 }
 0x4b0   : > { %2054 = vrot.lane.b32.xlu1 %v4897_v58, %s5507_s1  ;;  %2034 = vrot.lane.b32.xlu0 %v4897_v58, %s5508_s7 }
 0x4b4   : > { %2014 = vrot.lane.b32.xlu1 %v4897_v58, %s5502_s30  ;;  %2138 = vrot.lane.b32.xlu0 %v2130_v61, %s4352_s29  ;;  %v2150_v27 = vld [vmem:[#allocation3 + $0x10] sm:$0xff] }
 0x4b8   : > { %2136 = vrot.lane.b32.xlu1 %v4915_v1, %s4352_s29  ;;  %2116 = vrot.lane.b32.xlu0 %v4915_v1, %s4353_s5 }
 0x4bc   : > { %2118 = vrot.lane.b32.xlu1 %v2130_v61, %s4353_s5  ;;  %2098 = vrot.lane.b32.xlu0 %v2130_v61, %s4354_s10 }
 0x4c0   : > { %2096 = vrot.lane.b32.xlu1 %v4915_v1, %s4354_s10  ;;  %2076 = vrot.lane.b32.xlu0 %v4915_v1, %s5483_s6 }
 0x4c4   : > { %2078 = vrot.lane.b32.xlu1 %v2130_v61, %s5483_s6  ;;  %2058 = vrot.lane.b32.xlu0 %v2130_v61, %s5507_s1 }
 0x4c8   : > { %2056 = vrot.lane.b32.xlu1 %v4915_v1, %s5507_s1  ;;  %2036 = vrot.lane.b32.xlu0 %v4915_v1, %s5508_s7 }
 0x4cc   : > { %2038 = vrot.lane.b32.xlu1 %v2130_v61, %s5508_s7  ;;  %2018 = vrot.lane.b32.xlu0 %v2130_v61, %s5502_s30 }
 0x4d0   : > { %2016 = vrot.lane.b32.xlu1 %v4915_v1, %s5502_s30  ;;  %1996 = vrot.lane.b32.xlu0 %v4915_v1, %s5481_s8 }
 0x4d4   : > { %1994 = vrot.lane.b32.xlu0 %v4897_v58, %s5481_s8  ;;  %1998 = vrot.lane.b32.xlu1 %v2130_v61, %s5481_s8 }
 0x4d8   : > { %2330 = vperm.xlu0 %4325, %v2327_v32   ;;  %2180 = vperm.xlu1 %4326, %v2177_v33  }
 0x51a   : > { %v2135_v34 = vpop.permute.xlu1 %2134  ;;  %v2115_v35 = vpop.permute.xlu0 %2114 }
 0x51e   : > { %v2095_v36 = vpop.permute.xlu1 %2094  ;;  %v2075_v37 = vpop.permute.xlu0 %2074 }
 0x522   : > { %v2055_v38 = vpop.permute.xlu1 %2054  ;;  %v2035_v39 = vpop.permute.xlu0 %2034 }
 0x526   : > { %v4948_v40 = vpop.permute.xlu1 %2014  ;;  %v2139_v41 = vpop.permute.xlu0 %2138 }
 0x527   : > { %2147 = vst.msk [vmem:[#allocation3 + $0xd0] sm:$0xff] %vm919_vm2, %v2139_v41 }
 0x52a   : > { %v2137_v43 = vpop.permute.xlu1 %2136  ;;  %v2117_v44 = vpop.permute.xlu0 %2116 }
 0x52b   : > { %v4952_v45 = vsel %vm1080_vm4, %v2135_v34, %v2137_v43  ;;  %v4955_v46 = vsel %vm1080_vm4, %v2137_v43, %v2139_v41  ;;  %v4968_v53 = vsel %vm1059_vm5, %v2115_v35, %v2117_v44 }
 0x52c   : > { %2200 = vmatprep.subr.mxu0 %v4955_v46 }
 0x52d   : > { %2201 = vmatpush1.msra.mxu0 %v4952_v45 }
 0x52e   : > { %v2119_v48 = vpop.permute.xlu1 %2118  ;;  %v2099_v50 = vpop.permute.xlu0 %2098  ;;  %v4959_v51 = vld [vmem:[#allocation3 + $0xd0] sm:$0xff] }
 0x52f   : > { %v4962_v52 = vsel %vm1059_vm5, %v2117_v44, %v2119_v48  ;;  %2127 = vst.msk [vmem:[#allocation3 + $0xb8] sm:$0xff] %vm919_vm2, %v2119_v48  ;;  %2107 = vst.msk [vmem:[#allocation3 + $0xa0] sm:$0xff] %vm919_vm2, %v2099_v50  ;;  %4153 = vmatpush3.msra.mxu1 %v4959_v51 }
 0x530   : > { %4154 = vmatprep.subr.mxu1 %v4335_v0  ;;  %2202 = vmatprep.subr.mxu0 %v4962_v52 }
 0x531   : > { %2203 = vmatpush1.msra.mxu0 %v4968_v53 }
 0x532   : > { %v2097_v54 = vpop.permute.xlu1 %2096  ;;  %v2077_v55 = vpop.permute.xlu0 %2076 }
 0x533   : > { %v4974_v56 = vsel %vm1038_vm6, %v2095_v36, %v2097_v54  ;;  %v4977_v57 = vsel %vm1038_vm6, %v2097_v54, %v2099_v50  ;;  %v4990_v2 = vsel %vm1017_vm7, %v2075_v37, %v2077_v55 }
 0x534   : > { %2204 = vmatprep.subr.mxu0 %v4977_v57 }
 0x535   : > { %2205 = vmatpush1.msra.mxu0 %v4974_v56 }
 0x536   : > { %v2079_v59 = vpop.permute.xlu1 %2078  ;;  %v2059_v60 = vpop.permute.xlu0 %2058  ;;  %v4981_v62 = vld [vmem:[#allocation3 + $0xb8] sm:$0xff]  ;;  %v4993_v4 = vld [vmem:[#allocation3 + $0xa0] sm:$0xff] }
 0x537   : > { %v4984_v63 = vsel %vm1017_vm7, %v2077_v55, %v2079_v59  ;;  %2087 = vst.msk [vmem:[#allocation3 + $0x88] sm:$0xff] %vm919_vm2, %v2079_v59  ;;  %2067 = vst.msk [vmem:[#allocation3 + $0x70] sm:$0xff] %vm919_vm2, %v2059_v60  ;;  %4155 = vmatpush3.msra.mxu1 %v4981_v62 }
 0x538   : > { %4156 = vmatprep.subr.mxu1 %v4335_v0  ;;  %2206 = vmatprep.subr.mxu0 %v4984_v63 }
 0x539   : > { %4157 = vmatpush3.msra.mxu1 %v4993_v4  ;;  %2207 = vmatpush1.msra.mxu0 %v4990_v2 }
 0x53a   : > { %v2057_v3 = vpop.permute.xlu1 %2056  ;;  %v2037_v5 = vpop.permute.xlu0 %2036  ;;  %4158 = vmatprep.subr.mxu1 %v4335_v0 }
 0x53b   : > { %v2060_v6 = vsel %vm996_vm8, %v2055_v38, %v2057_v3  ;;  %v2061_v7 = vsel %vm996_vm8, %v2057_v3, %v2059_v60  ;;  %v2040_v12 = vsel %vm975_vm9, %v2035_v39, %v2037_v5 }
 0x53c   : > { %2208 = vmatprep.subr.mxu0 %v2061_v7 }
 0x53d   : > { %2209 = vmatpush1.msra.mxu0 %v2060_v6 }
 0x53e   : > { %v2039_v8 = vpop.permute.xlu1 %2038  ;;  %v2019_v9 = vpop.permute.xlu0 %2018  ;;  %v2165_v10 = vld [vmem:[#allocation3 + $0x88] sm:$0xff]  ;;  %v2162_v13 = vld [vmem:[#allocation3 + $0x70] sm:$0xff] }
 0x53f   : > { %v2041_v11 = vsel %vm975_vm9, %v2037_v5, %v2039_v8  ;;  %2047 = vst.msk [vmem:[#allocation3 + $0x58] sm:$0xff] %vm919_vm2, %v2039_v8  ;;  %2027 = vst.msk [vmem:[#allocation3 + $0x40] sm:$0xff] %vm919_vm2, %v2019_v9  ;;  %4159 = vmatpush3.msra.mxu1 %v2165_v10 }
 0x540   : > { %4160 = vmatprep.subr.mxu1 %v4335_v0  ;;  %2210 = vmatprep.subr.mxu0 %v2041_v11 }
 0x541   : > { %4161 = vmatpush3.msra.mxu1 %v2162_v13  ;;  %2211 = vmatpush1.msra.mxu0 %v2040_v12 }
 0x542   : > { %v2017_v14 = vpop.permute.xlu1 %2016  ;;  %v1997_v15 = vpop.permute.xlu0 %1996  ;;  %4162 = vmatprep.subr.mxu1 %v4335_v0 }
 0x543   : > { %v2020_v16 = vsel %vm954_vm10, %v4948_v40, %v2017_v14  ;;  %v2021_v17 = vsel %vm954_vm10, %v2017_v14, %v2019_v9 }
 0x544   : > { %2212 = vmatprep.subr.mxu0 %v2021_v17 }
 0x545   : > { %2213 = vmatpush1.msra.mxu0 %v2020_v16 }
 0x546   : > { %v1999_v18 = vpop.permute.xlu1 %1998  ;;  %v1995_v19 = vpop.permute.xlu0 %1994  ;;  %v2159_v20 = vld [vmem:[#allocation3 + $0x58] sm:$0xff]  ;;  %v2156_v23 = vld [vmem:[#allocation3 + $0x40] sm:$0xff] }
 0x547   : > { %v2001_v21 = vsel %vm933_vm11, %v1997_v15, %v1999_v18  ;;  %2007 = vst.msk [vmem:[#allocation3 + $0x28] sm:$0xff] %vm919_vm2, %v1999_v18  ;;  %v2000_v22 = vsel %vm933_vm11, %v1995_v19, %v1997_v15  ;;  %4163 = vmatpush3.msra.mxu1 %v2159_v20 }
 0x548   : > { %4164 = vmatprep.subr.mxu1 %v4335_v0  ;;  %2214 = vmatprep.subr.mxu0 %v2001_v21 }
 0x549   : > { %4165 = vmatpush3.msra.mxu1 %v2156_v23  ;;  %2215 = vmatpush1.msra.mxu0 %v2000_v22 }
 0x54a   : > { %4166 = vmatprep.subr.mxu1 %v4335_v0  ;;  %2216 = vmatprep.subr.mxu0 %v4915_v1 }
 0x54b   : > { %2217 = vmatpush1.msra.mxu0 %v4897_v58 }
 0x54c   : > { %3945 = vmatmul.mubr.msk.f32.vlgmr.msra.gmra.mxu0 %vm1124_vm12, %v2175_v24  ;;  %2350 = vmatprep.subr.mxu0 %v4955_v46 }
 0x54d   : > { %2351 = vmatpush1.msra.mxu0 %v4952_v45  ;;  %2400 = vmatprep.mubr.f32.mxu0 %v4335_v0 }
 0x54e   : > { %v2153_v26 = vld [vmem:[#allocation3 + $0x28] sm:$0xff]  ;;  %2352 = vmatprep.subr.mxu0 %v4962_v52 }
 0x54f   : > { %4167 = vmatpush3.msra.mxu1 %v2153_v26  ;;  %2353 = vmatpush1.msra.mxu0 %v4968_v53 }
 0x550   : > { %4168 = vmatprep.subr.mxu1 %v4335_v0  ;;  %2354 = vmatprep.subr.mxu0 %v4977_v57 }
 0x551   : > { %4169 = vmatpush3.msra.mxu1 %v2150_v27  ;;  %2355 = vmatpush1.msra.mxu0 %v4974_v56 }
 0x552   : > { %4171 = vmatmul.mubr.msk.f32.vlgmr.msra.gmra.mxu1 %vm1124_vm12, %v2175_v24  ;;  %4173 = vmatprep.subr.mxu1 %v4335_v0 }
 0x553   : > { %4174 = vmatpush3.msra.mxu1 %v4959_v51  ;;  %2356 = vmatprep.subr.mxu0 %v4984_v63  ;;  %v2181_v32 = vpop.permute.xlu1 %2180  ;;  %v2331_v33 = vpop.permute.xlu0 %2330  ;;  %v2845_v63 = vld [vmem:[%s5465_s17] sm:$0xf] }
 0x554   : > { %4175 = vmatprep.subr.mxu1 %v4335_v0  ;;  %2357 = vmatpush1.msra.mxu0 %v4990_v2  ;;  %v2695_v2 = vld [vmem:[%s5463_s15] sm:$0xf] }
 0x555   : > { %4176 = vmatpush3.msra.mxu1 %v4981_v62  ;;  %2358 = vmatprep.subr.mxu0 %v2061_v7 }
 0x556   : > { %4177 = vmatprep.subr.mxu1 %v4335_v0  ;;  %2359 = vmatpush1.msra.mxu0 %v2060_v6 }
 0x557   : > { %4178 = vmatpush3.msra.mxu1 %v4993_v4  ;;  %2360 = vmatprep.subr.mxu0 %v2041_v11 }
 0x558   : > { %4179 = vmatprep.subr.mxu1 %v4335_v0  ;;  %2361 = vmatpush1.msra.mxu0 %v2040_v12 }
 0x559   : > { %4180 = vmatpush3.msra.mxu1 %v2165_v10  ;;  %2362 = vmatprep.subr.mxu0 %v2021_v17 }
 0x55a   : > { %4181 = vmatprep.subr.mxu1 %v4335_v0  ;;  %2363 = vmatpush1.msra.mxu0 %v2020_v16 }
 0x55b   : > { %4182 = vmatpush3.msra.mxu1 %v2162_v13  ;;  %2364 = vmatprep.subr.mxu0 %v2001_v21 }
 0x55c   : > { %4183 = vmatprep.subr.mxu1 %v4335_v0  ;;  %2365 = vmatpush1.msra.mxu0 %v2000_v22 }
 0x55d   : > { %4184 = vmatpush3.msra.mxu1 %v2159_v20  ;;  %4191 = vmatprep.mubr.msk.f32.mxu1 %vm4360_vm3, %v4335_v0 }
 0x55e   : > { %4185 = vmatprep.subr.mxu1 %v4335_v0  ;;  %2366 = vmatprep.subr.mxu0 %v4915_v1 }
 0x55f   : > { %4186 = vmatpush3.msra.mxu1 %v2156_v23  ;;  %2367 = vmatpush1.msra.mxu0 %v4897_v58 }
 0x560   : > { %4187 = vmatprep.subr.mxu1 %v4335_v0  ;;  %3947 = vmatmul.mubr.msk.f32.vlgmr.msra.gmra.mxu0 %vm1124_vm12, %v2176_v29 }
 0x561   : > { %4188 = vmatpush3.msra.mxu1 %v2153_v26  ;;  %2768 = vmatprep.mubr.f32.mxu0 %v4335_v0 }
 0x562   : > { %4189 = vmatprep.subr.mxu1 %v4335_v0 }
 0x563   : > { %4190 = vmatpush3.msra.mxu1 %v2150_v27 }
 0x564   : > { %4192 = vmatmul.mubr.msk.f32.vlgmr.msra.gmra.mxu1 %vm1124_vm12, %v2176_v29  ;;  %4194 = vmatprep.subr.mxu1 %v4335_v0 }
 0x565   : > { %4212 = vmatprep.mubr.msk.f32.mxu1 %vm4360_vm3, %v4335_v0 }
 0x60c   : > { %v2252_v58 = vpop.f32.mrf.mxu0 }
 0x60d   : > { %v2253_v35 = vadd.f32 %v2252_v58, %v2181_v32 }
 0x60e   : > { %v2254_v1 = vpop.f32.mrf.mxu0 }
 0x60f   : > { %v2255_v38 = vadd.f32 %v2254_v1, %v2181_v32 }
 0x612   : > { %v2323_v30 = vpop.f32.mrf.mxu1 }
 0x613   : > { %v2324_v43 = vadd.f32 %v2323_v30, %v2181_v32 }
 0x614   : > { %v4172_v61 = vpop.f32.mrf.mxu1 }
 0x620   : > { %v2402_v34 = vpop.f32.mrf.mxu0 }
 0x621   : > { %v2403_v36 = vadd.f32 %v2402_v34, %v2331_v33 }
 0x622   : > { %v2404_v37 = vpop.f32.mrf.mxu0 }
 0x623   : > { %v2477_v39 = vmax.f32 %v2253_v35, %v2403_v36  ;;  %v2405_v40 = vadd.f32 %v2404_v37, %v2331_v33 }
 0x624   : > { %v2473_v41 = vpop.f32.mrf.mxu1 }
 0x625   : > { %v2474_v44 = vadd.f32 %v2473_v41, %v2331_v33  ;;  %v2480_v45 = vmul.f32 %v2477_v39, %v4693_v42  ;;  %v2478_v46 = vmax.f32 %v2255_v38, %v2405_v40 }
 0x626   : > { %v4193_v48 = vpop.f32.mrf.mxu1 }
 0x627   : > { %v2479_v50 = vmax.f32 %v2324_v43, %v2474_v44  ;;  %v2481_v51 = vmul.f32 %v2478_v46, %v4695_v47  ;;  %2486 = vrot.lane.b32.xlu1 %v2480_v45, %s4362_s9 }
 0x629   : > { %v2482_v52 = vmul.f32 %v2479_v50, %v4697_v49  ;;  %2488 = vrot.lane.b32.xlu0 %v2481_v51, %s4362_s9 }
 0x62b   : > { %2490 = vrot.lane.b32.xlu1 %v2482_v52, %s4362_s9 }
 0x699   : > { %v2487_v53 = vpop.permute.xlu1 %2486 }
 0x69a   : > { %2497 = vst.msk [vmem:[#allocation2] sm:$0xf] %vm1456_vm13, %v2487_v53 }
 0x69b   : > { %v2489_v54 = vpop.permute.xlu0 %2488 }
 0x69c   : > { %v2492_v55 = vsel %vm1450_vm14, %v2487_v53, %v2489_v54  ;;  %v2693_v53 = vld [vmem:[%s5462_s14] sm:$0xf] }
 0x69d   : > { %2498 = vst [vmem:[#allocation2 + $0x8] sm:$0xf] %v2492_v55  ;;  %v2491_v56 = vpop.permute.xlu1 %2490 }
 0x69e   : > { %v2493_v57 = vsel %vm1450_vm14, %v2489_v54, %v2491_v56  ;;  %v2694_v56 = vld [vmem:[%s5464_s16] sm:$0xf] }
 0x69f   : > { %2499 = vst.msk [vmem:[#allocation2 + $0x10] sm:$0xf] %vm1459_vm15, %v2493_v57 }
 0x6a1   : > { %v5067_v59 = vld [vmem:[#allocation2] sm:$0xff] }
 0x6a2   : > { %2652 = vrot.lane.b32.xlu0 %v5067_v59, %s4352_s29  ;;  %2632 = vrot.lane.b32.xlu1 %v5067_v59, %s4353_s5 }
 0x6a4   : > { %v5085_v62 = vld [vmem:[#allocation2 + $0x8] sm:$0xff] }
 0x6a6   : > { %2612 = vrot.lane.b32.xlu0 %v5067_v59, %s4354_s10  ;;  %2592 = vrot.lane.b32.xlu1 %v5067_v59, %s5483_s6  ;;  %v2648_v60 = vld [vmem:[#allocation2 + $0x10] sm:$0xff] }
 0x6a7   : > { %2505 = vst.msk [vmem:[#allocation3 + $0x10] sm:$0xff] %vm919_vm2, %v2648_v60 }
 0x6aa   : > { %2572 = vrot.lane.b32.xlu0 %v5067_v59, %s5507_s1  ;;  %2552 = vrot.lane.b32.xlu1 %v5067_v59, %s5508_s7 }
 0x6ae   : > { %2532 = vrot.lane.b32.xlu0 %v5067_v59, %s5502_s30  ;;  %2656 = vrot.lane.b32.xlu1 %v2648_v60, %s4352_s29  ;;  %v2668_v55 = vld [vmem:[#allocation3 + $0x10] sm:$0xff] }
 0x6b2   : > { %2654 = vrot.lane.b32.xlu0 %v5085_v62, %s4352_s29  ;;  %2634 = vrot.lane.b32.xlu1 %v5085_v62, %s4353_s5 }
 0x6b6   : > { %2636 = vrot.lane.b32.xlu0 %v2648_v60, %s4353_s5  ;;  %2616 = vrot.lane.b32.xlu1 %v2648_v60, %s4354_s10 }
 0x6ba   : > { %2614 = vrot.lane.b32.xlu0 %v5085_v62, %s4354_s10  ;;  %2594 = vrot.lane.b32.xlu1 %v5085_v62, %s5483_s6 }
 0x6be   : > { %2596 = vrot.lane.b32.xlu0 %v2648_v60, %s5483_s6  ;;  %2576 = vrot.lane.b32.xlu1 %v2648_v60, %s5507_s1  ;;  %s5510_s6 = smov 108  }
 0x6c2   : > { %2574 = vrot.lane.b32.xlu0 %v5085_v62, %s5507_s1  ;;  %2554 = vrot.lane.b32.xlu1 %v5085_v62, %s5508_s7 }
 0x6c6   : > { %2556 = vrot.lane.b32.xlu0 %v2648_v60, %s5508_s7  ;;  %2536 = vrot.lane.b32.xlu1 %v2648_v60, %s5502_s30 }
 0x6ca   : > { %2534 = vrot.lane.b32.xlu0 %v5085_v62, %s5502_s30  ;;  %2514 = vrot.lane.b32.xlu1 %v5085_v62, %s5481_s8 }
 0x6ce   : > { %2512 = vrot.lane.b32.xlu1 %v5067_v59, %s5481_s8  ;;  %2516 = vrot.lane.b32.xlu0 %v2648_v60, %s5481_s8 }
 0x6d2   : > { %2848 = vperm.xlu1 %4326, %v2845_v63   ;;  %2698 = vperm.xlu0 %4325, %v2695_v2  }
 0x714   : > { %v2653_v4 = vpop.permute.xlu0 %2652  ;;  %v2633_v3 = vpop.permute.xlu1 %2632 }
 0x718   : > { %v2613_v5 = vpop.permute.xlu0 %2612  ;;  %v2593_v6 = vpop.permute.xlu1 %2592 }
 0x71c   : > { %v2573_v7 = vpop.permute.xlu0 %2572  ;;  %v2553_v8 = vpop.permute.xlu1 %2552 }
 0x720   : > { %v5118_v9 = vpop.permute.xlu0 %2532  ;;  %v2657_v10 = vpop.permute.xlu1 %2656 }
 0x721   : > { %2665 = vst.msk [vmem:[#allocation3 + $0xd0] sm:$0xff] %vm919_vm2, %v2657_v10 }
 0x724   : > { %v2655_v11 = vpop.permute.xlu0 %2654  ;;  %v2635_v12 = vpop.permute.xlu1 %2634 }
 0x725   : > { %v5122_v13 = vsel %vm1080_vm4, %v2653_v4, %v2655_v11  ;;  %v5125_v14 = vsel %vm1080_vm4, %v2655_v11, %v2657_v10  ;;  %v5138_v19 = vsel %vm1059_vm5, %v2633_v3, %v2635_v12 }
 0x726   : > { %2718 = vmatprep.subr.mxu0 %v5125_v14 }
 0x727   : > { %2719 = vmatpush1.msra.mxu0 %v5122_v13 }
 0x728   : > { %v2637_v15 = vpop.permute.xlu0 %2636  ;;  %v2617_v16 = vpop.permute.xlu1 %2616  ;;  %v5129_v17 = vld [vmem:[#allocation3 + $0xd0] sm:$0xff] }
 0x729   : > { %v5132_v18 = vsel %vm1059_vm5, %v2635_v12, %v2637_v15  ;;  %2645 = vst.msk [vmem:[#allocation3 + $0xb8] sm:$0xff] %vm919_vm2, %v2637_v15  ;;  %2625 = vst.msk [vmem:[#allocation3 + $0xa0] sm:$0xff] %vm919_vm2, %v2617_v16  ;;  %4195 = vmatpush3.msra.mxu1 %v5129_v17 }
 0x72a   : > { %4196 = vmatprep.subr.mxu1 %v4335_v0  ;;  %2720 = vmatprep.subr.mxu0 %v5132_v18 }
 0x72b   : > { %2721 = vmatpush1.msra.mxu0 %v5138_v19 }
 0x72c   : > { %v2615_v20 = vpop.permute.xlu0 %2614  ;;  %v2595_v21 = vpop.permute.xlu1 %2594 }
 0x72d   : > { %v5144_v22 = vsel %vm1038_vm6, %v2613_v5, %v2615_v20  ;;  %v5147_v23 = vsel %vm1038_vm6, %v2615_v20, %v2617_v16  ;;  %v5160_v30 = vsel %vm1017_vm7, %v2593_v6, %v2595_v21 }
 0x72e   : > { %2722 = vmatprep.subr.mxu0 %v5147_v23 }
 0x72f   : > { %2723 = vmatpush1.msra.mxu0 %v5144_v22 }
 0x730   : > { %v2597_v24 = vpop.permute.xlu0 %2596  ;;  %v2577_v26 = vpop.permute.xlu1 %2576  ;;  %v5151_v27 = vld [vmem:[#allocation3 + $0xb8] sm:$0xff]  ;;  %v5163_v61 = vld [vmem:[#allocation3 + $0xa0] sm:$0xff] }
 0x731   : > { %v5154_v29 = vsel %vm1017_vm7, %v2595_v21, %v2597_v24  ;;  %2605 = vst.msk [vmem:[#allocation3 + $0x88] sm:$0xff] %vm919_vm2, %v2597_v24  ;;  %2585 = vst.msk [vmem:[#allocation3 + $0x70] sm:$0xff] %vm919_vm2, %v2577_v26  ;;  %4197 = vmatpush3.msra.mxu1 %v5151_v27 }
 0x732   : > { %4198 = vmatprep.subr.mxu1 %v4335_v0  ;;  %2724 = vmatprep.subr.mxu0 %v5154_v29 }
 0x733   : > { %4199 = vmatpush3.msra.mxu1 %v5163_v61  ;;  %2725 = vmatpush1.msra.mxu0 %v5160_v30 }
 0x734   : > { %v2575_v58 = vpop.permute.xlu0 %2574  ;;  %v2555_v1 = vpop.permute.xlu1 %2554  ;;  %4200 = vmatprep.subr.mxu1 %v4335_v0 }
 0x735   : > { %v2578_v32 = vsel %vm996_vm8, %v2573_v7, %v2575_v58  ;;  %v2579_v33 = vsel %vm996_vm8, %v2575_v58, %v2577_v26  ;;  %v2558_v38 = vsel %vm975_vm9, %v2553_v8, %v2555_v1  ;;  %v3024_v58 = vld [vmem:[%s5466_s18] sm:$0xff] }
 0x736   : > { %2726 = vmatprep.subr.mxu0 %v2579_v33 }
 0x737   : > { %2727 = vmatpush1.msra.mxu0 %v2578_v32 }
 0x738   : > { %v2557_v34 = vpop.permute.xlu0 %2556  ;;  %v2537_v35 = vpop.permute.xlu1 %2536  ;;  %v2683_v36 = vld [vmem:[#allocation3 + $0x88] sm:$0xff]  ;;  %v2680_v39 = vld [vmem:[#allocation3 + $0x70] sm:$0xff] }
 0x739   : > { %v2559_v37 = vsel %vm975_vm9, %v2555_v1, %v2557_v34  ;;  %2565 = vst.msk [vmem:[#allocation3 + $0x58] sm:$0xff] %vm919_vm2, %v2557_v34  ;;  %2545 = vst.msk [vmem:[#allocation3 + $0x40] sm:$0xff] %vm919_vm2, %v2537_v35  ;;  %4201 = vmatpush3.msra.mxu1 %v2683_v36 }
 0x73a   : > { %4202 = vmatprep.subr.mxu1 %v4335_v0  ;;  %2728 = vmatprep.subr.mxu0 %v2559_v37 }
 0x73b   : > { %4203 = vmatpush3.msra.mxu1 %v2680_v39  ;;  %2729 = vmatpush1.msra.mxu0 %v2558_v38 }
 0x73c   : > { %v2535_v40 = vpop.permute.xlu0 %2534  ;;  %v2515_v41 = vpop.permute.xlu1 %2514  ;;  %4204 = vmatprep.subr.mxu1 %v4335_v0 }
 0x73d   : > { %v2538_v43 = vsel %vm954_vm10, %v5118_v9, %v2535_v40  ;;  %v2539_v44 = vsel %vm954_vm10, %v2535_v40, %v2537_v35  ;;  %v3025_v35 = vld [vmem:[%s5468_s20] sm:$0xff] }
 0x73e   : > { %2730 = vmatprep.subr.mxu0 %v2539_v44 }
 0x73f   : > { %2731 = vmatpush1.msra.mxu0 %v2538_v43 }
 0x740   : > { %v2517_v45 = vpop.permute.xlu0 %2516  ;;  %v2513_v46 = vpop.permute.xlu1 %2512  ;;  %v2677_v48 = vld [vmem:[#allocation3 + $0x58] sm:$0xff]  ;;  %v2674_v52 = vld [vmem:[#allocation3 + $0x40] sm:$0xff] }
 0x741   : > { %v2519_v50 = vsel %vm933_vm11, %v2515_v41, %v2517_v45  ;;  %2525 = vst.msk [vmem:[#allocation3 + $0x28] sm:$0xff] %vm919_vm2, %v2517_v45  ;;  %v2518_v51 = vsel %vm933_vm11, %v2513_v46, %v2515_v41  ;;  %4205 = vmatpush3.msra.mxu1 %v2677_v48 }
 0x742   : > { %4206 = vmatprep.subr.mxu1 %v4335_v0  ;;  %2732 = vmatprep.subr.mxu0 %v2519_v50 }
 0x743   : > { %4207 = vmatpush3.msra.mxu1 %v2674_v52  ;;  %2733 = vmatpush1.msra.mxu0 %v2518_v51 }
 0x744   : > { %4208 = vmatprep.subr.mxu1 %v4335_v0  ;;  %2734 = vmatprep.subr.mxu0 %v5085_v62 }
 0x745   : > { %2735 = vmatpush1.msra.mxu0 %v5067_v59 }
 0x746   : > { %3949 = vmatmul.mubr.msk.f32.vlgmr.msra.gmra.mxu0 %vm1124_vm12, %v2693_v53  ;;  %2868 = vmatprep.subr.mxu0 %v5125_v14 }
 0x747   : > { %2869 = vmatpush1.msra.mxu0 %v5122_v13  ;;  %2918 = vmatprep.mubr.f32.mxu0 %v4335_v0 }
 0x748   : > { %v2671_v54 = vld [vmem:[#allocation3 + $0x28] sm:$0xff]  ;;  %2870 = vmatprep.subr.mxu0 %v5132_v18 }
 0x749   : > { %4209 = vmatpush3.msra.mxu1 %v2671_v54  ;;  %2871 = vmatpush1.msra.mxu0 %v5138_v19 }
 0x74a   : > { %4210 = vmatprep.subr.mxu1 %v4335_v0  ;;  %2872 = vmatprep.subr.mxu0 %v5147_v23 }
 0x74b   : > { %4211 = vmatpush3.msra.mxu1 %v2668_v55  ;;  %2873 = vmatpush1.msra.mxu0 %v5144_v22 }
 0x74c   : > { %4213 = vmatmul.mubr.msk.f32.vlgmr.msra.gmra.mxu1 %vm1124_vm12, %v2693_v53  ;;  %4215 = vmatprep.subr.mxu1 %v4335_v0 }
 0x74d   : > { %4216 = vmatpush3.msra.mxu1 %v5129_v17  ;;  %2874 = vmatprep.subr.mxu0 %v5154_v29  ;;  %v2699_v63 = vpop.permute.xlu0 %2698  ;;  %v2849_v2 = vpop.permute.xlu1 %2848 }
 0x74e   : > { %4217 = vmatprep.subr.mxu1 %v4335_v0  ;;  %2875 = vmatpush1.msra.mxu0 %v5160_v30 }
 0x74f   : > { %4218 = vmatpush3.msra.mxu1 %v5151_v27  ;;  %2876 = vmatprep.subr.mxu0 %v2579_v33 }
 0x750   : > { %4219 = vmatprep.subr.mxu1 %v4335_v0  ;;  %2877 = vmatpush1.msra.mxu0 %v2578_v32 }
 0x751   : > { %4220 = vmatpush3.msra.mxu1 %v5163_v61  ;;  %2878 = vmatprep.subr.mxu0 %v2559_v37  ;;  %v3026_v61 = vld [vmem:[%s5467_s19] sm:$0xff] }
 0x752   : > { %4221 = vmatprep.subr.mxu1 %v4335_v0  ;;  %2879 = vmatpush1.msra.mxu0 %v2558_v38 }
 0x753   : > { %4222 = vmatpush3.msra.mxu1 %v2683_v36  ;;  %2880 = vmatprep.subr.mxu0 %v2539_v44 }
 0x754   : > { %4223 = vmatprep.subr.mxu1 %v4335_v0  ;;  %2881 = vmatpush1.msra.mxu0 %v2538_v43 }
 0x755   : > { %4224 = vmatpush3.msra.mxu1 %v2680_v39  ;;  %2882 = vmatprep.subr.mxu0 %v2519_v50 }
 0x756   : > { %4225 = vmatprep.subr.mxu1 %v4335_v0  ;;  %2883 = vmatpush1.msra.mxu0 %v2518_v51 }
 0x757   : > { %4226 = vmatpush3.msra.mxu1 %v2677_v48  ;;  %4233 = vmatprep.mubr.msk.f32.mxu1 %vm4360_vm3, %v4335_v0 }
 0x758   : > { %4227 = vmatprep.subr.mxu1 %v4335_v0  ;;  %2884 = vmatprep.subr.mxu0 %v5085_v62 }
 0x759   : > { %4228 = vmatpush3.msra.mxu1 %v2674_v52  ;;  %2885 = vmatpush1.msra.mxu0 %v5067_v59 }
 0x75a   : > { %4229 = vmatprep.subr.mxu1 %v4335_v0  ;;  %3951 = vmatmul.mubr.msk.f32.vlgmr.msra.gmra.mxu0 %vm1124_vm12, %v2694_v56 }
 0x75b   : > { %4230 = vmatpush3.msra.mxu1 %v2671_v54  ;;  %3114 = vmatprep.mubr.f32.mxu0 %v4335_v0 }
 0x75c   : > { %4231 = vmatprep.subr.mxu1 %v4335_v0 }
 0x75d   : > { %4232 = vmatpush3.msra.mxu1 %v2668_v55 }
 0x75e   : > { %4234 = vmatmul.mubr.msk.f32.vlgmr.msra.gmra.mxu1 %vm1124_vm12, %v2694_v56  ;;  %4236 = vmatprep.subr.mxu1 %v4335_v0 }
 0x75f   : > { %4238 = vmatprep.mubr.msk.f32.mxu1 %vm4360_vm3, %v4335_v0 }
 0x806   : > { %v2770_v59 = vpop.f32.mrf.mxu0 }
 0x807   : > { %v2771_v3 = vadd.f32 %v2770_v59, %v2699_v63 }
 0x808   : > { %v2772_v62 = vpop.f32.mrf.mxu0 }
 0x809   : > { %v2773_v7 = vadd.f32 %v2772_v62, %v2699_v63 }
 0x80c   : > { %v2841_v57 = vpop.f32.mrf.mxu1 }
 0x80d   : > { %v2842_v11 = vadd.f32 %v2841_v57, %v2699_v63 }
 0x80e   : > { %v4214_v60 = vpop.f32.mrf.mxu1 }
 0x81a   : > { %v2920_v4 = vpop.f32.mrf.mxu0 }
 0x81b   : > { %v2921_v5 = vadd.f32 %v2920_v4, %v2849_v2 }
 0x81c   : > { %v2922_v6 = vpop.f32.mrf.mxu0 }
 0x81d   : > { %v2995_v8 = vmax.f32 %v2771_v3, %v2921_v5  ;;  %v2923_v9 = vadd.f32 %v2922_v6, %v2849_v2 }
 0x81e   : > { %v2991_v10 = vpop.f32.mrf.mxu1 }
 0x81f   : > { %v2992_v12 = vadd.f32 %v2991_v10, %v2849_v2  ;;  %v2998_v13 = vmul.f32 %v2995_v8, %v4693_v42  ;;  %v2996_v14 = vmax.f32 %v2773_v7, %v2923_v9  ;;  %v3711_v8 = vld [vmem:[%s5473_s25] sm:$0xf] }
 0x820   : > { %v4235_v15 = vpop.f32.mrf.mxu1  ;;  %v3561_v9 = vld [vmem:[%s5471_s23] sm:$0xf] }
 0x821   : > { %v2997_v16 = vmax.f32 %v2842_v11, %v2992_v12  ;;  %v2999_v17 = vmul.f32 %v2996_v14, %v4695_v47  ;;  %3004 = vrot.lane.b32.xlu0 %v2998_v13, %s4362_s9 }
 0x823   : > { %v3000_v18 = vmul.f32 %v2997_v16, %v4697_v49  ;;  %3006 = vrot.lane.b32.xlu1 %v2999_v17, %s4362_s9 }
 0x825   : > { %3008 = vrot.lane.b32.xlu0 %v3000_v18, %s4362_s9 }
 0x893   : > { %v3005_v19 = vpop.permute.xlu0 %3004 }
 0x894   : > { %v3015_v20 = vadd.f32 %v3005_v19, %v4882_v25 }
 0x895   : > { %v3007_v21 = vpop.permute.xlu1 %3006 }
 0x896   : > { %3018 = vst.msk [vmem:[#allocation2] sm:$0xf] %vm1456_vm13, %v3015_v20  ;;  %v3010_v22 = vsel %vm1450_vm14, %v3005_v19, %v3007_v21  ;;  %vm3364_vm13 = vcmask 711680  }
 0x897   : > { %v3016_v23 = vadd.f32 %v3010_v22, %v4888_v28  ;;  %v3009_v24 = vpop.permute.xlu0 %3008  ;;  %v3191_v28 = vld [vmem:[%s5469_s21] sm:$0xff] }
 0x898   : > { %v3011_v26 = vsel %vm1450_vm14, %v3007_v21, %v3009_v24 }
 0x899   : > { %3019 = vst [vmem:[#allocation2 + $0x8] sm:$0xf] %v3016_v23  ;;  %v3017_v27 = vadd.f32 %v3011_v26, %v4893_v31 }
 0x89b   : > { %3020 = vst.msk [vmem:[#allocation2 + $0x10] sm:$0xf] %vm1459_vm15, %v3017_v27 }
 0x89d   : > { %v3021_v25 = vld [vmem:[#allocation2] sm:$0xff] }
 0x8a0   : > { %v3022_v29 = vld [vmem:[#allocation2 + $0x8] sm:$0xff] }
 0x8a1   : > { %3037 = vrot.lane.b32.xlu1 %v3022_v29, %s5507_s1 }
 0x8a2   : > { %v3023_v30 = vld [vmem:[#allocation2 + $0x10] sm:$0xff] }
 0x8a3   : > { %3039 = vrot.lane.b32.xlu0 %v3023_v30, %s5507_s1 }
 0x8a5   : > { %3035 = vrot.lane.b32.xlu1 %v3021_v25, %s5507_s1 }
 0x8a7   : > { %3029 = vperm.xlu0 %4325, %v3026_v61  }
 0x8a9   : > { %3194 = vperm.xlu1 %4326, %v3191_v28  }
 0x913   : > { %v3038_v31 = vpop.permute.xlu1 %3037 }
 0x915   : > { %v3040_v1 = vpop.permute.xlu0 %3039 }
 0x916   : > { %4237 = vmatpush3.msra.mxu1 %v3040_v1  ;;  %v3042_v32 = vsel %vm996_vm8, %v3038_v31, %v3040_v1 }
 0x917   : > { %v3036_v33 = vpop.permute.xlu1 %3035  ;;  %3080 = vmatprep.subr.mxu0 %v3042_v32  ;;  %4239 = vmatmul.mubr.msk.f32.vlgmr.msra.gmra.mxu1 %vm3046_vm0, %v3024_v58 }
 0x918   : > { %v3041_v34 = vsel %vm996_vm8, %v3036_v33, %v3038_v31  ;;  %4241 = vmatprep.subr.mxu1 %v4335_v0  ;;  %4243 = vmatprep.mubr.msk.f32.mxu1 %vm4360_vm3, %v4335_v0 }
 0x919   : > { %4242 = vmatpush3.msra.mxu1 %v3040_v1  ;;  %3081 = vmatpush1.msra.mxu0 %v3041_v34 }
 0x91a   : > { %3953 = vmatmul.mubr.msk.f32.vlgmr.msra.gmra.mxu0 %vm3046_vm0, %v3024_v58  ;;  %3230 = vmatprep.subr.mxu0 %v3042_v32 }
 0x91b   : > { %3231 = vmatpush1.msra.mxu0 %v3041_v34  ;;  %4244 = vmatmul.mubr.msk.f32.vlgmr.msra.gmra.mxu1 %vm3046_vm0, %v3025_v35 }
 0x91c   : > { %3264 = vmatprep.mubr.f32.mxu0 %v4335_v0  ;;  %4246 = vmatprep.subr.mxu1 %v4335_v0 }
 0x91d   : > { %4264 = vmatprep.mubr.msk.f32.mxu1 %vm4360_vm3, %v4335_v0 }
 0x91e   : > { %3955 = vmatmul.mubr.msk.f32.vlgmr.msra.gmra.mxu0 %vm3046_vm0, %v3025_v35 }
 0x91f   : > { %3634 = vmatprep.mubr.f32.mxu0 %v4335_v0 }
 0x922   : > { %v3030_v41 = vpop.permute.xlu0 %3029 }
 0x924   : > { %v3195_v44 = vpop.permute.xlu1 %3194 }
 0x9d7   : > { %v3187_v36 = vpop.f32.mrf.mxu1 }
 0x9d8   : > { %v3188_v52 = vadd.f32 %v3187_v36, %v3030_v41 }
 0x9d9   : > { %v4240_v37 = vpop.f32.mrf.mxu1 }
 0x9da   : > { %v3116_v38 = vpop.f32.mrf.mxu0 }
 0x9db   : > { %v3337_v39 = vpop.f32.mrf.mxu1  ;;  %v3117_v46 = vadd.f32 %v3116_v38, %v3030_v41 }
 0x9dc   : > { %v3118_v40 = vpop.f32.mrf.mxu0  ;;  %v3338_v48 = vadd.f32 %v3337_v39, %v3195_v44 }
 0x9dd   : > { %v4245_v43 = vpop.f32.mrf.mxu1  ;;  %v3119_v53 = vadd.f32 %v3118_v40, %v3030_v41 }
 0x9de   : > { %v3266_v45 = vpop.f32.mrf.mxu0  ;;  %v3343_v56 = vmax.f32 %v3188_v52, %v3338_v48 }
 0x9df   : > { %v3267_v50 = vadd.f32 %v3266_v45, %v3195_v44 }
 0x9e0   : > { %v3268_v51 = vpop.f32.mrf.mxu0  ;;  %v3346_v62 = vmul.f32 %v3343_v56, %v4697_v49 }
 0x9e1   : > { %v3341_v54 = vmax.f32 %v3117_v46, %v3267_v50  ;;  %v3269_v55 = vadd.f32 %v3268_v51, %v3195_v44 }
 0x9e3   : > { %v3344_v57 = vmul.f32 %v3341_v54, %v4693_v42  ;;  %v3342_v60 = vmax.f32 %v3119_v53, %v3269_v55 }
 0x9e5   : > { %v3345_v59 = vmul.f32 %v3342_v60, %v4695_v47  ;;  %3350 = vrot.lane.b32.xlu0 %v3344_v57, %s4362_s9  ;;  %v3559_v57 = vld [vmem:[%s5470_s22] sm:$0xf] }
 0x9e7   : > { %3352 = vrot.lane.b32.xlu1 %v3345_v59, %s4362_s9 }
 0x9e9   : > { %3354 = vrot.lane.b32.xlu0 %v3346_v62, %s4362_s9  ;;  %v3560_v62 = vld [vmem:[%s5472_s24] sm:$0xf] }
 0xa57   : > { %v3351_v63 = vpop.permute.xlu0 %3350 }
 0xa58   : > { %3362 = vst.msk [vmem:[#allocation2] sm:$0xff] %vm3361_vm1, %v3351_v63 }
 0xa59   : > { %v3353_v2 = vpop.permute.xlu1 %3352 }
 0xa5a   : > { %v5276_v4 = vsel %vm1450_vm14, %v3351_v63, %v3353_v2 }
 0xa5b   : > { %3363 = vst [vmem:[#allocation2 + $0x8] sm:$0xff] %v5276_v4  ;;  %v3355_v3 = vpop.permute.xlu0 %3354 }
 0xa5c   : > { %v3357_v5 = vsel %vm1450_vm14, %v3353_v2, %v3355_v3 }
 0xa5d   : > { %3365 = vst.msk [vmem:[#allocation2 + $0x10] sm:$0xff] %vm3364_vm13, %v3357_v5 }
 0xa5f   : > { %v5280_v6 = vld [vmem:[#allocation2] sm:$0xff] }
 0xa60   : > { %3518 = vrot.lane.b32.xlu1 %v5280_v6, %s4352_s29  ;;  %3498 = vrot.lane.b32.xlu0 %v5280_v6, %s4353_s5 }
 0xa64   : > { %3478 = vrot.lane.b32.xlu1 %v5280_v6, %s4354_s10  ;;  %3458 = vrot.lane.b32.xlu0 %v5280_v6, %s5510_s6  ;;  %v3514_v7 = vld [vmem:[#allocation2 + $0x10] sm:$0xff] }
 0xa65   : > { %3371 = vst.msk [vmem:[#allocation3 + $0x10] sm:$0xff] %vm919_vm2, %v3514_v7 }
 0xa68   : > { %3438 = vrot.lane.b32.xlu1 %v5280_v6, %s5507_s1  ;;  %3418 = vrot.lane.b32.xlu0 %v5280_v6, %s5508_s7 }
 0xa6c   : > { %3398 = vrot.lane.b32.xlu1 %v5280_v6, %s5502_s30  ;;  %3522 = vrot.lane.b32.xlu0 %v3514_v7, %s4352_s29  ;;  %v3534_v59 = vld [vmem:[#allocation3 + $0x10] sm:$0xff] }
 0xa70   : > { %3520 = vrot.lane.b32.xlu1 %v5276_v4, %s4352_s29  ;;  %3500 = vrot.lane.b32.xlu0 %v5276_v4, %s4353_s5  ;;  %s5511_s29 = smov 127  }
 0xa74   : > { %3502 = vrot.lane.b32.xlu1 %v3514_v7, %s4353_s5  ;;  %3482 = vrot.lane.b32.xlu0 %v3514_v7, %s4354_s10 }
 0xa78   : > { %3480 = vrot.lane.b32.xlu1 %v5276_v4, %s4354_s10  ;;  %3460 = vrot.lane.b32.xlu0 %v5276_v4, %s5510_s6 }
 0xa7c   : > { %3462 = vrot.lane.b32.xlu1 %v3514_v7, %s5510_s6  ;;  %3442 = vrot.lane.b32.xlu0 %v3514_v7, %s5507_s1  ;;  %s791_s6 = scalar_lea.vmem %s5474_s26, %s4288_s2 }
 0xa80   : > { %3440 = vrot.lane.b32.xlu1 %v5276_v4, %s5507_s1  ;;  %3420 = vrot.lane.b32.xlu0 %v5276_v4, %s5508_s7 }
 0xa84   : > { %3422 = vrot.lane.b32.xlu1 %v3514_v7, %s5508_s7  ;;  %3402 = vrot.lane.b32.xlu0 %v3514_v7, %s5502_s30 }
 0xa88   : > { %3400 = vrot.lane.b32.xlu1 %v5276_v4, %s5502_s30  ;;  %3380 = vrot.lane.b32.xlu0 %v5276_v4, %s5511_s29 }
 0xa8c   : > { %3378 = vrot.lane.b32.xlu0 %v5280_v6, %s5511_s29  ;;  %3382 = vrot.lane.b32.xlu1 %v3514_v7, %s5511_s29 }
 0xa90   : > { %3714 = vperm.xlu0 %4325, %v3711_v8   ;;  %3564 = vperm.xlu1 %4326, %v3561_v9  }
 0xad2   : > { %v3519_v10 = vpop.permute.xlu1 %3518  ;;  %v3499_v11 = vpop.permute.xlu0 %3498 }
 0xad6   : > { %v3479_v12 = vpop.permute.xlu1 %3478  ;;  %v3459_v13 = vpop.permute.xlu0 %3458 }
 0xada   : > { %v3439_v14 = vpop.permute.xlu1 %3438  ;;  %v3419_v15 = vpop.permute.xlu0 %3418 }
 0xade   : > { %v5329_v16 = vpop.permute.xlu1 %3398  ;;  %v3523_v17 = vpop.permute.xlu0 %3522 }
 0xadf   : > { %3531 = vst.msk [vmem:[#allocation3 + $0xd0] sm:$0xff] %vm919_vm2, %v3523_v17 }
 0xae2   : > { %v3521_v18 = vpop.permute.xlu1 %3520  ;;  %v3501_v19 = vpop.permute.xlu0 %3500 }
 0xae3   : > { %v5333_v20 = vsel %vm1080_vm4, %v3519_v10, %v3521_v18  ;;  %v5336_v21 = vsel %vm1080_vm4, %v3521_v18, %v3523_v17  ;;  %v5339_v22 = vsel %vm1059_vm5, %v3499_v11, %v3501_v19 }
 0xae4   : > { %3584 = vmatprep.subr.mxu0 %v5336_v21 }
 0xae5   : > { %3585 = vmatpush1.msra.mxu0 %v5333_v20 }
 0xae6   : > { %v3503_v23 = vpop.permute.xlu1 %3502  ;;  %v3483_v24 = vpop.permute.xlu0 %3482  ;;  %v5343_v26 = vld [vmem:[#allocation3 + $0xd0] sm:$0xff] }
 0xae7   : > { %v5346_v27 = vsel %vm1059_vm5, %v3501_v19, %v3503_v23  ;;  %3511 = vst.msk [vmem:[#allocation3 + $0xb8] sm:$0xff] %vm919_vm2, %v3503_v23  ;;  %3491 = vst.msk [vmem:[#allocation3 + $0xa0] sm:$0xff] %vm919_vm2, %v3483_v24  ;;  %4247 = vmatpush3.msra.mxu1 %v5343_v26 }
 0xae8   : > { %4248 = vmatprep.subr.mxu1 %v4335_v0  ;;  %3586 = vmatprep.subr.mxu0 %v5346_v27 }
 0xae9   : > { %3587 = vmatpush1.msra.mxu0 %v5339_v22 }
 0xaea   : > { %v3481_v29 = vpop.permute.xlu1 %3480  ;;  %v3461_v30 = vpop.permute.xlu0 %3460 }
 0xaeb   : > { %v5355_v25 = vsel %vm1038_vm6, %v3479_v12, %v3481_v29  ;;  %v5358_v61 = vsel %vm1038_vm6, %v3481_v29, %v3483_v24  ;;  %v5361_v28 = vsel %vm1017_vm7, %v3459_v13, %v3461_v30 }
 0xaec   : > { %3588 = vmatprep.subr.mxu0 %v5358_v61 }
 0xaed   : > { %3589 = vmatpush1.msra.mxu0 %v5355_v25 }
 0xaee   : > { %v3463_v31 = vpop.permute.xlu1 %3462  ;;  %v3443_v58 = vpop.permute.xlu0 %3442  ;;  %v5365_v1 = vld [vmem:[#allocation3 + $0xb8] sm:$0xff]  ;;  %v5374_v33 = vld [vmem:[#allocation3 + $0xa0] sm:$0xff] }
 0xaef   : > { %v5368_v32 = vsel %vm1017_vm7, %v3461_v30, %v3463_v31  ;;  %3471 = vst.msk [vmem:[#allocation3 + $0x88] sm:$0xff] %vm919_vm2, %v3463_v31  ;;  %3451 = vst.msk [vmem:[#allocation3 + $0x70] sm:$0xff] %vm919_vm2, %v3443_v58  ;;  %4249 = vmatpush3.msra.mxu1 %v5365_v1 }
 0xaf0   : > { %4250 = vmatprep.subr.mxu1 %v4335_v0  ;;  %3590 = vmatprep.subr.mxu0 %v5368_v32 }
 0xaf1   : > { %4251 = vmatpush3.msra.mxu1 %v5374_v33  ;;  %3591 = vmatpush1.msra.mxu0 %v5361_v28 }
 0xaf2   : > { %v3441_v34 = vpop.permute.xlu1 %3440  ;;  %v3421_v35 = vpop.permute.xlu0 %3420  ;;  %4252 = vmatprep.subr.mxu1 %v4335_v0 }
 0xaf3   : > { %v3444_v36 = vsel %vm996_vm8, %v3439_v14, %v3441_v34  ;;  %v3445_v37 = vsel %vm996_vm8, %v3441_v34, %v3443_v58  ;;  %v5383_v38 = vsel %vm975_vm9, %v3419_v15, %v3421_v35 }
 0xaf4   : > { %3592 = vmatprep.subr.mxu0 %v3445_v37 }
 0xaf5   : > { %3593 = vmatpush1.msra.mxu0 %v3444_v36 }
 0xaf6   : > { %v3423_v39 = vpop.permute.xlu1 %3422  ;;  %v3403_v40 = vpop.permute.xlu0 %3402  ;;  %v3549_v41 = vld [vmem:[#allocation3 + $0x88] sm:$0xff]  ;;  %v3546_v44 = vld [vmem:[#allocation3 + $0x70] sm:$0xff] }
 0xaf7   : > { %v3425_v43 = vsel %vm975_vm9, %v3421_v35, %v3423_v39  ;;  %3431 = vst.msk [vmem:[#allocation3 + $0x58] sm:$0xff] %vm919_vm2, %v3423_v39  ;;  %3411 = vst.msk [vmem:[#allocation3 + $0x40] sm:$0xff] %vm919_vm2, %v3403_v40  ;;  %4253 = vmatpush3.msra.mxu1 %v3549_v41 }
 0xaf8   : > { %4254 = vmatprep.subr.mxu1 %v4335_v0  ;;  %3594 = vmatprep.subr.mxu0 %v3425_v43 }
 0xaf9   : > { %4255 = vmatpush3.msra.mxu1 %v3546_v44  ;;  %3595 = vmatpush1.msra.mxu0 %v5383_v38 }
 0xafa   : > { %v3401_v45 = vpop.permute.xlu1 %3400  ;;  %v3381_v46 = vpop.permute.xlu0 %3380  ;;  %4256 = vmatprep.subr.mxu1 %v4335_v0 }
 0xafb   : > { %v3404_v48 = vsel %vm954_vm10, %v5329_v16, %v3401_v45  ;;  %v3405_v50 = vsel %vm954_vm10, %v3401_v45, %v3403_v40 }
 0xafc   : > { %3596 = vmatprep.subr.mxu0 %v3405_v50 }
 0xafd   : > { %3597 = vmatpush1.msra.mxu0 %v3404_v48 }
 0xafe   : > { %v3383_v51 = vpop.permute.xlu1 %3382  ;;  %v3379_v52 = vpop.permute.xlu0 %3378  ;;  %v3543_v53 = vld [vmem:[#allocation3 + $0x58] sm:$0xff]  ;;  %v3540_v56 = vld [vmem:[#allocation3 + $0x40] sm:$0xff] }
 0xaff   : > { %v3385_v54 = vsel %vm933_vm11, %v3381_v46, %v3383_v51  ;;  %3391 = vst.msk [vmem:[#allocation3 + $0x28] sm:$0xff] %vm919_vm2, %v3383_v51  ;;  %v3384_v55 = vsel %vm933_vm11, %v3379_v52, %v3381_v46  ;;  %4257 = vmatpush3.msra.mxu1 %v3543_v53  ;;  %vm3872_vm2 = vcmask 551936  }
 0xb00   : > { %4258 = vmatprep.subr.mxu1 %v4335_v0  ;;  %3598 = vmatprep.subr.mxu0 %v3385_v54 }
 0xb01   : > { %4259 = vmatpush3.msra.mxu1 %v3540_v56  ;;  %3599 = vmatpush1.msra.mxu0 %v3384_v55 }
 0xb02   : > { %4260 = vmatprep.subr.mxu1 %v4335_v0  ;;  %3600 = vmatprep.subr.mxu0 %v5276_v4 }
 0xb03   : > { %3601 = vmatpush1.msra.mxu0 %v5280_v6 }
 0xb04   : > { %3957 = vmatmul.mubr.msk.f32.vlgmr.msra.gmra.mxu0 %vm1124_vm12, %v3559_v57  ;;  %3734 = vmatprep.subr.mxu0 %v5336_v21 }
 0xb05   : > { %3735 = vmatpush1.msra.mxu0 %v5333_v20  ;;  %3784 = vmatprep.mubr.f32.mxu0 %v4335_v0 }
 0xb06   : > { %v3537_v60 = vld [vmem:[#allocation3 + $0x28] sm:$0xff]  ;;  %3736 = vmatprep.subr.mxu0 %v5346_v27 }
 0xb07   : > { %4261 = vmatpush3.msra.mxu1 %v3537_v60  ;;  %3737 = vmatpush1.msra.mxu0 %v5339_v22 }
 0xb08   : > { %4262 = vmatprep.subr.mxu1 %v4335_v0  ;;  %3738 = vmatprep.subr.mxu0 %v5358_v61 }
 0xb09   : > { %4263 = vmatpush3.msra.mxu1 %v3534_v59  ;;  %3739 = vmatpush1.msra.mxu0 %v5355_v25 }
 0xb0a   : > { %4265 = vmatmul.mubr.msk.f32.vlgmr.msra.gmra.mxu1 %vm1124_vm12, %v3559_v57  ;;  %4267 = vmatprep.subr.mxu1 %v4335_v0 }
 0xb0b   : > { %4268 = vmatpush3.msra.mxu1 %v5343_v26  ;;  %3740 = vmatprep.subr.mxu0 %v5368_v32  ;;  %v3565_v7 = vpop.permute.xlu1 %3564 }
 0xb0c   : > { %4269 = vmatprep.subr.mxu1 %v4335_v0  ;;  %3741 = vmatpush1.msra.mxu0 %v5361_v28 }
 0xb0d   : > { %4270 = vmatpush3.msra.mxu1 %v5365_v1  ;;  %3742 = vmatprep.subr.mxu0 %v3445_v37 }
 0xb0e   : > { %4271 = vmatprep.subr.mxu1 %v4335_v0  ;;  %3743 = vmatpush1.msra.mxu0 %v3444_v36 }
 0xb0f   : > { %4272 = vmatpush3.msra.mxu1 %v5374_v33  ;;  %3744 = vmatprep.subr.mxu0 %v3425_v43 }
 0xb10   : > { %4273 = vmatprep.subr.mxu1 %v4335_v0  ;;  %3745 = vmatpush1.msra.mxu0 %v5383_v38 }
 0xb11   : > { %4274 = vmatpush3.msra.mxu1 %v3549_v41  ;;  %3746 = vmatprep.subr.mxu0 %v3405_v50 }
 0xb12   : > { %4275 = vmatprep.subr.mxu1 %v4335_v0  ;;  %3747 = vmatpush1.msra.mxu0 %v3404_v48 }
 0xb13   : > { %4276 = vmatpush3.msra.mxu1 %v3546_v44  ;;  %3748 = vmatprep.subr.mxu0 %v3385_v54 }
 0xb14   : > { %4277 = vmatprep.subr.mxu1 %v4335_v0  ;;  %3749 = vmatpush1.msra.mxu0 %v3384_v55 }
 0xb15   : > { %4278 = vmatpush3.msra.mxu1 %v3543_v53  ;;  %4285 = vmatprep.mubr.msk.f32.mxu1 %vm4360_vm3, %v4335_v0 }
 0xb16   : > { %4279 = vmatprep.subr.mxu1 %v4335_v0  ;;  %3750 = vmatprep.subr.mxu0 %v5276_v4  ;;  %v3715_v4 = vpop.permute.xlu0 %3714 }
 0xb17   : > { %4280 = vmatpush3.msra.mxu1 %v3540_v56  ;;  %3751 = vmatpush1.msra.mxu0 %v5280_v6 }
 0xb18   : > { %4281 = vmatprep.subr.mxu1 %v4335_v0  ;;  %3959 = vmatmul.mubr.msk.f32.vlgmr.msra.gmra.mxu0 %vm1124_vm12, %v3560_v62 }
 0xb19   : > { %4282 = vmatpush3.msra.mxu1 %v3537_v60 }
 0xb1a   : > { %4283 = vmatprep.subr.mxu1 %v4335_v0 }
 0xb1b   : > { %4284 = vmatpush3.msra.mxu1 %v3534_v59 }
 0xb1c   : > { %4286 = vmatmul.mubr.msk.f32.vlgmr.msra.gmra.mxu1 %vm1124_vm12, %v3560_v62 }
 0xbc4   : > { %v3636_v3 = vpop.f32.mrf.mxu0 }
 0xbc5   : > { %v3637_v9 = vadd.f32 %v3636_v3, %v3565_v7 }
 0xbc6   : > { %v3638_v5 = vpop.f32.mrf.mxu0 }
 0xbc7   : > { %v3639_v11 = vadd.f32 %v3638_v5, %v3565_v7 }
 0xbca   : > { %v3707_v63 = vpop.f32.mrf.mxu1 }
 0xbcb   : > { %v3708_v0 = vadd.f32 %v3707_v63, %v3565_v7 }
 0xbcc   : > { %v4266_v2 = vpop.f32.mrf.mxu1 }
 0xbd8   : > { %v3786_v8 = vpop.f32.mrf.mxu0 }
 0xbd9   : > { %v3787_v6 = vadd.f32 %v3786_v8, %v3715_v4 }
 0xbda   : > { %v3788_v10 = vpop.f32.mrf.mxu0 }
 0xbdb   : > { %v3861_v12 = vmax.f32 %v3637_v9, %v3787_v6  ;;  %v3789_v13 = vadd.f32 %v3788_v10, %v3715_v4 }
 0xbdc   : > { %v3857_v14 = vpop.f32.mrf.mxu1 }
 0xbdd   : > { %v3858_v15 = vadd.f32 %v3857_v14, %v3715_v4  ;;  %v3862_v16 = vmax.f32 %v3639_v11, %v3789_v13  ;;  %v3864_v19 = vmul.f32 %v3861_v12, %v4693_v42 }
 0xbde   : > { %v4287_v17 = vpop.f32.mrf.mxu1 }
 0xbdf   : > { %v3863_v18 = vmax.f32 %v3708_v0, %v3858_v15  ;;  %v3865_v20 = vmul.f32 %v3862_v16, %v4695_v47 }
 0xbe1   : > { %v3866_v21 = vmul.f32 %v3863_v18, %v4697_v49  ;;  %v3869_v22 = vcombine.low %v3864_v19, %v3865_v20 }
 0xbe3   : > { %3873 = vst.msk [vmem:[%s791_s6 + $0x8] sm:$0xf] %vm3872_vm2, %v3866_v21  ;;  %3871 = vst [vmem:[%s791_s6] sm:$0xff] %v3869_v22 }
 0xbe4 PF: > { %s36_s27 = sadd.s32 1, %s4333_s27  }
 0xbe5   : > { %p33_p4 = scmp.ge.s32.totalorder %s36_s27, 4  }
 0xbe7   :  { %35 = sbr.rel (!%p33_p4) target bundleno = 12 (0xc), region = 154 }

</bundles_post_ra>
